<compile_context>
chip_gen: v7x
topology: tpu7x:2x2x1
jax: 0.10.0
libtpu: 0.0.40
codegen_flags: <defaults>
</compile_context>

<pallas_src>
import functools

import jax
import jax.numpy as jnp
from jax.experimental import pallas as pl
from jax.experimental.pallas import tpu as pltpu


# ----------------------------------------------------------------------------
# 3x3 "SAME" conv over a W-padded bf16 slab via MXU tap-matmuls.
# ----------------------------------------------------------------------------
def _conv3x3_taps(src, w_ref, rows_out, W, cin, kw_fold):
    """src: (rows_out + 2, W + 2, cin) bf16, already zero-padded in W.

    Returns f32 (rows_out * W, Cout).
    """
    m = rows_out * W
    if kw_fold:
        # Fold the 3 kw taps into the contraction dim (K = 3*cin): 3 matmuls.
        # w_ref is (3, 3*cin, Cout), i.e. [kh, kw*cin + ci, co].
        cols = jnp.concatenate(
            [src[:, 0:W, :], src[:, 1:W + 1, :], src[:, 2:W + 2, :]], axis=-1)
        acc = None
        for kh in range(3):
            patch = cols[kh:kh + rows_out].reshape(m, 3 * cin)
            d = jnp.dot(patch, w_ref[kh], preferred_element_type=jnp.float32)
            acc = d if acc is None else acc + d
        return acc
    # Fallback (cin not lane-aligned): build the 3 kw-shifted slabs ONCE and
    # reuse them across kh (3 misaligned slice copies instead of 9).
    # w_ref is (3, 3, cin, Cout) HWIO.
    slabs = [src[:, kw:kw + W, :] for kw in range(3)]
    acc = None
    for kh in range(3):
        for kw in range(3):
            patch = slabs[kw][kh:kh + rows_out].reshape(m, cin)
            d = jnp.dot(patch, w_ref[kh, kw], preferred_element_type=jnp.float32)
            acc = d if acc is None else acc + d
    return acc


# ----------------------------------------------------------------------------
# Fused BasicBlock kernel (two variants: full-image / row-tiled-with-halo).
# ----------------------------------------------------------------------------
def _make_block_kernel(Ht, W, Cin, Cmid, Cout, *, halo, kw_fold1, kw_fold2):
    rin = Ht + 4 if halo else Ht + 2   # padded conv1-input rows
    r1 = Ht + 2 if halo else Ht        # conv1 rows computed (incl. conv2 halos if tiled)

    def body(xc_ref, xt_ref, xb_ref, w1_ref, w2_ref,
             s0_ref, b0_ref, s1_ref, b1_ref, o_ref, xpad_ref, midpad_ref):
        # xc_ref : (1, Ht, W, Cin)  current row tile of x (also the identity)
        # xt_ref : (1, 2,  W, Cin)  two rows above (halo path only)
        # xb_ref : (1, 2,  W, Cin)  two rows below (halo path only)
        # w1_ref : bf16 conv1 weights   ((3,3,Cin,Cmid) or kw-folded (3,3*Cin,Cmid))
        # w2_ref : bf16 conv2 weights   ((3,3,Cmid,Cout) or kw-folded (3,3*Cmid,Cout))
        # s*/b*  : (1, C) folded BN scale/bias (f32)
        # o_ref  : (1, Ht, W, Cout)
        # xpad_ref   : VMEM (rin,  W+2, Cin)  bf16  padded bn0+relu input for conv1
        # midpad_ref : VMEM (Ht+2, W+2, Cmid) bf16  padded bn1+relu conv1 output
        s0 = s0_ref[0]
        b0 = b0_ref[0]

        def bn0_relu(v):  # f32 math, bf16 store (matches bf16 MXU operands)
            return jnp.maximum(v.astype(jnp.float32) * s0 + b0, 0.0).astype(jnp.bfloat16)

        # --- zero ONLY what compute does not overwrite (SAME-padding borders) ---
        zc_in = jnp.zeros((rin, 1, Cin), jnp.bfloat16)
        xpad_ref[:, 0:1, :] = zc_in
        xpad_ref[:, W + 1:W + 2, :] = zc_in
        zc_mid = jnp.zeros((Ht + 2, 1, Cmid), jnp.bfloat16)
        midpad_ref[:, 0:1, :] = zc_mid
        midpad_ref[:, W + 1:W + 2, :] = zc_mid

        # --- stage bn0+relu'd input (fused; no standalone elementwise pass) ---
        if halo:
            t = pl.program_id(1)
            T = pl.num_programs(1)
            xpad_ref[2:Ht + 2, 1:W + 1, :] = bn0_relu(xc_ref[0])

            @pl.when(t > 0)
            def _():  # two halo rows above the tile
                xpad_ref[0:2, 1:W + 1, :] = bn0_relu(xt_ref[0])

            @pl.when(t == 0)
            def _():  # image top edge: zero padding
                xpad_ref[0:2, 1:W + 1, :] = jnp.zeros((2, W, Cin), jnp.bfloat16)

            @pl.when(t < T - 1)
            def _():  # two halo rows below the tile
                xpad_ref[Ht + 2:Ht + 4, 1:W + 1, :] = bn0_relu(xb_ref[0])

            @pl.when(t == T - 1)
            def _():  # image bottom edge: zero padding
                xpad_ref[Ht + 2:Ht + 4, 1:W + 1, :] = jnp.zeros((2, W, Cin), jnp.bfloat16)
        else:
            xpad_ref[0:1, :, :] = jnp.zeros((1, W + 2, Cin), jnp.bfloat16)
            xpad_ref[Ht + 1:Ht + 2, :, :] = jnp.zeros((1, W + 2, Cin), jnp.bfloat16)
            xpad_ref[1:Ht + 1, 1:W + 1, :] = bn0_relu(xc_ref[0])

        # --- conv1 (+ bn1 + relu), staged for conv2 in VMEM (never hits HBM) ---
        acc1 = _conv3x3_taps(xpad_ref[...], w1_ref, r1, W, Cin, kw_fold1)
        mid = jnp.maximum(acc1 * s1_ref[0] + b1_ref[0], 0.0).astype(jnp.bfloat16)
        mid0 = 0 if halo else 1
        midpad_ref[mid0:mid0 + r1, 1:W + 1, :] = mid.reshape(r1, W, Cmid)

        # conv1 output does not exist outside the image: zero those rows so
        # conv2 sees the correct zero padding at the top/bottom image edge.
        if halo:
            @pl.when(t == 0)
            def _():
                midpad_ref[0:1, :, :] = jnp.zeros((1, W + 2, Cmid), jnp.bfloat16)

            @pl.when(t == T - 1)
            def _():
                midpad_ref[Ht + 1:Ht + 2, :, :] = jnp.zeros((1, W + 2, Cmid), jnp.bfloat16)
        else:
            midpad_ref[0:1, :, :] = jnp.zeros((1, W + 2, Cmid), jnp.bfloat16)
            midpad_ref[Ht + 1:Ht + 2, :, :] = jnp.zeros((1, W + 2, Cmid), jnp.bfloat16)

        # --- conv2 + residual add ---
        acc2 = _conv3x3_taps(midpad_ref[...], w2_ref, Ht, W, Cmid, kw_fold2)
        out = acc2.reshape(Ht, W, Cout) + xc_ref[0].astype(jnp.float32)
        o_ref[...] = out[None].astype(o_ref.dtype)

    if halo:
        return body

    def body_nohalo(xc_ref, w1_ref, w2_ref, s0_ref, b0_ref, s1_ref, b1_ref,
                    o_ref, xpad_ref, midpad_ref):
        return body(xc_ref, None, None, w1_ref, w2_ref,
                    s0_ref, b0_ref, s1_ref, b1_ref, o_ref, xpad_ref, midpad_ref)

    return body_nohalo


# ----------------------------------------------------------------------------
# Wrapper helpers
# ----------------------------------------------------------------------------
def _fold_bn(gamma, beta, mean, var, eps=1e-5):
    scale = gamma / jnp.sqrt(var + eps)
    bias = beta - mean * scale
    return scale, bias


@functools.lru_cache(maxsize=1)
def _vmem_capacity_bytes():
    try:
        info = pltpu.get_tpu_info()
        return int(getattr(info, "vmem_capacity_bytes", 64 * 1024 * 1024))
    except Exception:
        return 64 * 1024 * 1024   # conservative (v7x per-core VMEM)


def _footprint_bytes(Ht, W, Cin, Cmid, Cout, halo, xbytes=4):
    blk_in = Ht * W * Cin * xbytes
    blk_halo = 2 * (2 * W * Cin * xbytes) if halo else 0
    blk_out = Ht * W * Cout * xbytes
    wts = (9 * Cin * Cmid + 9 * Cmid * Cout) * 2              # bf16
    scr = ((Ht + (4 if halo else 2)) * (W + 2) * Cin
           + (Ht + 2) * (W + 2) * Cmid) * 2                   # bf16 scratches
    # pipelined in/out blocks + weights are double-buffered; scratch is single.
    return 2 * (blk_in + blk_halo + blk_out + wts) + scr


def _pick_ht(H, W, Cin, Cmid, Cout, budget, xbytes):
    """Full image if it fits (no halo, no recompute); else largest even divisor."""
    if H % 2 or _footprint_bytes(H, W, Cin, Cmid, Cout, False, xbytes) <= budget:
        return H
    for cand in range(H - 2, 0, -2):
        if H % cand == 0 and _footprint_bytes(cand, W, Cin, Cmid, Cout, True, xbytes) <= budget:
            return cand
    return 2


# ----------------------------------------------------------------------------
# Main entry points
# ----------------------------------------------------------------------------
@functools.partial(jax.jit, static_argnames=("ht",))
def basic_block_forward_nhwc(x, params, *, ht=None):
    """x: (N, H, W, Cin) NHWC float32.  Preferred entry point (no transposes)."""
    N, H, W, Cin = x.shape
    w1 = params["w1"]                       # (3,3,Cin,Cmid) HWIO
    w2 = params["w2"]                       # (3,3,Cmid,Cout) HWIO
    Cmid = w1.shape[-1]
    Cout = w2.shape[-1]
    assert Cout == Cin, "residual add requires matching channels (stride=1 path)"

    s0, b0 = _fold_bn(*params["bn0"])
    s1, b1 = _fold_bn(*params["bn1"])

    xbytes = x.dtype.itemsize
    cap = _vmem_capacity_bytes()
    Ht = _pick_ht(H, W, Cin, Cmid, Cout, cap // 3, xbytes) if ht is None else ht
    assert H % Ht == 0
    T = H // Ht
    halo = T > 1
    if halo:
        assert Ht % 2 == 0 and H % 2 == 0, "tiled (halo) path needs even tile / even H"

    # kw taps folded into K only when the concat is lane-aligned (C % 128 == 0).
    kw_fold1 = (Cin % 128 == 0)
    kw_fold2 = (Cmid % 128 == 0)
    # TODO(synk): in a full network, pre-cast / pre-reshape weights once instead
    # of per call.
    w1b = w1.astype(jnp.bfloat16)
    w2b = w2.astype(jnp.bfloat16)
    if kw_fold1:
        w1b = w1b.reshape(3, 3 * Cin, Cmid)      # [kh, kw*Cin + ci, co]
    if kw_fold2:
        w2b = w2b.reshape(3, 3 * Cmid, Cout)

    kernel = _make_block_kernel(Ht, W, Cin, Cmid, Cout,
                                halo=halo, kw_fold1=kw_fold1, kw_fold2=kw_fold2)

    xpad_rows = Ht + 4 if halo else Ht + 2
    scratch_shapes = [
        pltpu.VMEM((xpad_rows, W + 2, Cin), jnp.bfloat16),     # padded conv1 input
        pltpu.VMEM((Ht + 2, W + 2, Cmid), jnp.bfloat16),       # padded conv1 output
    ]

    fp = _footprint_bytes(Ht, W, Cin, Cmid, Cout, halo, xbytes)
    vmem_limit = int(min(3 * cap // 4, max(2 * fp, 32 * 1024 * 1024)))

    if halo:
        half = Ht // 2
        nb2 = H // 2                      # number of 2-row halo blocks along H
        grid = (N, T)
        in_specs = [
            # current row tile of x (also the identity branch)
            pl.BlockSpec((1, Ht, W, Cin), lambda n, t: (n, t, 0, 0)),
            # 2-row halo above (clamped at t==0; masked in-kernel)
            pl.BlockSpec((1, 2, W, Cin),
                         lambda n, t: (n, jnp.maximum(t * half - 1, 0), 0, 0)),
            # 2-row halo below (clamped at last tile; masked in-kernel)
            pl.BlockSpec((1, 2, W, Cin),
                         lambda n, t: (n, jnp.minimum((t + 1) * half, nb2 - 1), 0, 0)),
            pl.BlockSpec(w1b.shape, lambda n, t: (0,) * w1b.ndim),
            pl.BlockSpec(w2b.shape, lambda n, t: (0,) * w2b.ndim),
            pl.BlockSpec((1, Cin), lambda n, t: (0, 0)),
            pl.BlockSpec((1, Cin), lambda n, t: (0, 0)),
            pl.BlockSpec((1, Cmid), lambda n, t: (0, 0)),
            pl.BlockSpec((1, Cmid), lambda n, t: (0, 0)),
        ]
        out_specs = pl.BlockSpec((1, Ht, W, Cout), lambda n, t: (n, t, 0, 0))
        dims = ("parallel", "parallel")
        args = (x, x, x, w1b, w2b,
                s0.reshape(1, Cin), b0.reshape(1, Cin),
                s1.reshape(1, Cmid), b1.reshape(1, Cmid))
    else:
        grid = (N,)
        in_specs = [
            pl.BlockSpec((1, H, W, Cin), lambda n: (n, 0, 0, 0)),
            pl.BlockSpec(w1b.shape, lambda n: (0,) * w1b.ndim),
            pl.BlockSpec(w2b.shape, lambda n: (0,) * w2b.ndim),
            pl.BlockSpec((1, Cin), lambda n: (0, 0)),
            pl.BlockSpec((1, Cin), lambda n: (0, 0)),
            pl.BlockSpec((1, Cmid), lambda n: (0, 0)),
            pl.BlockSpec((1, Cmid), lambda n: (0, 0)),
        ]
        out_specs = pl.BlockSpec((1, H, W, Cout), lambda n: (n, 0, 0, 0))
        dims = ("parallel",)
        args = (x, w1b, w2b,
                s0.reshape(1, Cin), b0.reshape(1, Cin),
                s1.reshape(1, Cmid), b1.reshape(1, Cmid))

    return pl.pallas_call(
        kernel,
        out_shape=jax.ShapeDtypeStruct((N, H, W, Cout), x.dtype),
        grid=grid,
        in_specs=in_specs,
        out_specs=out_specs,
        scratch_shapes=scratch_shapes,
        compiler_params=pltpu.CompilerParams(
            dimension_semantics=dims,
            vmem_limit_bytes=vmem_limit,
        ),
    )(*args)


def basic_block_forward(x_nchw, params, *, ht=None):
    """PyTorch-parity wrapper: NCHW in / NCHW out.

    The transposes are full-tensor HBM passes; prefer basic_block_forward_nhwc
    when chaining blocks in a real network.
    """
    x = jnp.transpose(x_nchw, (0, 2, 3, 1))
    out = basic_block_forward_nhwc(x, params, ht=ht)
    return jnp.transpose(out, (0, 3, 1, 2))


# ----------------------------------------------------------------------------
# Pure-JAX references (correctness check)
# ----------------------------------------------------------------------------
def _reference(x_nchw, params, *, bf16_operands):
    x = jnp.transpose(x_nchw, (0, 2, 3, 1))
    identity = x
    s0, b0 = _fold_bn(*params["bn0"])
    s1, b1 = _fold_bn(*params["bn1"])
    dn = ("NHWC", "HWIO", "NHWC")
    dt = jnp.bfloat16 if bf16_operands else jnp.float32
    w1 = params["w1"].astype(dt)
    w2 = params["w2"].astype(dt)

    out = jnp.maximum(x * s0 + b0, 0.0).astype(dt)
    out = jax.lax.conv_general_dilated(out, w1, (1, 1), "SAME",
                                       dimension_numbers=dn,
                                       preferred_element_type=jnp.float32)
    out = jnp.maximum(out * s1 + b1, 0.0).astype(dt)
    out = jax.lax.conv_general_dilated(out, w2, (1, 1), "SAME",
                                       dimension_numbers=dn,
                                       preferred_element_type=jnp.float32)
    out = out + identity
    return jnp.transpose(out, (0, 3, 1, 2))


# ----------------------------------------------------------------------------
if __name__ == "__main__":
    key = jax.random.PRNGKey(0)

    def make_params(k, cin, cmid):
        ks = jax.random.split(k, 10)
        return {
            "w1": 0.1 * jax.random.normal(ks[0], (3, 3, cin, cmid), jnp.float32),
            "w2": 0.1 * jax.random.normal(ks[1], (3, 3, cmid, cmid), jnp.float32),
            "bn0": (1.0 + 0.1 * jax.random.normal(ks[2], (cin,), jnp.float32),
                    0.1 * jax.random.normal(ks[3], (cin,), jnp.float32),
                    0.1 * jax.random.normal(ks[4], (cin,), jnp.float32),
                    1.0 + 0.1 * jax.random.uniform(ks[5], (cin,), jnp.float32)),
            "bn1": (1.0 + 0.1 * jax.random.normal(ks[6], (cmid,), jnp.float32),
                    0.1 * jax.random.normal(ks[7], (cmid,), jnp.float32),
                    0.1 * jax.random.normal(ks[8], (cmid,), jnp.float32),
                    1.0 + 0.1 * jax.random.uniform(ks[9], (cmid,), jnp.float32)),
        }

    kpa, kpb, kxa, kxb = jax.random.split(key, 4)

    # --- Config A: tiny channels (C=4), 16x16 spatial -----------------------
    # Exercises both the default full-image (no-halo) kernel and the row-tiled
    # halo kernel (shifted-slab conv path, since C is not lane-aligned).
    N, C, H, W = 2, 4, 16, 16
    xA = jax.random.normal(kxa, (N, C, H, W), jnp.float32)
    pA = make_params(kpa, C, C)

    outA_full = jax.block_until_ready(basic_block_forward(xA, pA))          # Ht = H
    outA_tile = jax.block_until_ready(basic_block_forward(xA, pA, ht=8))    # halo path
    refA_bf16 = jax.block_until_ready(_reference(xA, pA, bf16_operands=True))
    refA_f32 = jax.block_until_ready(_reference(xA, pA, bf16_operands=False))
    for o in (outA_full, outA_tile):
        assert o.shape == (N, C, H, W)
        assert jnp.allclose(o, refA_bf16, atol=1e-2, rtol=1e-2), "A: mismatch vs bf16 ref"
        assert jnp.allclose(o, refA_f32, atol=5e-2, rtol=5e-2), "A: mismatch vs f32 ref"

    # --- Config B: lane-aligned channels (C=128), 8x8 spatial ---------------
    # Exercises the kw-folded (K = 3*C) MXU path on the no-halo kernel.
    Nb, Cb, Hb, Wb = 2, 128, 8, 8
    xB = jax.random.normal(kxb, (Nb, Cb, Hb, Wb), jnp.float32)
    pB = make_params(kpb, Cb, Cb)

    outB = jax.block_until_ready(basic_block_forward(xB, pB))
    refB_bf16 = jax.block_until_ready(_reference(xB, pB, bf16_operands=True))
    refB_f32 = jax.block_until_ready(_reference(xB, pB, bf16_operands=False))
    assert outB.shape == (Nb, Cb, Hb, Wb)
    assert jnp.allclose(outB, refB_bf16, atol=3e-2, rtol=3e-2), "B: mismatch vs bf16 ref"
    assert jnp.allclose(outB, refB_f32, atol=5e-1, rtol=1e-1), "B: mismatch vs f32 ref"

    print("KERNEL_OK")
</pallas_src>

<mosaic_0001>
module attributes {stable_mosaic.version = 11 : i64} {
  func.func @body_nohalo(%arg0: i32, %arg1: memref<1x16x16x4xf32, #tpu.memory_space<vmem>>, %arg2: memref<3x3x4x4xbf16, #tpu.memory_space<vmem>>, %arg3: memref<3x3x4x4xbf16, #tpu.memory_space<vmem>>, %arg4: memref<1x4xf32, #tpu.memory_space<vmem>>, %arg5: memref<1x4xf32, #tpu.memory_space<vmem>>, %arg6: memref<1x4xf32, #tpu.memory_space<vmem>>, %arg7: memref<1x4xf32, #tpu.memory_space<vmem>>, %arg8: memref<1x16x16x4xf32, #tpu.memory_space<vmem>>, %arg9: memref<18x18x4xbf16, #tpu.memory_space<vmem>>, %arg10: memref<18x18x4xbf16, #tpu.memory_space<vmem>>) attributes {dimension_semantics = [#tpu.dimension_semantics<parallel>], iteration_bounds = array<i64: 2>, scalar_prefetch = 0 : i64, scratch_operands = 2 : i64, tpu.core_type = #tpu.core_type<tc>, window_params = [{transform_indices = @transform_0, window_bounds = array<i64: 1, 16, 16, 4>}, {pipeline_mode = #tpu.pipeline_mode<synchronous>, transform_indices = @transform_1, window_bounds = array<i64: 3, 3, 4, 4>}, {pipeline_mode = #tpu.pipeline_mode<synchronous>, transform_indices = @transform_2, window_bounds = array<i64: 3, 3, 4, 4>}, {pipeline_mode = #tpu.pipeline_mode<synchronous>, transform_indices = @transform_3, window_bounds = array<i64: 1, 4>}, {pipeline_mode = #tpu.pipeline_mode<synchronous>, transform_indices = @transform_4, window_bounds = array<i64: 1, 4>}, {pipeline_mode = #tpu.pipeline_mode<synchronous>, transform_indices = @transform_5, window_bounds = array<i64: 1, 4>}, {pipeline_mode = #tpu.pipeline_mode<synchronous>, transform_indices = @transform_6, window_bounds = array<i64: 1, 4>}, {transform_indices = @transform_7, window_bounds = array<i64: 1, 16, 16, 4>}]} {
    %c0 = arith.constant 0 : index
    %c0_0 = arith.constant 0 : index
    %0 = vector.load %arg4[%c0, %c0_0] : memref<1x4xf32, #tpu.memory_space<vmem>>, vector<1x4xf32>
    %1 = vector.shape_cast %0 : vector<1x4xf32> to vector<4xf32>
    %c0_1 = arith.constant 0 : index
    %c0_2 = arith.constant 0 : index
    %2 = vector.load %arg5[%c0_1, %c0_2] : memref<1x4xf32, #tpu.memory_space<vmem>>, vector<1x4xf32>
    %3 = vector.shape_cast %2 : vector<1x4xf32> to vector<4xf32>
    %cst = arith.constant 0.000000e+00 : bf16
    %4 = vector.broadcast %cst : bf16 to vector<18x1x4xbf16>
    %c0_3 = arith.constant 0 : index
    %c0_4 = arith.constant 0 : index
    %c0_5 = arith.constant 0 : index
    %5 = vector.load %arg9[%c0_3, %c0_4, %c0_5] : memref<18x18x4xbf16, #tpu.memory_space<vmem>>, vector<18x1x4xbf16>
    tpu.vector_store %arg9[%c0_3, %c0_4, %c0_5], %4 {strides = array<i32>} : memref<18x18x4xbf16, #tpu.memory_space<vmem>>, vector<18x1x4xbf16>,
    %c0_6 = arith.constant 0 : index
    %c17 = arith.constant 17 : index
    %c0_7 = arith.constant 0 : index
    %6 = vector.load %arg9[%c0_6, %c17, %c0_7] : memref<18x18x4xbf16, #tpu.memory_space<vmem>>, vector<18x1x4xbf16>
    tpu.vector_store %arg9[%c0_6, %c17, %c0_7], %4 {strides = array<i32>} : memref<18x18x4xbf16, #tpu.memory_space<vmem>>, vector<18x1x4xbf16>,
    %cst_8 = arith.constant 0.000000e+00 : bf16
    %7 = vector.broadcast %cst_8 : bf16 to vector<18x1x4xbf16>
    %c0_9 = arith.constant 0 : index
    %c0_10 = arith.constant 0 : index
    %c0_11 = arith.constant 0 : index
    %8 = vector.load %arg10[%c0_9, %c0_10, %c0_11] : memref<18x18x4xbf16, #tpu.memory_space<vmem>>, vector<18x1x4xbf16>
    tpu.vector_store %arg10[%c0_9, %c0_10, %c0_11], %7 {strides = array<i32>} : memref<18x18x4xbf16, #tpu.memory_space<vmem>>, vector<18x1x4xbf16>,
    %c0_12 = arith.constant 0 : index
    %c17_13 = arith.constant 17 : index
    %c0_14 = arith.constant 0 : index
    %9 = vector.load %arg10[%c0_12, %c17_13, %c0_14] : memref<18x18x4xbf16, #tpu.memory_space<vmem>>, vector<18x1x4xbf16>
    tpu.vector_store %arg10[%c0_12, %c17_13, %c0_14], %7 {strides = array<i32>} : memref<18x18x4xbf16, #tpu.memory_space<vmem>>, vector<18x1x4xbf16>,
    %cst_15 = arith.constant 0.000000e+00 : bf16
    %10 = vector.broadcast %cst_15 : bf16 to vector<1x18x4xbf16>
    %c0_16 = arith.constant 0 : index
    %c0_17 = arith.constant 0 : index
    %c0_18 = arith.constant 0 : index
    %11 = vector.load %arg9[%c0_16, %c0_17, %c0_18] : memref<18x18x4xbf16, #tpu.memory_space<vmem>>, vector<1x18x4xbf16>
    tpu.vector_store %arg9[%c0_16, %c0_17, %c0_18], %10 {strides = array<i32>} : memref<18x18x4xbf16, #tpu.memory_space<vmem>>, vector<1x18x4xbf16>,
    %cst_19 = arith.constant 0.000000e+00 : bf16
    %12 = vector.broadcast %cst_19 : bf16 to vector<1x18x4xbf16>
    %c17_20 = arith.constant 17 : index
    %c0_21 = arith.constant 0 : index
    %c0_22 = arith.constant 0 : index
    %13 = vector.load %arg9[%c17_20, %c0_21, %c0_22] : memref<18x18x4xbf16, #tpu.memory_space<vmem>>, vector<1x18x4xbf16>
    tpu.vector_store %arg9[%c17_20, %c0_21, %c0_22], %12 {strides = array<i32>} : memref<18x18x4xbf16, #tpu.memory_space<vmem>>, vector<1x18x4xbf16>,
    %c0_23 = arith.constant 0 : index
    %c0_24 = arith.constant 0 : index
    %c0_25 = arith.constant 0 : index
    %c0_26 = arith.constant 0 : index
    %14 = vector.load %arg1[%c0_23, %c0_24, %c0_25, %c0_26] : memref<1x16x16x4xf32, #tpu.memory_space<vmem>>, vector<1x16x16x4xf32>
    %15 = vector.shape_cast %14 : vector<1x16x16x4xf32> to vector<16x16x4xf32>
    %16 = vector.shape_cast %1 : vector<4xf32> to vector<1x1x4xf32>
    %17 = vector.broadcast %16 : vector<1x1x4xf32> to vector<16x16x4xf32>
    %18 = arith.mulf %15, %17 : vector<16x16x4xf32>
    %19 = vector.shape_cast %3 : vector<4xf32> to vector<1x1x4xf32>
    %20 = vector.broadcast %19 : vector<1x1x4xf32> to vector<16x16x4xf32>
    %21 = arith.addf %18, %20 : vector<16x16x4xf32>
    %cst_27 = arith.constant 0.000000e+00 : f32
    %22 = vector.broadcast %cst_27 : f32 to vector<16x16x4xf32>
    %23 = arith.maximumf %21, %22 : vector<16x16x4xf32>
    %24 = arith.truncf %23 : vector<16x16x4xf32> to vector<16x16x4xbf16>
    %c1 = arith.constant 1 : index
    %c1_28 = arith.constant 1 : index
    %c0_29 = arith.constant 0 : index
    %25 = vector.load %arg9[%c1, %c1_28, %c0_29] : memref<18x18x4xbf16, #tpu.memory_space<vmem>>, vector<16x16x4xbf16>
    tpu.vector_store %arg9[%c1, %c1_28, %c0_29], %24 {strides = array<i32>} : memref<18x18x4xbf16, #tpu.memory_space<vmem>>, vector<16x16x4xbf16>,
    %c0_30 = arith.constant 0 : index
    %c0_31 = arith.constant 0 : index
    %c0_32 = arith.constant 0 : index
    %26 = vector.load %arg9[%c0_30, %c0_31, %c0_32] : memref<18x18x4xbf16, #tpu.memory_space<vmem>>, vector<18x18x4xbf16>
    %27 = vector.extract_strided_slice %26 {offsets = [0, 0, 0], sizes = [18, 16, 4], strides = [1, 1, 1]} : vector<18x18x4xbf16> to vector<18x16x4xbf16>
    %28 = vector.extract_strided_slice %26 {offsets = [0, 1, 0], sizes = [18, 16, 4], strides = [1, 1, 1]} : vector<18x18x4xbf16> to vector<18x16x4xbf16>
    %29 = vector.extract_strided_slice %26 {offsets = [0, 2, 0], sizes = [18, 16, 4], strides = [1, 1, 1]} : vector<18x18x4xbf16> to vector<18x16x4xbf16>
    %30 = vector.extract_strided_slice %27 {offsets = [0, 0, 0], sizes = [16, 16, 4], strides = [1, 1, 1]} : vector<18x16x4xbf16> to vector<16x16x4xbf16>
    %31 = vector.shape_cast %30 : vector<16x16x4xbf16> to vector<256x4xbf16>
    %c0_33 = arith.constant 0 : index
    %c0_34 = arith.constant 0 : index
    %c0_35 = arith.constant 0 : index
    %c0_36 = arith.constant 0 : index
    %32 = vector.load %arg2[%c0_33, %c0_34, %c0_35, %c0_36] : memref<3x3x4x4xbf16, #tpu.memory_space<vmem>>, vector<1x1x4x4xbf16>
    %33 = vector.shape_cast %32 : vector<1x1x4x4xbf16> to vector<4x4xbf16>
    %cst_37 = arith.constant dense<0.000000e+00> : vector<256x4xf32>
    %34 = tpu.matmul %31, %33, %cst_37 {dimension_numbers = #tpu.dot_dimension_numbers<[1], [0], [0], [1], [0, 0, 1, 1], [], []>} : vector<256x4xbf16>, vector<4x4xbf16>, vector<256x4xf32> -> vector<256x4xf32>
    %35 = vector.extract_strided_slice %28 {offsets = [0, 0, 0], sizes = [16, 16, 4], strides = [1, 1, 1]} : vector<18x16x4xbf16> to vector<16x16x4xbf16>
    %36 = vector.shape_cast %35 : vector<16x16x4xbf16> to vector<256x4xbf16>
    %c0_38 = arith.constant 0 : index
    %c1_39 = arith.constant 1 : index
    %c0_40 = arith.constant 0 : index
    %c0_41 = arith.constant 0 : index
    %37 = vector.load %arg2[%c0_38, %c1_39, %c0_40, %c0_41] : memref<3x3x4x4xbf16, #tpu.memory_space<vmem>>, vector<1x1x4x4xbf16>
    %38 = vector.shape_cast %37 : vector<1x1x4x4xbf16> to vector<4x4xbf16>
    %cst_42 = arith.constant dense<0.000000e+00> : vector<256x4xf32>
    %39 = tpu.matmul %36, %38, %cst_42 {dimension_numbers = #tpu.dot_dimension_numbers<[1], [0], [0], [1], [0, 0, 1, 1], [], []>} : vector<256x4xbf16>, vector<4x4xbf16>, vector<256x4xf32> -> vector<256x4xf32>
    %40 = arith.addf %34, %39 : vector<256x4xf32>
    %41 = vector.extract_strided_slice %29 {offsets = [0, 0, 0], sizes = [16, 16, 4], strides = [1, 1, 1]} : vector<18x16x4xbf16> to vector<16x16x4xbf16>
    %42 = vector.shape_cast %41 : vector<16x16x4xbf16> to vector<256x4xbf16>
    %c0_43 = arith.constant 0 : index
    %c2 = arith.constant 2 : index
    %c0_44 = arith.constant 0 : index
    %c0_45 = arith.constant 0 : index
    %43 = vector.load %arg2[%c0_43, %c2, %c0_44, %c0_45] : memref<3x3x4x4xbf16, #tpu.memory_space<vmem>>, vector<1x1x4x4xbf16>
    %44 = vector.shape_cast %43 : vector<1x1x4x4xbf16> to vector<4x4xbf16>
    %cst_46 = arith.constant dense<0.000000e+00> : vector<256x4xf32>
    %45 = tpu.matmul %42, %44, %cst_46 {dimension_numbers = #tpu.dot_dimension_numbers<[1], [0], [0], [1], [0, 0, 1, 1], [], []>} : vector<256x4xbf16>, vector<4x4xbf16>, vector<256x4xf32> -> vector<256x4xf32>
    %46 = arith.addf %40, %45 : vector<256x4xf32>
    %47 = vector.extract_strided_slice %27 {offsets = [1, 0, 0], sizes = [16, 16, 4], strides = [1, 1, 1]} : vector<18x16x4xbf16> to vector<16x16x4xbf16>
    %48 = vector.shape_cast %47 : vector<16x16x4xbf16> to vector<256x4xbf16>
    %c1_47 = arith.constant 1 : index
    %c0_48 = arith.constant 0 : index
    %c0_49 = arith.constant 0 : index
    %c0_50 = arith.constant 0 : index
    %49 = vector.load %arg2[%c1_47, %c0_48, %c0_49, %c0_50] : memref<3x3x4x4xbf16, #tpu.memory_space<vmem>>, vector<1x1x4x4xbf16>
    %50 = vector.shape_cast %49 : vector<1x1x4x4xbf16> to vector<4x4xbf16>
    %cst_51 = arith.constant dense<0.000000e+00> : vector<256x4xf32>
    %51 = tpu.matmul %48, %50, %cst_51 {dimension_numbers = #tpu.dot_dimension_numbers<[1], [0], [0], [1], [0, 0, 1, 1], [], []>} : vector<256x4xbf16>, vector<4x4xbf16>, vector<256x4xf32> -> vector<256x4xf32>
    %52 = arith.addf %46, %51 : vector<256x4xf32>
    %53 = vector.extract_strided_slice %28 {offsets = [1, 0, 0], sizes = [16, 16, 4], strides = [1, 1, 1]} : vector<18x16x4xbf16> to vector<16x16x4xbf16>
    %54 = vector.shape_cast %53 : vector<16x16x4xbf16> to vector<256x4xbf16>
    %c1_52 = arith.constant 1 : index
    %c1_53 = arith.constant 1 : index
    %c0_54 = arith.constant 0 : index
    %c0_55 = arith.constant 0 : index
    %55 = vector.load %arg2[%c1_52, %c1_53, %c0_54, %c0_55] : memref<3x3x4x4xbf16, #tpu.memory_space<vmem>>, vector<1x1x4x4xbf16>
    %56 = vector.shape_cast %55 : vector<1x1x4x4xbf16> to vector<4x4xbf16>
    %cst_56 = arith.constant dense<0.000000e+00> : vector<256x4xf32>
    %57 = tpu.matmul %54, %56, %cst_56 {dimension_numbers = #tpu.dot_dimension_numbers<[1], [0], [0], [1], [0, 0, 1, 1], [], []>} : vector<256x4xbf16>, vector<4x4xbf16>, vector<256x4xf32> -> vector<256x4xf32>
    %58 = arith.addf %52, %57 : vector<256x4xf32>
    %59 = vector.extract_strided_slice %29 {offsets = [1, 0, 0], sizes = [16, 16, 4], strides = [1, 1, 1]} : vector<18x16x4xbf16> to vector<16x16x4xbf16>
    %60 = vector.shape_cast %59 : vector<16x16x4xbf16> to vector<256x4xbf16>
    %c1_57 = arith.constant 1 : index
    %c2_58 = arith.constant 2 : index
    %c0_59 = arith.constant 0 : index
    %c0_60 = arith.constant 0 : index
    %61 = vector.load %arg2[%c1_57, %c2_58, %c0_59, %c0_60] : memref<3x3x4x4xbf16, #tpu.memory_space<vmem>>, vector<1x1x4x4xbf16>
    %62 = vector.shape_cast %61 : vector<1x1x4x4xbf16> to vector<4x4xbf16>
    %cst_61 = arith.constant dense<0.000000e+00> : vector<256x4xf32>
    %63 = tpu.matmul %60, %62, %cst_61 {dimension_numbers = #tpu.dot_dimension_numbers<[1], [0], [0], [1], [0, 0, 1, 1], [], []>} : vector<256x4xbf16>, vector<4x4xbf16>, vector<256x4xf32> -> vector<256x4xf32>
    %64 = arith.addf %58, %63 : vector<256x4xf32>
    %65 = vector.extract_strided_slice %27 {offsets = [2, 0, 0], sizes = [16, 16, 4], strides = [1, 1, 1]} : vector<18x16x4xbf16> to vector<16x16x4xbf16>
    %66 = vector.shape_cast %65 : vector<16x16x4xbf16> to vector<256x4xbf16>
    %c2_62 = arith.constant 2 : index
    %c0_63 = arith.constant 0 : index
    %c0_64 = arith.constant 0 : index
    %c0_65 = arith.constant 0 : index
    %67 = vector.load %arg2[%c2_62, %c0_63, %c0_64, %c0_65] : memref<3x3x4x4xbf16, #tpu.memory_space<vmem>>, vector<1x1x4x4xbf16>
    %68 = vector.shape_cast %67 : vector<1x1x4x4xbf16> to vector<4x4xbf16>
    %cst_66 = arith.constant dense<0.000000e+00> : vector<256x4xf32>
    %69 = tpu.matmul %66, %68, %cst_66 {dimension_numbers = #tpu.dot_dimension_numbers<[1], [0], [0], [1], [0, 0, 1, 1], [], []>} : vector<256x4xbf16>, vector<4x4xbf16>, vector<256x4xf32> -> vector<256x4xf32>
    %70 = arith.addf %64, %69 : vector<256x4xf32>
    %71 = vector.extract_strided_slice %28 {offsets = [2, 0, 0], sizes = [16, 16, 4], strides = [1, 1, 1]} : vector<18x16x4xbf16> to vector<16x16x4xbf16>
    %72 = vector.shape_cast %71 : vector<16x16x4xbf16> to vector<256x4xbf16>
    %c2_67 = arith.constant 2 : index
    %c1_68 = arith.constant 1 : index
    %c0_69 = arith.constant 0 : index
    %c0_70 = arith.constant 0 : index
    %73 = vector.load %arg2[%c2_67, %c1_68, %c0_69, %c0_70] : memref<3x3x4x4xbf16, #tpu.memory_space<vmem>>, vector<1x1x4x4xbf16>
    %74 = vector.shape_cast %73 : vector<1x1x4x4xbf16> to vector<4x4xbf16>
    %cst_71 = arith.constant dense<0.000000e+00> : vector<256x4xf32>
    %75 = tpu.matmul %72, %74, %cst_71 {dimension_numbers = #tpu.dot_dimension_numbers<[1], [0], [0], [1], [0, 0, 1, 1], [], []>} : vector<256x4xbf16>, vector<4x4xbf16>, vector<256x4xf32> -> vector<256x4xf32>
    %76 = arith.addf %70, %75 : vector<256x4xf32>
    %77 = vector.extract_strided_slice %29 {offsets = [2, 0, 0], sizes = [16, 16, 4], strides = [1, 1, 1]} : vector<18x16x4xbf16> to vector<16x16x4xbf16>
    %78 = vector.shape_cast %77 : vector<16x16x4xbf16> to vector<256x4xbf16>
    %c2_72 = arith.constant 2 : index
    %c2_73 = arith.constant 2 : index
    %c0_74 = arith.constant 0 : index
    %c0_75 = arith.constant 0 : index
    %79 = vector.load %arg2[%c2_72, %c2_73, %c0_74, %c0_75] : memref<3x3x4x4xbf16, #tpu.memory_space<vmem>>, vector<1x1x4x4xbf16>
    %80 = vector.shape_cast %79 : vector<1x1x4x4xbf16> to vector<4x4xbf16>
    %cst_76 = arith.constant dense<0.000000e+00> : vector<256x4xf32>
    %81 = tpu.matmul %78, %80, %cst_76 {dimension_numbers = #tpu.dot_dimension_numbers<[1], [0], [0], [1], [0, 0, 1, 1], [], []>} : vector<256x4xbf16>, vector<4x4xbf16>, vector<256x4xf32> -> vector<256x4xf32>
    %82 = arith.addf %76, %81 : vector<256x4xf32>
    %c0_77 = arith.constant 0 : index
    %c0_78 = arith.constant 0 : index
    %83 = vector.load %arg6[%c0_77, %c0_78] : memref<1x4xf32, #tpu.memory_space<vmem>>, vector<1x4xf32>
    %84 = vector.shape_cast %83 : vector<1x4xf32> to vector<4xf32>
    %85 = vector.shape_cast %84 : vector<4xf32> to vector<1x4xf32>
    %86 = vector.broadcast %85 : vector<1x4xf32> to vector<256x4xf32>
    %87 = arith.mulf %82, %86 : vector<256x4xf32>
    %c0_79 = arith.constant 0 : index
    %c0_80 = arith.constant 0 : index
    %88 = vector.load %arg7[%c0_79, %c0_80] : memref<1x4xf32, #tpu.memory_space<vmem>>, vector<1x4xf32>
    %89 = vector.shape_cast %88 : vector<1x4xf32> to vector<4xf32>
    %90 = vector.shape_cast %89 : vector<4xf32> to vector<1x4xf32>
    %91 = vector.broadcast %90 : vector<1x4xf32> to vector<256x4xf32>
    %92 = arith.addf %87, %91 : vector<256x4xf32>
    %cst_81 = arith.constant 0.000000e+00 : f32
    %93 = vector.broadcast %cst_81 : f32 to vector<256x4xf32>
    %94 = arith.maximumf %92, %93 : vector<256x4xf32>
    %95 = arith.truncf %94 : vector<256x4xf32> to vector<256x4xbf16>
    %96 = vector.shape_cast %95 : vector<256x4xbf16> to vector<16x16x4xbf16>
    %c1_82 = arith.constant 1 : index
    %c1_83 = arith.constant 1 : index
    %c0_84 = arith.constant 0 : index
    %97 = vector.load %arg10[%c1_82, %c1_83, %c0_84] : memref<18x18x4xbf16, #tpu.memory_space<vmem>>, vector<16x16x4xbf16>
    tpu.vector_store %arg10[%c1_82, %c1_83, %c0_84], %96 {strides = array<i32>} : memref<18x18x4xbf16, #tpu.memory_space<vmem>>, vector<16x16x4xbf16>,
    %cst_85 = arith.constant 0.000000e+00 : bf16
    %98 = vector.broadcast %cst_85 : bf16 to vector<1x18x4xbf16>
    %c0_86 = arith.constant 0 : index
    %c0_87 = arith.constant 0 : index
    %c0_88 = arith.constant 0 : index
    %99 = vector.load %arg10[%c0_86, %c0_87, %c0_88] : memref<18x18x4xbf16, #tpu.memory_space<vmem>>, vector<1x18x4xbf16>
    tpu.vector_store %arg10[%c0_86, %c0_87, %c0_88], %98 {strides = array<i32>} : memref<18x18x4xbf16, #tpu.memory_space<vmem>>, vector<1x18x4xbf16>,
    %cst_89 = arith.constant 0.000000e+00 : bf16
    %100 = vector.broadcast %cst_89 : bf16 to vector<1x18x4xbf16>
    %c17_90 = arith.constant 17 : index
    %c0_91 = arith.constant 0 : index
    %c0_92 = arith.constant 0 : index
    %101 = vector.load %arg10[%c17_90, %c0_91, %c0_92] : memref<18x18x4xbf16, #tpu.memory_space<vmem>>, vector<1x18x4xbf16>
    tpu.vector_store %arg10[%c17_90, %c0_91, %c0_92], %100 {strides = array<i32>} : memref<18x18x4xbf16, #tpu.memory_space<vmem>>, vector<1x18x4xbf16>,
    %c0_93 = arith.constant 0 : index
    %c0_94 = arith.constant 0 : index
    %c0_95 = arith.constant 0 : index
    %102 = vector.load %arg10[%c0_93, %c0_94, %c0_95] : memref<18x18x4xbf16, #tpu.memory_space<vmem>>, vector<18x18x4xbf16>
    %103 = vector.extract_strided_slice %102 {offsets = [0, 0, 0], sizes = [18, 16, 4], strides = [1, 1, 1]} : vector<18x18x4xbf16> to vector<18x16x4xbf16>
    %104 = vector.extract_strided_slice %102 {offsets = [0, 1, 0], sizes = [18, 16, 4], strides = [1, 1, 1]} : vector<18x18x4xbf16> to vector<18x16x4xbf16>
    %105 = vector.extract_strided_slice %102 {offsets = [0, 2, 0], sizes = [18, 16, 4], strides = [1, 1, 1]} : vector<18x18x4xbf16> to vector<18x16x4xbf16>
    %106 = vector.extract_strided_slice %103 {offsets = [0, 0, 0], sizes = [16, 16, 4], strides = [1, 1, 1]} : vector<18x16x4xbf16> to vector<16x16x4xbf16>
    %107 = vector.shape_cast %106 : vector<16x16x4xbf16> to vector<256x4xbf16>
    %c0_96 = arith.constant 0 : index
    %c0_97 = arith.constant 0 : index
    %c0_98 = arith.constant 0 : index
    %c0_99 = arith.constant 0 : index
    %108 = vector.load %arg3[%c0_96, %c0_97, %c0_98, %c0_99] : memref<3x3x4x4xbf16, #tpu.memory_space<vmem>>, vector<1x1x4x4xbf16>
    %109 = vector.shape_cast %108 : vector<1x1x4x4xbf16> to vector<4x4xbf16>
    %cst_100 = arith.constant dense<0.000000e+00> : vector<256x4xf32>
    %110 = tpu.matmul %107, %109, %cst_100 {dimension_numbers = #tpu.dot_dimension_numbers<[1], [0], [0], [1], [0, 0, 1, 1], [], []>} : vector<256x4xbf16>, vector<4x4xbf16>, vector<256x4xf32> -> vector<256x4xf32>
    %111 = vector.extract_strided_slice %104 {offsets = [0, 0, 0], sizes = [16, 16, 4], strides = [1, 1, 1]} : vector<18x16x4xbf16> to vector<16x16x4xbf16>
    %112 = vector.shape_cast %111 : vector<16x16x4xbf16> to vector<256x4xbf16>
    %c0_101 = arith.constant 0 : index
    %c1_102 = arith.constant 1 : index
    %c0_103 = arith.constant 0 : index
    %c0_104 = arith.constant 0 : index
    %113 = vector.load %arg3[%c0_101, %c1_102, %c0_103, %c0_104] : memref<3x3x4x4xbf16, #tpu.memory_space<vmem>>, vector<1x1x4x4xbf16>
    %114 = vector.shape_cast %113 : vector<1x1x4x4xbf16> to vector<4x4xbf16>
    %cst_105 = arith.constant dense<0.000000e+00> : vector<256x4xf32>
    %115 = tpu.matmul %112, %114, %cst_105 {dimension_numbers = #tpu.dot_dimension_numbers<[1], [0], [0], [1], [0, 0, 1, 1], [], []>} : vector<256x4xbf16>, vector<4x4xbf16>, vector<256x4xf32> -> vector<256x4xf32>
    %116 = arith.addf %110, %115 : vector<256x4xf32>
    %117 = vector.extract_strided_slice %105 {offsets = [0, 0, 0], sizes = [16, 16, 4], strides = [1, 1, 1]} : vector<18x16x4xbf16> to vector<16x16x4xbf16>
    %118 = vector.shape_cast %117 : vector<16x16x4xbf16> to vector<256x4xbf16>
    %c0_106 = arith.constant 0 : index
    %c2_107 = arith.constant 2 : index
    %c0_108 = arith.constant 0 : index
    %c0_109 = arith.constant 0 : index
    %119 = vector.load %arg3[%c0_106, %c2_107, %c0_108, %c0_109] : memref<3x3x4x4xbf16, #tpu.memory_space<vmem>>, vector<1x1x4x4xbf16>
    %120 = vector.shape_cast %119 : vector<1x1x4x4xbf16> to vector<4x4xbf16>
    %cst_110 = arith.constant dense<0.000000e+00> : vector<256x4xf32>
    %121 = tpu.matmul %118, %120, %cst_110 {dimension_numbers = #tpu.dot_dimension_numbers<[1], [0], [0], [1], [0, 0, 1, 1], [], []>} : vector<256x4xbf16>, vector<4x4xbf16>, vector<256x4xf32> -> vector<256x4xf32>
    %122 = arith.addf %116, %121 : vector<256x4xf32>
    %123 = vector.extract_strided_slice %103 {offsets = [1, 0, 0], sizes = [16, 16, 4], strides = [1, 1, 1]} : vector<18x16x4xbf16> to vector<16x16x4xbf16>
    %124 = vector.shape_cast %123 : vector<16x16x4xbf16> to vector<256x4xbf16>
    %c1_111 = arith.constant 1 : index
    %c0_112 = arith.constant 0 : index
    %c0_113 = arith.constant 0 : index
    %c0_114 = arith.constant 0 : index
    %125 = vector.load %arg3[%c1_111, %c0_112, %c0_113, %c0_114] : memref<3x3x4x4xbf16, #tpu.memory_space<vmem>>, vector<1x1x4x4xbf16>
    %126 = vector.shape_cast %125 : vector<1x1x4x4xbf16> to vector<4x4xbf16>
    %cst_115 = arith.constant dense<0.000000e+00> : vector<256x4xf32>
    %127 = tpu.matmul %124, %126, %cst_115 {dimension_numbers = #tpu.dot_dimension_numbers<[1], [0], [0], [1], [0, 0, 1, 1], [], []>} : vector<256x4xbf16>, vector<4x4xbf16>, vector<256x4xf32> -> vector<256x4xf32>
    %128 = arith.addf %122, %127 : vector<256x4xf32>
    %129 = vector.extract_strided_slice %104 {offsets = [1, 0, 0], sizes = [16, 16, 4], strides = [1, 1, 1]} : vector<18x16x4xbf16> to vector<16x16x4xbf16>
    %130 = vector.shape_cast %129 : vector<16x16x4xbf16> to vector<256x4xbf16>
    %c1_116 = arith.constant 1 : index
    %c1_117 = arith.constant 1 : index
    %c0_118 = arith.constant 0 : index
    %c0_119 = arith.constant 0 : index
    %131 = vector.load %arg3[%c1_116, %c1_117, %c0_118, %c0_119] : memref<3x3x4x4xbf16, #tpu.memory_space<vmem>>, vector<1x1x4x4xbf16>
    %132 = vector.shape_cast %131 : vector<1x1x4x4xbf16> to vector<4x4xbf16>
    %cst_120 = arith.constant dense<0.000000e+00> : vector<256x4xf32>
    %133 = tpu.matmul %130, %132, %cst_120 {dimension_numbers = #tpu.dot_dimension_numbers<[1], [0], [0], [1], [0, 0, 1, 1], [], []>} : vector<256x4xbf16>, vector<4x4xbf16>, vector<256x4xf32> -> vector<256x4xf32>
    %134 = arith.addf %128, %133 : vector<256x4xf32>
    %135 = vector.extract_strided_slice %105 {offsets = [1, 0, 0], sizes = [16, 16, 4], strides = [1, 1, 1]} : vector<18x16x4xbf16> to vector<16x16x4xbf16>
    %136 = vector.shape_cast %135 : vector<16x16x4xbf16> to vector<256x4xbf16>
    %c1_121 = arith.constant 1 : index
    %c2_122 = arith.constant 2 : index
    %c0_123 = arith.constant 0 : index
    %c0_124 = arith.constant 0 : index
    %137 = vector.load %arg3[%c1_121, %c2_122, %c0_123, %c0_124] : memref<3x3x4x4xbf16, #tpu.memory_space<vmem>>, vector<1x1x4x4xbf16>
    %138 = vector.shape_cast %137 : vector<1x1x4x4xbf16> to vector<4x4xbf16>
    %cst_125 = arith.constant dense<0.000000e+00> : vector<256x4xf32>
    %139 = tpu.matmul %136, %138, %cst_125 {dimension_numbers = #tpu.dot_dimension_numbers<[1], [0], [0], [1], [0, 0, 1, 1], [], []>} : vector<256x4xbf16>, vector<4x4xbf16>, vector<256x4xf32> -> vector<256x4xf32>
    %140 = arith.addf %134, %139 : vector<256x4xf32>
    %141 = vector.extract_strided_slice %103 {offsets = [2, 0, 0], sizes = [16, 16, 4], strides = [1, 1, 1]} : vector<18x16x4xbf16> to vector<16x16x4xbf16>
    %142 = vector.shape_cast %141 : vector<16x16x4xbf16> to vector<256x4xbf16>
    %c2_126 = arith.constant 2 : index
    %c0_127 = arith.constant 0 : index
    %c0_128 = arith.constant 0 : index
    %c0_129 = arith.constant 0 : index
    %143 = vector.load %arg3[%c2_126, %c0_127, %c0_128, %c0_129] : memref<3x3x4x4xbf16, #tpu.memory_space<vmem>>, vector<1x1x4x4xbf16>
    %144 = vector.shape_cast %143 : vector<1x1x4x4xbf16> to vector<4x4xbf16>
    %cst_130 = arith.constant dense<0.000000e+00> : vector<256x4xf32>
    %145 = tpu.matmul %142, %144, %cst_130 {dimension_numbers = #tpu.dot_dimension_numbers<[1], [0], [0], [1], [0, 0, 1, 1], [], []>} : vector<256x4xbf16>, vector<4x4xbf16>, vector<256x4xf32> -> vector<256x4xf32>
    %146 = arith.addf %140, %145 : vector<256x4xf32>
    %147 = vector.extract_strided_slice %104 {offsets = [2, 0, 0], sizes = [16, 16, 4], strides = [1, 1, 1]} : vector<18x16x4xbf16> to vector<16x16x4xbf16>
    %148 = vector.shape_cast %147 : vector<16x16x4xbf16> to vector<256x4xbf16>
    %c2_131 = arith.constant 2 : index
    %c1_132 = arith.constant 1 : index
    %c0_133 = arith.constant 0 : index
    %c0_134 = arith.constant 0 : index
    %149 = vector.load %arg3[%c2_131, %c1_132, %c0_133, %c0_134] : memref<3x3x4x4xbf16, #tpu.memory_space<vmem>>, vector<1x1x4x4xbf16>
    %150 = vector.shape_cast %149 : vector<1x1x4x4xbf16> to vector<4x4xbf16>
    %cst_135 = arith.constant dense<0.000000e+00> : vector<256x4xf32>
    %151 = tpu.matmul %148, %150, %cst_135 {dimension_numbers = #tpu.dot_dimension_numbers<[1], [0], [0], [1], [0, 0, 1, 1], [], []>} : vector<256x4xbf16>, vector<4x4xbf16>, vector<256x4xf32> -> vector<256x4xf32>
    %152 = arith.addf %146, %151 : vector<256x4xf32>
    %153 = vector.extract_strided_slice %105 {offsets = [2, 0, 0], sizes = [16, 16, 4], strides = [1, 1, 1]} : vector<18x16x4xbf16> to vector<16x16x4xbf16>
    %154 = vector.shape_cast %153 : vector<16x16x4xbf16> to vector<256x4xbf16>
    %c2_136 = arith.constant 2 : index
    %c2_137 = arith.constant 2 : index
    %c0_138 = arith.constant 0 : index
    %c0_139 = arith.constant 0 : index
    %155 = vector.load %arg3[%c2_136, %c2_137, %c0_138, %c0_139] : memref<3x3x4x4xbf16, #tpu.memory_space<vmem>>, vector<1x1x4x4xbf16>
    %156 = vector.shape_cast %155 : vector<1x1x4x4xbf16> to vector<4x4xbf16>
    %cst_140 = arith.constant dense<0.000000e+00> : vector<256x4xf32>
    %157 = tpu.matmul %154, %156, %cst_140 {dimension_numbers = #tpu.dot_dimension_numbers<[1], [0], [0], [1], [0, 0, 1, 1], [], []>} : vector<256x4xbf16>, vector<4x4xbf16>, vector<256x4xf32> -> vector<256x4xf32>
    %158 = arith.addf %152, %157 : vector<256x4xf32>
    %159 = vector.shape_cast %158 : vector<256x4xf32> to vector<16x16x4xf32>
    %c0_141 = arith.constant 0 : index
    %c0_142 = arith.constant 0 : index
    %c0_143 = arith.constant 0 : index
    %c0_144 = arith.constant 0 : index
    %160 = vector.load %arg1[%c0_141, %c0_142, %c0_143, %c0_144] : memref<1x16x16x4xf32, #tpu.memory_space<vmem>>, vector<1x16x16x4xf32>
    %161 = vector.shape_cast %160 : vector<1x16x16x4xf32> to vector<16x16x4xf32>
    %162 = arith.addf %159, %161 : vector<16x16x4xf32>
    %163 = vector.shape_cast %162 : vector<16x16x4xf32> to vector<1x16x16x4xf32>
    %c0_145 = arith.constant 0 : index
    %c0_146 = arith.constant 0 : index
    %c0_147 = arith.constant 0 : index
    %c0_148 = arith.constant 0 : index
    %164 = vector.load %arg8[%c0_145, %c0_146, %c0_147, %c0_148] : memref<1x16x16x4xf32, #tpu.memory_space<vmem>>, vector<1x16x16x4xf32>
    tpu.vector_store %arg8[%c0_145, %c0_146, %c0_147, %c0_148], %163 {strides = array<i32>} : memref<1x16x16x4xf32, #tpu.memory_space<vmem>>, vector<1x16x16x4xf32>,
    return
  }
  func.func @transform_0(%arg0: i32) -> (i32, i32, i32, i32) {
    %c0_i32 = arith.constant 0 : i32
    %c0_i32_0 = arith.constant 0 : i32
    %c0_i32_1 = arith.constant 0 : i32
    %c0_i32_2 = arith.constant 0 : i32
    return %arg0, %c0_i32, %c0_i32_0, %c0_i32_1 : i32, i32, i32, i32
  }
  func.func @transform_1(%arg0: i32) -> (i32, i32, i32, i32) {
    %c0_i32 = arith.constant 0 : i32
    %c0_i32_0 = arith.constant 0 : i32
    %c0_i32_1 = arith.constant 0 : i32
    %c0_i32_2 = arith.constant 0 : i32
    %c0_i32_3 = arith.constant 0 : i32
    return %c0_i32, %c0_i32_0, %c0_i32_1, %c0_i32_2 : i32, i32, i32, i32
  }
  func.func @transform_2(%arg0: i32) -> (i32, i32, i32, i32) {
    %c0_i32 = arith.constant 0 : i32
    %c0_i32_0 = arith.constant 0 : i32
    %c0_i32_1 = arith.constant 0 : i32
    %c0_i32_2 = arith.constant 0 : i32
    %c0_i32_3 = arith.constant 0 : i32
    return %c0_i32, %c0_i32_0, %c0_i32_1, %c0_i32_2 : i32, i32, i32, i32
  }
  func.func @transform_3(%arg0: i32) -> (i32, i32) {
    %c0_i32 = arith.constant 0 : i32
    %c0_i32_0 = arith.constant 0 : i32
    %c0_i32_1 = arith.constant 0 : i32
    return %c0_i32, %c0_i32_0 : i32, i32
  }
  func.func @transform_4(%arg0: i32) -> (i32, i32) {
    %c0_i32 = arith.constant 0 : i32
    %c0_i32_0 = arith.constant 0 : i32
    %c0_i32_1 = arith.constant 0 : i32
    return %c0_i32, %c0_i32_0 : i32, i32
  }
  func.func @transform_5(%arg0: i32) -> (i32, i32) {
    %c0_i32 = arith.constant 0 : i32
    %c0_i32_0 = arith.constant 0 : i32
    %c0_i32_1 = arith.constant 0 : i32
    return %c0_i32, %c0_i32_0 : i32, i32
  }
  func.func @transform_6(%arg0: i32) -> (i32, i32) {
    %c0_i32 = arith.constant 0 : i32
    %c0_i32_0 = arith.constant 0 : i32
    %c0_i32_1 = arith.constant 0 : i32
    return %c0_i32, %c0_i32_0 : i32, i32
  }
  func.func @transform_7(%arg0: i32) -> (i32, i32, i32, i32) {
    %c0_i32 = arith.constant 0 : i32
    %c0_i32_0 = arith.constant 0 : i32
    %c0_i32_1 = arith.constant 0 : i32
    %c0_i32_2 = arith.constant 0 : i32
    return %arg0, %c0_i32, %c0_i32_0, %c0_i32_1 : i32, i32, i32, i32
  }
}

</mosaic_0001>

<bundles_post_ra>
// kernel: basic_block_forward_nhwc.1
= control target key start
LH: loop header
LB: loop body
LE: loop exit
PB: predicated region body
PF: predicated region fallthrough
CT: control target
= control target key end

     0   :  { %s9562_s24 = smov 0   ;;  %s12003_s0 = inlined_call_operand.vmem [shape: f32[2,16,16,4], index: 0, kind: input, shape index: {}]   ;;  %s12004_s1 = inlined_call_operand.vmem [shape: bf16[3,3,4,4], index: 1, kind: input, shape index: {}]   ;;  %s12005_s2 = inlined_call_operand.vmem [shape: bf16[3,3,4,4], index: 2, kind: input, shape index: {}]   ;;  %s12006_s3 = inlined_call_operand.vmem [shape: f32[1,4], index: 3, kind: input, shape index: {}]   ;;  %s12007_s4 = inlined_call_operand.vmem [shape: f32[1,4], index: 4, kind: input, shape index: {}]   ;;  %s12008_s5 = inlined_call_operand.vmem [shape: f32[1,4], index: 5, kind: input, shape index: {}]   ;;  %s12009_s6 = inlined_call_operand.vmem [shape: f32[1,4], index: 6, kind: input, shape index: {}]   ;;  %s12010_s7 = inlined_call_operand.vmem [shape: f32[2,16,16,4], index: 7, kind: output, shape index: {}]  }
   0x1 LB: > { %s7404_s25 = sadd.s32 4294967295, %s9519_s24   ;;  %p7408_p0 = scmp.ge.s32.totalorder %s9519_s24, 1  ;;  %s9519_s24 = sphi %s9562_s24, %s17_s24  }
   0x2   : > { %p237_p1 = scmp.lt.s32.totalorder %s9519_s24, 3 }
   0x4   : > { %p238_p2 = pnand %p7408_p0, %p237_p1 }
   0x6   : > { %241 = sbr.rel (%p238_p2) target bundleno = 1757 (0x6dd), region = 48 }
   0xd   : > { %v7447_v0 = vld [vmem:[%s12004_s1 + $0x2] sm:$0x3]  ;;  %vm1726_vm0 = vcmask 1041408   ;;  %vm282_vm1 = vcmask 24576   ;;  %vm283_vm2 = vsmask.f32 256 }
   0xe   : > { %9427 = vmatprep.subr.msk.bf16.mxu0 %vm1726_vm0, %v7447_v0  ;;  %v1728_v1 = vsel %vm1726_vm0, %v7447_v0, 0  ;;  %vm9577_vm3 = vmand %vm282_vm1, %vm283_vm2  ;;  %v12080_v2 = vmov 0  ;;  %v285_v3 = vld [vmem:[#allocation2] sm:$0x1]  ;;  %vm339_vm4 = vsmask.f32 7938 }
   0xf   : > { %v12081_v2 = vsel %vm9577_vm3, 4294967295, %v12080_v2  ;;  %vm503_vm5 = vcmask 27648   ;;  %8304 = vmatpush3.bf16.msra.mxu0 %v1728_v1  ;;  %v286_v4 = vsel %vm9577_vm3, 0, %v285_v3  ;;  %vm9585_vm6 = vmand %vm282_vm1, %vm339_vm4  ;;  %v12083_v5 = vmov 0  ;;  %v341_v6 = vld [vmem:[#allocation2 + $0x8] sm:$0x1] }
  0x10   : > { %12082 = vst [vmem:[#allocation4_spill] sm:$0xff] %v12081_v2  ;;  %v12084_v5 = vsel %vm9585_vm6, 4294967295, %v12083_v5  ;;  %287 = vst [vmem:[#allocation2] sm:$0x1] %v286_v4  ;;  %v342_v7 = vsel %vm9585_vm6, 0, %v341_v6  ;;  %v12011_v8 = vmov 0  }
  0x11   : > { %12085 = vst [vmem:[#allocation5_spill] sm:$0xff] %v12084_v5  ;;  %505 = vst.msk [vmem:[#allocation2 + $0x4] sm:$0xf] %vm503_vm5, %v12011_v8  ;;  %v9602_v9 = vld [vmem:[%s12004_s1] sm:$0x3]  ;;  %p269_p3 = scmp.lt.s32.totalorder %s7404_s25, 1 }
  0x12   : > { %510 = vst.msk [vmem:[#allocation2 + $0xd0] sm:$0xf] %vm503_vm5, %v12011_v8  ;;  %4540 = vst.msk [vmem:[#allocation3 + $0x4] sm:$0xf] %vm503_vm5, %v12011_v8  ;;  %9428 = vmatprep.subr.msk.bf16.mxu0 %vm1726_vm0, %v9602_v9  ;;  %vm1240_vm7 = vsmask.f32 3328 }
  0x13   : > { %4544 = vst.msk [vmem:[#allocation3 + $0xd0] sm:$0xf] %vm503_vm5, %v12011_v8  ;;  %343 = vst [vmem:[#allocation2 + $0x8] sm:$0x1] %v342_v7  ;;  %vm1241_vm8 = vsmask.f32 7440 }
  0x14   : > { %504 = vst.msk [vmem:[#allocation2] sm:$0xf] %vm503_vm5, %v12011_v8  ;;  %v288_v10 = vld [vmem:[#allocation2 + $0xc] sm:$0x1]  ;;  %v344_v11 = vld [vmem:[#allocation2 + $0x14] sm:$0x1]  ;;  %vm9666_vm11 = vmor %vm1240_vm7, %vm1241_vm8 }
  0x15   : > { %507 = vst.msk [vmem:[#allocation2 + $0x8] sm:$0x1] %vm282_vm1, %v12011_v8  ;;  %s12166_s25 = smov (!%p269_p3, %s7404_s25), 1  ;;  %v9619_v12 = vld [vmem:[%s12006_s3] ss:$0 sm:$0xff]  ;;  %v289_v13 = vsel %vm9577_vm3, 0, %v288_v10  ;;  %vm9681_vm12 = vmand %vm503_vm5, %vm339_vm4 }
  0x16   : > { %v345_v14 = vsel %vm9585_vm6, 0, %v344_v11  ;;  %v291_v15 = vld [vmem:[#allocation2 + $0x18] sm:$0x1]  ;;  %290 = vst [vmem:[#allocation2 + $0xc] sm:$0x1] %v289_v13  ;;  %s7931_s9 = sshll.u32 %s12166_s25, 8 }
  0x17   : > { %346 = vst [vmem:[#allocation2 + $0x14] sm:$0x1] %v345_v14  ;;  %v292_v16 = vsel %vm9577_vm3, 0, %v291_v15  ;;  %v347_v17 = vld [vmem:[#allocation2 + $0x20] sm:$0x1]  ;;  %s9637_s12 = scalar_lea.vmem %s12003_s0, %s7931_s9  ;;  %vm1677_vm9 = vcmask 31744   ;;  %s11904_s27 = scalar_lea.vmem %s12010_s7, %s7931_s9 }
  0x18   : > { %v294_v18 = vld [vmem:[#allocation2 + $0x24] sm:$0x1]  ;;  %293 = vst [vmem:[#allocation2 + $0x18] sm:$0x1] %v292_v16  ;;  %v348_v19 = vsel %vm9585_vm6, 0, %v347_v17  ;;  %v513_v28 = vld [vmem:[%s9637_s12 + $0x8] sm:$0xff] }
  0x19   : > { %v295_v20 = vsel %vm9577_vm3, 0, %v294_v18  ;;  %v350_v21 = vld [vmem:[#allocation2 + $0x2c] sm:$0x1]  ;;  %v9642_v22 = vld [vmem:[%s12007_s4] ss:$0 sm:$0xff]  ;;  %v551_v35 = vmul.f32 %v9619_v12, %v513_v28  ;;  %v514_v36 = vld [vmem:[%s9637_s12 + $0x10] sm:$0xff] }
  0x1a   : > { %349 = vst [vmem:[#allocation2 + $0x20] sm:$0x1] %v348_v19  ;;  %296 = vst [vmem:[#allocation2 + $0x24] sm:$0x1] %v295_v20  ;;  %v351_v23 = vsel %vm9585_vm6, 0, %v350_v21  ;;  %v512_v27 = vld [vmem:[%s9637_s12] sm:$0xff]  ;;  %v552_v41 = vmul.f32 %v9619_v12, %v514_v36 }
  0x1b   : > { %v297_v24 = vld [vmem:[#allocation2 + $0x30] sm:$0x1]  ;;  %v353_v25 = vld [vmem:[#allocation2 + $0x38] sm:$0x1]  ;;  %v1186_v26 = vld [vmem:[#allocation2 + $0x4] sm:$0xf]  ;;  %v550_v34 = vmul.f32 %v9619_v12, %v512_v27  ;;  %v589_v50 = vadd.f32 %v9642_v22, %v551_v35 }
  0x1c   : > { %352 = vst [vmem:[#allocation2 + $0x2c] sm:$0x1] %v351_v23  ;;  %v298_v29 = vsel %vm9577_vm3, 0, %v297_v24  ;;  %v354_v30 = vsel %vm9585_vm6, 0, %v353_v25  ;;  %v1185_v31 = vld [vmem:[#allocation2] sm:$0xf]  ;;  %v590_v54 = vadd.f32 %v9642_v22, %v552_v41 }
  0x1d   : > { %v1253_v32 = vshll.u32 %v1186_v26, 16  ;;  %v1257_v33 = vshrl.u32 %v1186_v26, 16  ;;  %v515_v37 = vld [vmem:[%s9637_s12 + $0x18] sm:$0xff]  ;;  %299 = vst [vmem:[#allocation2 + $0x30] sm:$0x1] %v298_v29  ;;  %v1244_v39 = vshrl.u32 %v1185_v31, 16  ;;  %v588_v49 = vadd.f32 %v9642_v22, %v550_v34 }
  0x1e   : > { %355 = vst [vmem:[#allocation2 + $0x38] sm:$0x1] %v354_v30  ;;  %v1187_v38 = vld [vmem:[#allocation2 + $0x8] sm:$0x1]  ;;  %v1247_v40 = vshll.u32 %v1185_v31, 16  ;;  %v553_v42 = vmul.f32 %v9619_v12, %v515_v37  ;;  %v516_v46 = vld [vmem:[%s9637_s12 + $0x20] sm:$0xff] }
  0x1f   : > { %v1255_v43 = vrot.slane %v1253_v32, 5  ;;  %v1259_v44 = vrot.slane %v1257_v33, 4  ;;  %v1263_v45 = vshll.u32 %v1187_v38, 16  ;;  %vm748_vm10 = vsmask.f32 4368  ;;  %v517_v51 = vld [vmem:[%s9637_s12 + $0x28] sm:$0xff] }
  0x20   : > { %v1246_v47 = vrot.slane %v1244_v39, 4  ;;  %v1249_v48 = vrot.slane %v1247_v40, 5  ;;  %v591_v55 = vadd.f32 %v9642_v22, %v553_v42  ;;  %v12086_v56 = vmov 0  ;;  %v518_v18 = vld [vmem:[%s9637_s12 + $0x30] sm:$0xff]  ;;  %v1073_v27 = vld [vmem:[#allocation2 + $0xc] sm:$0xf]  ;;  %vm9688_vm13 = vmor %vm283_vm2, %vm748_vm10 }
  0x21   : > { %v1260_v52 = vor.u32 %v1259_v44, %v1255_v43  ;;  %v1265_v53 = vrot.slane %v1263_v45, 5  ;;  %v12087_v56 = vsel %vm9666_vm11, 4294967295, %v12086_v56  ;;  %v620_v58 = vmax.f32 %v588_v49, 0.0  ;;  %v1077_v31 = vld [vmem:[#allocation2 + $0x14] sm:$0x1]  ;;  %v519_v45 = vld [vmem:[%s9637_s12 + $0x38] sm:$0xff] }
  0x22   : > { %12088 = vst [vmem:[#allocation6_spill] sm:$0xff] %v12087_v56  ;;  %v1250_v57 = vor.u32 %v1249_v48, %v1246_v47  ;;  %v621_v59 = vmax.f32 %v589_v50, 0.0  ;;  %v554_v60 = vmul.f32 %v9619_v12, %v516_v46  ;;  %v622_v62 = vmax.f32 %v590_v54, 0.0  ;;  %v1080_v40 = vld [vmem:[#allocation2 + $0x18] sm:$0xf] }
  0x23   : > { %v1261_v61 = vrot.slane %v1260_v52, 4  ;;  %v623_v63 = vmax.f32 %v591_v55, 0.0  ;;  %v555_v0 = vmul.f32 %v9619_v12, %v517_v51  ;;  %v7933_v3 = vpack.c.bf16 %v620_v58, %v620_v58  ;;  %v1084_v49 = vld [vmem:[#allocation2 + $0x20] sm:$0x1]  ;;  %v300_v55 = vld [vmem:[#allocation2 + $0x3c] sm:$0x1] }
  0x24   : > { %v1251_v1 = vrot.slane %v1250_v57, 4  ;;  %v7934_v4 = vpack.c.bf16 %v621_v59, %v621_v59  ;;  %v592_v6 = vadd.f32 %v9642_v22, %v554_v60  ;;  %v7935_v10 = vpack.c.bf16 %v622_v62, %v622_v62  ;;  %v356_v57 = vld [vmem:[#allocation2 + $0x44] sm:$0x1]  ;;  %v7256_v56 = vld [vmem:[%s9637_s12 + $0x18] sm:$0xff] }
  0x25   : > { %v1266_v7 = vsel %vm9666_vm11, %v1261_v61, %v1265_v53  ;;  %v7936_v11 = vpack.c.bf16 %v623_v63, %v623_v63  ;;  %v593_v13 = vadd.f32 %v9642_v22, %v555_v0  ;;  %v751_v15 = vshrl.u32 %v7933_v3, 16  ;;  %v520_v62 = vld [vmem:[%s9637_s12 + $0x40] sm:$0xff] }
  0x26   : > { %v1256_v14 = vsel %vm9666_vm11, %v1251_v1, %v1255_v43  ;;  %v754_v16 = vshll.u32 %v7933_v3, 16  ;;  %v759_v17 = vshrl.u32 %v7934_v4, 16  ;;  %v762_v20 = vshll.u32 %v7934_v4, 16  ;;  %v1087_v3 = vld [vmem:[#allocation2 + $0x24] sm:$0xf] }
  0x27   : > { %v7448_v19 = vcombine.low %v1256_v14, %v1266_v7  ;;  %v768_v21 = vshrl.u32 %v7935_v10, 16  ;;  %v771_v23 = vshll.u32 %v7935_v10, 16  ;;  %v753_v24 = vrot.slane %v751_v15, 7  ;;  %v303_v14 = vld [vmem:[#allocation2 + $0x48] sm:$0x1] }
  0x28   : > { %v761_v25 = vrot.slane %v759_v17, 7  ;;  %v12089_v26 = vmov 0  ;;  %v776_v28 = vshrl.u32 %v7936_v11, 16  ;;  %v779_v29 = vshll.u32 %v7936_v11, 16  ;;  %v1091_v17 = vld [vmem:[#allocation2 + $0x2c] sm:$0x1] }
  0x29   : > { %v12090_v26 = vsel %vm9681_vm12, 4294967295, %v12089_v26  ;;  %8305 = vmatprep.mubr.msk.bf16.mxu0 %vm1677_vm9, %v7448_v19  ;;  %v12092_v30 = vmov 0  ;;  %v770_v32 = vrot.slane %v768_v21, 7  ;;  %v624_v33 = vmax.f32 %v592_v6, 0.0  ;;  %v521_v6 = vld [vmem:[%s9637_s12 + $0x48] sm:$0xff] }
  0x2a   : > { %12091 = vst [vmem:[#allocation7_spill] sm:$0xff] %v12090_v26  ;;  %v12093_v30 = vsel %vm9688_vm13, 4294967295, %v12092_v30  ;;  %v625_v34 = vmax.f32 %v593_v13, 0.0  ;;  %v556_v35 = vmul.f32 %v9619_v12, %v518_v18  ;;  %v756_v36 = vor.u32 %v754_v16, %v753_v24 }
  0x2b   : > { %12094 = vst [vmem:[#allocation8_spill] sm:$0xff] %v12093_v30  ;;  %v757_v37 = vrot.slane %v753_v24, 4  ;;  %v764_v38 = vor.u32 %v762_v20, %v761_v25  ;;  %v766_v39 = vrot.slane %v761_v25, 4  ;;  %v773_v41 = vor.u32 %v771_v23, %v770_v32 }
  0x2c   : > { %v774_v42 = vrot.slane %v770_v32, 4  ;;  %v778_v43 = vrot.slane %v776_v28, 7  ;;  %v7937_v44 = vpack.c.bf16 %v624_v33, %v624_v33  ;;  %v1074_v47 = vsel %vm9681_vm12, %v756_v36, %v1073_v27 }
  0x2d   : > { %v765_v46 = vsel %vm9688_vm13, %v757_v37, %v764_v38  ;;  %v1078_v48 = vsel %vm9577_vm3, %v766_v39, %v1077_v31  ;;  %v7938_v50 = vpack.c.bf16 %v625_v34, %v625_v34  ;;  %1075 = vst [vmem:[#allocation2 + $0xc] sm:$0xf] %v1074_v47  ;;  %v1081_v53 = vsel %vm9681_vm12, %v773_v41, %v1080_v40 }
  0x2e   : > { %1076 = vst.msk [vmem:[#allocation2 + $0x10] sm:$0xf] %vm503_vm5, %v765_v46  ;;  %1079 = vst [vmem:[#allocation2 + $0x14] sm:$0x1] %v1078_v48  ;;  %v781_v51 = vor.u32 %v779_v29, %v778_v43  ;;  %v783_v52 = vrot.slane %v778_v43, 4  ;;  %v785_v54 = vshrl.u32 %v7937_v44, 16  ;;  %v557_v61 = vmul.f32 %v9619_v12, %v519_v45 }
  0x2f   : > { %1082 = vst [vmem:[#allocation2 + $0x18] sm:$0xf] %v1081_v53  ;;  %v788_v58 = vshll.u32 %v7937_v44, 16  ;;  %v793_v59 = vshrl.u32 %v7938_v50, 16  ;;  %v796_v60 = vshll.u32 %v7938_v50, 16  ;;  %v594_v4 = vadd.f32 %v9642_v22, %v556_v35 }
  0x30   : > { %v782_v63 = vsel %vm9688_vm13, %v774_v42, %v781_v51  ;;  %v1085_v0 = vsel %vm9577_vm3, %v783_v52, %v1084_v49  ;;  %v787_v1 = vrot.slane %v785_v54, 7  ;;  %v595_v10 = vadd.f32 %v9642_v22, %v557_v61 }
  0x31   : > { %1083 = vst.msk [vmem:[#allocation2 + $0x1c] sm:$0xf] %vm503_vm5, %v782_v63  ;;  %1086 = vst [vmem:[#allocation2 + $0x20] sm:$0x1] %v1085_v0  ;;  %v795_v7 = vrot.slane %v793_v59, 7  ;;  %v301_v11 = vsel %vm9577_vm3, 0, %v300_v55  ;;  %v558_v19 = vmul.f32 %v9619_v12, %v520_v62  ;;  %v559_v24 = vmul.f32 %v9619_v12, %v521_v6 }
  0x32   : > { %v357_v13 = vsel %vm9585_vm6, 0, %v356_v57  ;;  %v790_v15 = vor.u32 %v788_v58, %v787_v1  ;;  %v791_v16 = vrot.slane %v787_v1, 4  ;;  %v626_v18 = vmax.f32 %v594_v4, 0.0  ;;  %302 = vst [vmem:[#allocation2 + $0x3c] sm:$0x1] %v301_v11 }
  0x33   : > { %358 = vst [vmem:[#allocation2 + $0x44] sm:$0x1] %v357_v13  ;;  %v798_v20 = vor.u32 %v796_v60, %v795_v7  ;;  %v800_v21 = vrot.slane %v795_v7, 4  ;;  %v627_v23 = vmax.f32 %v595_v10, 0.0  ;;  %v9721_v25 = vsel %vm1726_vm0, %v9602_v9, 0  ;;  %v522_v60 = vld [vmem:[%s9637_s12 + $0x50] sm:$0xff] }
  0x34   : > { %v1088_v27 = vsel %vm9681_vm12, %v790_v15, %v1087_v3  ;;  %v304_v28 = vsel %vm9577_vm3, 0, %v303_v14  ;;  %v1188_v29 = vld [vmem:[#allocation2 + $0xc] sm:$0xf]  ;;  %v9731_v35 = vpack.c.bf16 %v626_v18, %v626_v18  ;;  %v9734_v9 = vadd.f32 %v9642_v22, %v558_v19 }
  0x35   : > { %v1189_v31 = vld [vmem:[#allocation2 + $0x10] sm:$0xf]  ;;  %v1190_v32 = vld [vmem:[#allocation2 + $0x14] sm:$0x1]  ;;  %v799_v33 = vsel %vm9688_vm13, %v791_v16, %v798_v20  ;;  %1089 = vst [vmem:[#allocation2 + $0x24] sm:$0xf] %v1088_v27  ;;  %v1092_v34 = vsel %vm9577_vm3, %v800_v21, %v1091_v17  ;;  %v9737_v43 = vpack.c.bf16 %v627_v23, %v627_v23  ;;  %v9740_v44 = vadd.f32 %v9642_v22, %v559_v24 }
  0x36   : > { %305 = vst [vmem:[#allocation2 + $0x48] sm:$0x1] %v304_v28  ;;  %v1268_v36 = vshrl.u32 %v1188_v29, 16  ;;  %v1271_v37 = vshll.u32 %v1188_v29, 16  ;;  %v1277_v38 = vshll.u32 %v1189_v31, 16  ;;  %v1281_v39 = vshrl.u32 %v1189_v31, 16 }
  0x37   : > { %v1191_v40 = vld [vmem:[#allocation2 + $0x18] sm:$0xf]  ;;  %1090 = vst.msk [vmem:[#allocation2 + $0x28] sm:$0xf] %vm503_vm5, %v799_v33  ;;  %1093 = vst [vmem:[#allocation2 + $0x2c] sm:$0x1] %v1092_v34  ;;  %v560_v16 = vmul.f32 %v9619_v12, %v522_v60 }
  0x38   : > { %v1287_v41 = vshll.u32 %v1190_v32, 16  ;;  %v1292_v42 = vshrl.u32 %v1191_v40, 16  ;;  %v1270_v45 = vrot.slane %v1268_v36, 4  ;;  %v1273_v46 = vrot.slane %v1271_v37, 5  ;;  %v1192_v49 = vld [vmem:[#allocation2 + $0x1c] sm:$0xf] }
  0x39   : > { %v1279_v47 = vrot.slane %v1277_v38, 5  ;;  %v1283_v48 = vrot.slane %v1281_v39, 4  ;;  %v1193_v51 = vld [vmem:[#allocation2 + $0x20] sm:$0x1]  ;;  %v1295_v53 = vshll.u32 %v1191_v40, 16  ;;  %v1301_v54 = vshll.u32 %v1192_v49, 16 }
  0x3a   : > { %v1289_v50 = vrot.slane %v1287_v41, 5  ;;  %v1294_v52 = vrot.slane %v1292_v42, 4  ;;  %v1274_v55 = vor.u32 %v1273_v46, %v1270_v45  ;;  %v1305_v58 = vshrl.u32 %v1192_v49, 16  ;;  %v1094_v37 = vld [vmem:[#allocation2 + $0x30] sm:$0xf]  ;;  %v523_v45 = vld [vmem:[%s9637_s12 + $0x58] sm:$0xff] }
  0x3b   : > { %v1284_v57 = vor.u32 %v1283_v48, %v1279_v47  ;;  %v1311_v59 = vshll.u32 %v1193_v51, 16  ;;  %v1297_v61 = vrot.slane %v1295_v53, 5  ;;  %v1303_v62 = vrot.slane %v1301_v54, 5  ;;  %v359_v42 = vld [vmem:[#allocation2 + $0x50] sm:$0x1] }
  0x3c   : > { %v802_v63 = vshrl.u32 %v9731_v35, 16  ;;  %v805_v0 = vshll.u32 %v9731_v35, 16  ;;  %v1275_v1 = vrot.slane %v1274_v55, 4  ;;  %v1307_v4 = vrot.slane %v1305_v58, 4  ;;  %v1194_v7 = vld [vmem:[#allocation2 + $0x24] sm:$0xf] }
  0x3d   : > { %v1285_v3 = vrot.slane %v1284_v57, 4  ;;  %v1313_v6 = vrot.slane %v1311_v59, 5  ;;  %v1298_v10 = vor.u32 %v1297_v61, %v1294_v52  ;;  %v1316_v14 = vshrl.u32 %v1194_v7, 16  ;;  %v306_v53 = vld [vmem:[#allocation2 + $0x54] sm:$0x1] }
  0x3e   : > { %v1195_v11 = vld [vmem:[#allocation2 + $0x28] sm:$0xf]  ;;  %v1196_v13 = vld [vmem:[#allocation2 + $0x2c] sm:$0x1]  ;;  %v1319_v15 = vshll.u32 %v1194_v7, 16  ;;  %v1280_v17 = vsel %vm9666_vm11, %v1275_v1, %v1279_v47  ;;  %v1308_v19 = vor.u32 %v1307_v4, %v1303_v62  ;;  %v804_v35 = vrot.slane %v802_v63, 7 }
  0x3f   : > { %v1290_v18 = vsel %vm9666_vm11, %v1285_v3, %v1289_v50  ;;  %v1325_v20 = vshll.u32 %v1195_v11, 16  ;;  %v1299_v23 = vrot.slane %v1298_v10, 4  ;;  %v1318_v24 = vrot.slane %v1316_v14, 4  ;;  %v1098_v55 = vld [vmem:[#allocation2 + $0x38] sm:$0x1]  ;;  %v524_v3 = vld [vmem:[%s9637_s12 + $0x60] sm:$0xff] }
  0x40   : > { %v9750_v21 = vcombine.low %v1280_v17, %v1290_v18  ;;  %v1321_v27 = vrot.slane %v1319_v15, 5  ;;  %v1309_v28 = vrot.slane %v1308_v19, 4  ;;  %v1329_v31 = vshrl.u32 %v1195_v11, 16  ;;  %v362_v1 = vld [vmem:[#allocation2 + $0x5c] sm:$0x1]  ;;  %v525_v11 = vld [vmem:[%s9637_s12 + $0x68] sm:$0xff] }
  0x41   : > { %v1327_v29 = vrot.slane %v1325_v20, 5  ;;  %v1335_v32 = vshll.u32 %v1196_v13, 16  ;;  %v1304_v33 = vsel %vm9666_vm11, %v1299_v23, %v1303_v62  ;;  %v810_v36 = vshrl.u32 %v9737_v43, 16  ;;  %v309_v13 = vld [vmem:[#allocation2 + $0x60] sm:$0x1] }
  0x42   : > { %8306 = vmatmul.mubr.msk.bf16.vlgmr.msra.gmra.mrb[0].mxu0 %vm1677_vm9, %v9750_v21  ;;  %v1322_v34 = vor.u32 %v1321_v27, %v1318_v24  ;;  %v1314_v38 = vsel %vm9666_vm11, %v1309_v28, %v1313_v6  ;;  %v1331_v39 = vrot.slane %v1329_v31, 4  ;;  %v813_v41 = vshll.u32 %v9737_v43, 16  ;;  %v7528_v14 = vld [vmem:[%s12004_s1 + $0x4] sm:$0x3]  ;;  %v1101_v28 = vld [vmem:[#allocation2 + $0x3c] sm:$0xf] }
  0x43   : > { %8338 = vmatpush3.bf16.msra.mxu0 %v9721_v25  ;;  %v1337_v40 = vrot.slane %v1335_v32, 5  ;;  %v9762_v46 = vcombine.low %v1304_v33, %v1314_v38  ;;  %v807_v48 = vor.u32 %v805_v0, %v804_v35  ;;  %v808_v49 = vrot.slane %v804_v35, 4  ;;  %v1105_v35 = vld [vmem:[#allocation2 + $0x44] sm:$0x1] }
  0x44   : > { %v1323_v47 = vrot.slane %v1322_v34, 4  ;;  %v1332_v50 = vor.u32 %v1331_v39, %v1327_v29  ;;  %v812_v51 = vrot.slane %v810_v36, 7  ;;  %v628_v52 = vmax.f32 %v9734_v9, 0.0  ;;  %9429 = vmatprep.subr.msk.bf16.mxu0 %vm1726_vm0, %v7528_v14 }
  0x45   : > { %12095 = vst [vmem:[#allocation9_spill] sm:$0xff] %v9762_v46  ;;  %v629_v25 = vmax.f32 %v9740_v44, 0.0  ;;  %8309 = vmatprep.mubr.msk.bf16.mxu0 %vm1677_vm9, %v9762_v46  ;;  %v1095_v54 = vsel %vm9681_vm12, %v807_v48, %v1094_v37  ;;  %v360_v57 = vsel %vm9585_vm6, 0, %v359_v42  ;;  %v561_v58 = vmul.f32 %v9619_v12, %v523_v45  ;;  %v526_v45 = vld [vmem:[%s9637_s12 + $0x70] sm:$0xff] }
  0x46   : > { %v1328_v43 = vsel %vm9666_vm11, %v1323_v47, %v1327_v29  ;;  %v1333_v9 = vrot.slane %v1332_v50, 4  ;;  %v815_v59 = vor.u32 %v813_v41, %v812_v51  ;;  %v817_v44 = vrot.slane %v812_v51, 4  ;;  %1096 = vst [vmem:[#allocation2 + $0x30] sm:$0xf] %v1095_v54  ;;  %361 = vst [vmem:[#allocation2 + $0x50] sm:$0x1] %v360_v57 }
  0x47   : > { %v7941_v60 = vpack.c.bf16 %v628_v52, %v628_v52  ;;  %v7942_v61 = vpack.c.bf16 %v629_v25, %v629_v25  ;;  %v598_v62 = vadd.f32 %v9642_v22, %v560_v16  ;;  %v599_v63 = vadd.f32 %v9642_v22, %v561_v58  ;;  %v527_v47 = vld [vmem:[%s9637_s12 + $0x78] sm:$0xff] }
  0x48   : > { %v307_v0 = vsel %vm9577_vm3, 0, %v306_v53  ;;  %v1338_v4 = vsel %vm9666_vm11, %v1333_v9, %v1337_v40  ;;  %v816_v6 = vsel %vm9688_vm13, %v808_v49, %v815_v59  ;;  %v1099_v7 = vsel %vm9577_vm3, %v817_v44, %v1098_v55 }
  0x49   : > { %v819_v10 = vshrl.u32 %v7941_v60, 16  ;;  %308 = vst [vmem:[#allocation2 + $0x54] sm:$0x1] %v307_v0  ;;  %v9790_v15 = vcombine.low %v1328_v43, %v1338_v4  ;;  %1097 = vst.msk [vmem:[#allocation2 + $0x34] sm:$0xf] %vm503_vm5, %v816_v6  ;;  %v822_v16 = vshll.u32 %v7941_v60, 16  ;;  %v562_v29 = vmul.f32 %v9619_v12, %v524_v3 }
  0x4a   : > { %1100 = vst [vmem:[#allocation2 + $0x38] sm:$0x1] %v1099_v7  ;;  %v827_v17 = vshrl.u32 %v7942_v61, 16  ;;  %v830_v18 = vshll.u32 %v7942_v61, 16  ;;  %v630_v20 = vmax.f32 %v598_v62, 0.0  ;;  %v631_v23 = vmax.f32 %v599_v63, 0.0 }
  0x4b   : > { %12096 = vst [vmem:[#allocation10_spill] sm:$0xff] %v9790_v15  ;;  %v821_v19 = vrot.slane %v819_v10, 7  ;;  %v363_v24 = vsel %vm9585_vm6, 0, %v362_v1  ;;  %8310 = vmatmul.mubr.msk.bf16.gmra.mrb[4].mxu0 %vm1677_vm9, %v9790_v15  ;;  %v563_v31 = vmul.f32 %v9619_v12, %v525_v11  ;;  %v310_v32 = vsel %vm9577_vm3, 0, %v309_v13  ;;  %v365_v63 = vld [vmem:[#allocation2 + $0x68] sm:$0x1] }
  0x4c   : > { %v829_v27 = vrot.slane %v827_v17, 7  ;;  %364 = vst [vmem:[#allocation2 + $0x5c] sm:$0x1] %v363_v24  ;;  %v7943_v36 = vpack.c.bf16 %v630_v20, %v630_v20  ;;  %v7944_v37 = vpack.c.bf16 %v631_v23, %v631_v23  ;;  %311 = vst [vmem:[#allocation2 + $0x60] sm:$0x1] %v310_v32  ;;  %v600_v41 = vadd.f32 %v9642_v22, %v562_v29 }
  0x4d   : > { %v824_v33 = vor.u32 %v822_v16, %v821_v19  ;;  %v825_v34 = vrot.slane %v821_v19, 4  ;;  %v1197_v38 = vld [vmem:[#allocation2 + $0x30] sm:$0xf]  ;;  %v601_v42 = vadd.f32 %v9642_v22, %v563_v31  ;;  %v564_v9 = vmul.f32 %v9619_v12, %v526_v45  ;;  %v1108_v4 = vld [vmem:[#allocation2 + $0x48] sm:$0xf] }
  0x4e   : > { %v832_v39 = vor.u32 %v830_v18, %v829_v27  ;;  %v834_v40 = vrot.slane %v829_v27, 4  ;;  %v1340_v48 = vshrl.u32 %v1197_v38, 16  ;;  %v1343_v49 = vshll.u32 %v1197_v38, 16  ;;  %v1112_v14 = vld [vmem:[#allocation2 + $0x50] sm:$0x1] }
  0x4f   : > { %v1102_v50 = vsel %vm9681_vm12, %v824_v33, %v1101_v28  ;;  %v836_v51 = vshrl.u32 %v7943_v36, 16  ;;  %v839_v53 = vshll.u32 %v7943_v36, 16  ;;  %v844_v43 = vshrl.u32 %v7944_v37, 16 }
  0x50   : > { %v833_v52 = vsel %vm9688_vm13, %v825_v34, %v832_v39  ;;  %1103 = vst [vmem:[#allocation2 + $0x3c] sm:$0xf] %v1102_v50  ;;  %v1106_v25 = vsel %vm9577_vm3, %v834_v40, %v1105_v35  ;;  %v1198_v54 = vld [vmem:[#allocation2 + $0x34] sm:$0xf]  ;;  %v1342_v57 = vrot.slane %v1340_v48, 4  ;;  %v1345_v58 = vrot.slane %v1343_v49, 5 }
  0x51   : > { %v1199_v55 = vld [vmem:[#allocation2 + $0x38] sm:$0x1]  ;;  %1104 = vst.msk [vmem:[#allocation2 + $0x40] sm:$0xf] %vm503_vm5, %v833_v52  ;;  %1107 = vst [vmem:[#allocation2 + $0x44] sm:$0x1] %v1106_v25  ;;  %v565_v59 = vmul.f32 %v9619_v12, %v527_v47  ;;  %v602_v39 = vadd.f32 %v9642_v22, %v564_v9 }
  0x52   : > { %v1349_v44 = vshll.u32 %v1198_v54, 16  ;;  %v1353_v60 = vshrl.u32 %v1198_v54, 16  ;;  %v1359_v61 = vshll.u32 %v1199_v55, 16  ;;  %v838_v62 = vrot.slane %v836_v51, 7  ;;  %v528_v9 = vld [vmem:[%s9637_s12 + $0x80] sm:$0xff] }
  0x53   : > { %v1346_v0 = vor.u32 %v1345_v58, %v1342_v57  ;;  %v846_v1 = vrot.slane %v844_v43, 7  ;;  %v847_v3 = vshll.u32 %v7944_v37, 16  ;;  %v632_v6 = vmax.f32 %v600_v41, 0.0  ;;  %v312_v43 = vld [vmem:[#allocation2 + $0x6c] sm:$0x1] }
  0x54   : > { %v1351_v7 = vrot.slane %v1349_v44, 5  ;;  %v1355_v10 = vrot.slane %v1353_v60, 4  ;;  %v1361_v11 = vrot.slane %v1359_v61, 5  ;;  %v841_v13 = vor.u32 %v839_v53, %v838_v62 }
  0x55   : > { %v1347_v16 = vrot.slane %v1346_v0, 4  ;;  %v842_v17 = vrot.slane %v838_v62, 4  ;;  %v849_v18 = vor.u32 %v847_v3, %v846_v1  ;;  %v851_v19 = vrot.slane %v846_v1, 4 }
  0x56   : > { %v1356_v20 = vor.u32 %v1355_v10, %v1351_v7  ;;  %v1109_v23 = vsel %vm9681_vm12, %v841_v13, %v1108_v4  ;;  %v633_v24 = vmax.f32 %v601_v42, 0.0  ;;  %v7945_v27 = vpack.c.bf16 %v632_v6, %v632_v6 }
  0x57   : > { %v1352_v28 = vsel %vm9666_vm11, %v1347_v16, %v1351_v7  ;;  %v1200_v29 = vld [vmem:[#allocation2 + $0x3c] sm:$0xf]  ;;  %v850_v31 = vsel %vm9688_vm13, %v842_v17, %v849_v18  ;;  %1110 = vst [vmem:[#allocation2 + $0x48] sm:$0xf] %v1109_v23  ;;  %v1113_v32 = vsel %vm9577_vm3, %v851_v19, %v1112_v14  ;;  %v366_v33 = vsel %vm9585_vm6, 0, %v365_v63 }
  0x58   : > { %v1357_v34 = vrot.slane %v1356_v20, 4  ;;  %v1201_v35 = vld [vmem:[#allocation2 + $0x40] sm:$0xf]  ;;  %v1202_v36 = vld [vmem:[#allocation2 + $0x44] sm:$0x1]  ;;  %v1364_v37 = vshrl.u32 %v1200_v29, 16  ;;  %v7946_v38 = vpack.c.bf16 %v633_v24, %v633_v24  ;;  %v603_v61 = vadd.f32 %v9642_v22, %v565_v59 }
  0x59   : > { %1111 = vst.msk [vmem:[#allocation2 + $0x4c] sm:$0xf] %vm503_vm5, %v850_v31  ;;  %1114 = vst [vmem:[#allocation2 + $0x50] sm:$0x1] %v1113_v32  ;;  %v1367_v40 = vshll.u32 %v1200_v29, 16  ;;  %v1373_v41 = vshll.u32 %v1201_v35, 16  ;;  %v566_v14 = vmul.f32 %v9619_v12, %v528_v9 }
  0x5a   : > { %367 = vst [vmem:[#allocation2 + $0x68] sm:$0x1] %v366_v33  ;;  %v1377_v42 = vshrl.u32 %v1201_v35, 16  ;;  %v1383_v45 = vshll.u32 %v1202_v36, 16  ;;  %v1362_v47 = vsel %vm9666_vm11, %v1357_v34, %v1361_v11  ;;  %v1366_v48 = vrot.slane %v1364_v37, 4 }
  0x5b   : > { %v853_v49 = vshrl.u32 %v7945_v27, 16  ;;  %v856_v50 = vshll.u32 %v7945_v27, 16  ;;  %v9829_v51 = vcombine.low %v1352_v28, %v1362_v47  ;;  %v1369_v52 = vrot.slane %v1367_v40, 5  ;;  %v1115_v27 = vld [vmem:[#allocation2 + $0x54] sm:$0xf] }
  0x5c   : > { %v1375_v25 = vrot.slane %v1373_v41, 5  ;;  %v1379_v53 = vrot.slane %v1377_v42, 4  ;;  %v1385_v54 = vrot.slane %v1383_v45, 5  ;;  %v861_v57 = vshrl.u32 %v7946_v38, 16  ;;  %v368_v28 = vld [vmem:[#allocation2 + $0x74] sm:$0x1] }
  0x5d   : > { %12097 = vst [vmem:[#allocation11_spill] sm:$0xff] %v9829_v51  ;;  %v855_v55 = vrot.slane %v853_v49, 7  ;;  %v864_v58 = vshll.u32 %v7946_v38, 16  ;;  %8313 = vmatprep.mubr.msk.bf16.mxu0 %vm1677_vm9, %v9829_v51  ;;  %v1370_v44 = vor.u32 %v1369_v52, %v1366_v48  ;;  %v634_v62 = vmax.f32 %v602_v39, 0.0  ;;  %v1119_v34 = vld [vmem:[#allocation2 + $0x5c] sm:$0x1] }
  0x5e   : > { %v1380_v60 = vor.u32 %v1379_v53, %v1375_v25  ;;  %v1203_v63 = vld [vmem:[#allocation2 + $0x48] sm:$0xf]  ;;  %v863_v3 = vrot.slane %v861_v57, 7  ;;  %v313_v4 = vsel %vm9577_vm3, 0, %v312_v43  ;;  %v635_v42 = vmax.f32 %v603_v61, 0.0  ;;  %v530_v61 = vld [vmem:[%s9637_s12 + $0x90] sm:$0xff] }
  0x5f   : > { %v858_v0 = vor.u32 %v856_v50, %v855_v55  ;;  %v859_v1 = vrot.slane %v855_v55, 4  ;;  %v1371_v6 = vrot.slane %v1370_v44, 4  ;;  %v7947_v13 = vpack.c.bf16 %v634_v62, %v634_v62  ;;  %314 = vst [vmem:[#allocation2 + $0x6c] sm:$0x1] %v313_v4  ;;  %v529_v39 = vld [vmem:[%s9637_s12 + $0x88] sm:$0xff] }
  0x60   : > { %v1381_v7 = vrot.slane %v1380_v60, 4  ;;  %v1204_v10 = vld [vmem:[#allocation2 + $0x4c] sm:$0xf]  ;;  %v1205_v11 = vld [vmem:[#allocation2 + $0x50] sm:$0x1]  ;;  %v1388_v16 = vshrl.u32 %v1203_v63, 16  ;;  %v866_v24 = vor.u32 %v864_v58, %v863_v3  ;;  %v7948_v43 = vpack.c.bf16 %v635_v42, %v635_v42 }
  0x61   : > { %v1391_v17 = vshll.u32 %v1203_v63, 16  ;;  %v1397_v18 = vshll.u32 %v1204_v10, 16  ;;  %v1401_v59 = vshrl.u32 %v1204_v10, 16  ;;  %v1376_v19 = vsel %vm9666_vm11, %v1371_v6, %v1375_v25  ;;  %v315_v47 = vld [vmem:[#allocation2 + $0x78] sm:$0x1] }
  0x62   : > { %v1386_v20 = vsel %vm9666_vm11, %v1381_v7, %v1385_v54  ;;  %v1407_v23 = vshll.u32 %v1205_v11, 16  ;;  %v1390_v31 = vrot.slane %v1388_v16, 4  ;;  %v867_v37 = vsel %vm9688_vm13, %v859_v1, %v866_v24  ;;  %v371_v48 = vld [vmem:[#allocation2 + $0x80] sm:$0x1]  ;;  %v318_v4 = vld [vmem:[#allocation2 + $0x84] sm:$0x1] }
  0x63   : > { %v9842_v29 = vcombine.low %v1376_v19, %v1386_v20  ;;  %v1393_v32 = vrot.slane %v1391_v17, 5  ;;  %v1399_v33 = vrot.slane %v1397_v18, 5  ;;  %v1403_v35 = vrot.slane %v1401_v59, 4  ;;  %1118 = vst.msk [vmem:[#allocation2 + $0x58] sm:$0xf] %vm503_vm5, %v867_v37 }
  0x64   : > { %v1409_v36 = vrot.slane %v1407_v23, 5  ;;  %v868_v38 = vrot.slane %v863_v3, 4  ;;  %v1116_v41 = vsel %vm9681_vm12, %v858_v0, %v1115_v27  ;;  %v870_v45 = vshrl.u32 %v7947_v13, 16  ;;  %v1122_v58 = vld [vmem:[#allocation2 + $0x60] sm:$0xf]  ;;  %v531_v3 = vld [vmem:[%s9637_s12 + $0x98] sm:$0xff] }
  0x65   : > { %12098 = vst [vmem:[#allocation12_spill] sm:$0xff] %v9842_v29  ;;  %8314 = vmatmul.mubr.msk.bf16.gmra.mrb[8].mxu0 %vm1677_vm9, %v9842_v29  ;;  %v1394_v40 = vor.u32 %v1393_v32, %v1390_v31  ;;  %v1404_v49 = vor.u32 %v1403_v35, %v1399_v33  ;;  %1117 = vst [vmem:[#allocation2 + $0x54] sm:$0xf] %v1116_v41  ;;  %v873_v52 = vshll.u32 %v7947_v13, 16  ;;  %v369_v25 = vsel %vm9585_vm6, 0, %v368_v28 }
  0x66   : > { %v1120_v50 = vsel %vm9577_vm3, %v868_v38, %v1119_v34  ;;  %v872_v54 = vrot.slane %v870_v45, 7  ;;  %370 = vst [vmem:[#allocation2 + $0x74] sm:$0x1] %v369_v25  ;;  %v567_v55 = vmul.f32 %v9619_v12, %v529_v39  ;;  %v604_v9 = vadd.f32 %v9642_v22, %v566_v14  ;;  %v1126_v59 = vld [vmem:[#allocation2 + $0x68] sm:$0x1] }
  0x67   : > { %v1395_v53 = vrot.slane %v1394_v40, 4  ;;  %1121 = vst [vmem:[#allocation2 + $0x5c] sm:$0x1] %v1120_v50  ;;  %v1405_v57 = vrot.slane %v1404_v49, 4  ;;  %v316_v44 = vsel %vm9577_vm3, 0, %v315_v47  ;;  %v372_v60 = vsel %vm9585_vm6, 0, %v371_v48 }
  0x68   : > { %v875_v63 = vor.u32 %v873_v52, %v872_v54  ;;  %v876_v0 = vrot.slane %v872_v54, 4  ;;  %v878_v1 = vshrl.u32 %v7948_v43, 16  ;;  %317 = vst [vmem:[#allocation2 + $0x78] sm:$0x1] %v316_v44  ;;  %373 = vst [vmem:[#allocation2 + $0x80] sm:$0x1] %v372_v60  ;;  %v605_v10 = vadd.f32 %v9642_v22, %v567_v55 }
  0x69   : > { %v1400_v62 = vsel %vm9666_vm11, %v1395_v53, %v1399_v33  ;;  %v1410_v6 = vsel %vm9666_vm11, %v1405_v57, %v1409_v36  ;;  %v881_v7 = vshll.u32 %v7948_v43, 16  ;;  %v636_v11 = vmax.f32 %v604_v9, 0.0  ;;  %v1129_v55 = vld [vmem:[#allocation2 + $0x6c] sm:$0xf] }
  0x6a   : > { %v9869_v13 = vcombine.low %v1400_v62, %v1410_v6  ;;  %v880_v14 = vrot.slane %v878_v1, 7  ;;  %v1123_v16 = vsel %vm9681_vm12, %v875_v63, %v1122_v58  ;;  %v568_v17 = vmul.f32 %v9619_v12, %v530_v61  ;;  %v9874_v18 = vld [vmem:[#allocation2 + $0x58] sm:$0xf] }
  0x6b   : > { %1124 = vst [vmem:[#allocation2 + $0x60] sm:$0xf] %v1123_v16  ;;  %v637_v19 = vmax.f32 %v605_v10, 0.0  ;;  %v7949_v20 = vpack.c.bf16 %v636_v11, %v636_v11  ;;  %v569_v23 = vmul.f32 %v9619_v12, %v531_v3  ;;  %v319_v24 = vsel %vm9577_vm3, 0, %v318_v4 }
  0x6c   : > { %12099 = vst [vmem:[#allocation13_spill] sm:$0xff] %v9869_v13  ;;  %8317 = vmatprep.mubr.msk.bf16.mxu0 %vm1677_vm9, %v9869_v13  ;;  %v9881_v27 = vld [vmem:[#allocation2 + $0x54] sm:$0xf]  ;;  %v1421_v28 = vshll.u32 %v9874_v18, 16  ;;  %v1425_v31 = vshrl.u32 %v9874_v18, 16  ;;  %v883_v32 = vor.u32 %v881_v7, %v880_v14  ;;  %v885_v33 = vrot.slane %v880_v14, 4 }
  0x6d   : > { %320 = vst [vmem:[#allocation2 + $0x84] sm:$0x1] %v319_v24  ;;  %v1412_v35 = vshrl.u32 %v9881_v27, 16  ;;  %v1415_v12 = vshll.u32 %v9881_v27, 16  ;;  %v7950_v36 = vpack.c.bf16 %v637_v19, %v637_v19  ;;  %v887_v37 = vshrl.u32 %v7949_v20, 16 }
  0x6e   : > { %v1208_v34 = vld [vmem:[#allocation2 + $0x5c] sm:$0x1]  ;;  %v1423_v38 = vrot.slane %v1421_v28, 5  ;;  %v1427_v39 = vrot.slane %v1425_v31, 4  ;;  %v884_v41 = vsel %vm9688_vm13, %v876_v0, %v883_v32  ;;  %v1127_v47 = vsel %vm9577_vm3, %v885_v33, %v1126_v59  ;;  %v1133_v1 = vld [vmem:[#allocation2 + $0x74] sm:$0x1] }
  0x6f   : > { %v1431_v40 = vshll.u32 %v1208_v34, 16  ;;  %v1414_v42 = vrot.slane %v1412_v35, 4  ;;  %v1417_v45 = vrot.slane %v1415_v12, 5  ;;  %1125 = vst.msk [vmem:[#allocation2 + $0x64] sm:$0xf] %vm503_vm5, %v884_v41  ;;  %v889_v48 = vrot.slane %v887_v37, 7 }
  0x70   : > { %v1428_v49 = vor.u32 %v1427_v39, %v1423_v38  ;;  %1128 = vst [vmem:[#allocation2 + $0x68] sm:$0x1] %v1127_v47  ;;  %v890_v52 = vshll.u32 %v7949_v20, 16  ;;  %v895_v25 = vshrl.u32 %v7950_v36, 16  ;;  %v898_v54 = vshll.u32 %v7950_v36, 16  ;;  %v532_v35 = vld [vmem:[%s9637_s12 + $0xa0] sm:$0xff] }
  0x71   : > { %v1433_v50 = vrot.slane %v1431_v40, 5  ;;  %v1418_v53 = vor.u32 %v1417_v45, %v1414_v42  ;;  %v893_v43 = vrot.slane %v889_v48, 4  ;;  %v606_v57 = vadd.f32 %v9642_v22, %v568_v17  ;;  %v374_v17 = vld [vmem:[#allocation2 + $0x8c] sm:$0x1]  ;;  %v321_v47 = vld [vmem:[#allocation2 + $0x90] sm:$0x1] }
  0x72   : > { %v1429_v58 = vrot.slane %v1428_v49, 4  ;;  %v9893_v9 = vld [vmem:[#allocation2 + $0x60] sm:$0xf]  ;;  %v892_v44 = vor.u32 %v890_v52, %v889_v48  ;;  %v897_v60 = vrot.slane %v895_v25, 7  ;;  %v607_v61 = vadd.f32 %v9642_v22, %v569_v23  ;;  %v533_v39 = vld [vmem:[%s9637_s12 + $0xa8] sm:$0xff] }
  0x73   : > { %v1419_v62 = vrot.slane %v1418_v53, 4  ;;  %v1436_v63 = vshrl.u32 %v9893_v9, 16  ;;  %v1439_v0 = vshll.u32 %v9893_v9, 16  ;;  %v638_v3 = vmax.f32 %v606_v57, 0.0  ;;  %v9924_v52 = vld [vmem:[%s12006_s3] ss:$0 sm:$0xff] }
  0x74   : > { %v1434_v4 = vsel %vm9666_vm11, %v1429_v58, %v1433_v50  ;;  %v900_v6 = vor.u32 %v898_v54, %v897_v60  ;;  %v902_v7 = vrot.slane %v897_v60, 4  ;;  %v1130_v10 = vsel %vm9681_vm12, %v892_v44, %v1129_v55  ;;  %v1136_v55 = vld [vmem:[#allocation2 + $0x78] sm:$0xf] }
  0x75   : > { %v1424_v11 = vsel %vm9666_vm11, %v1419_v62, %v1423_v38  ;;  %v1438_v14 = vrot.slane %v1436_v63, 4  ;;  %v1441_v22 = vrot.slane %v1439_v0, 5  ;;  %1131 = vst [vmem:[#allocation2 + $0x6c] sm:$0xf] %v1130_v10  ;;  %v639_v16 = vmax.f32 %v607_v61, 0.0 }
  0x76   : > { %v9904_v59 = vcombine.low %v1424_v11, %v1434_v4  ;;  %v9906_v19 = vld [vmem:[#allocation2 + $0x64] sm:$0xf]  ;;  %v901_v20 = vsel %vm9688_vm13, %v893_v43, %v900_v6  ;;  %v1134_v23 = vsel %vm9577_vm3, %v902_v7, %v1133_v1  ;;  %v7951_v24 = vpack.c.bf16 %v638_v3, %v638_v3  ;;  %v9935_v61 = vld [vmem:[%s12007_s4] ss:$0 sm:$0xff] }
  0x77   : > { %v1211_v28 = vld [vmem:[#allocation2 + $0x68] sm:$0x1]  ;;  %v1442_v31 = vor.u32 %v1441_v22, %v1438_v14  ;;  %v1445_v32 = vshll.u32 %v9906_v19, 16  ;;  %v1449_v33 = vshrl.u32 %v9906_v19, 16  ;;  %1132 = vst.msk [vmem:[#allocation2 + $0x70] sm:$0xf] %vm503_vm5, %v901_v20  ;;  %v7952_v34 = vpack.c.bf16 %v639_v16, %v639_v16 }
  0x78   : > { %12100 = vst [vmem:[#allocation14_spill] sm:$0xff] %v9904_v59  ;;  %1135 = vst [vmem:[#allocation2 + $0x74] sm:$0x1] %v1134_v23  ;;  %8318 = vmatmul.mubr.msk.bf16.gmra.mrb[12].mxu0 %vm1677_vm9, %v9904_v59  ;;  %v1455_v12 = vshll.u32 %v1211_v28, 16  ;;  %v904_v36 = vshrl.u32 %v7951_v24, 16  ;;  %v907_v37 = vshll.u32 %v7951_v24, 16  ;;  %v570_v25 = vmul.f32 %v9924_v52, %v532_v35 }
  0x79   : > { %v375_v38 = vsel %vm9585_vm6, 0, %v374_v17  ;;  %v1443_v40 = vrot.slane %v1442_v31, 4  ;;  %v1447_v41 = vrot.slane %v1445_v32, 5  ;;  %v1451_v42 = vrot.slane %v1449_v33, 4  ;;  %v1140_v6 = vld [vmem:[#allocation2 + $0x80] sm:$0x1] }
  0x7a   : > { %v912_v45 = vshrl.u32 %v7952_v34, 16  ;;  %376 = vst [vmem:[#allocation2 + $0x8c] sm:$0x1] %v375_v38  ;;  %v1457_v48 = vrot.slane %v1455_v12, 5  ;;  %v906_v49 = vrot.slane %v904_v36, 7  ;;  %v915_v50 = vshll.u32 %v7952_v34, 16 }
  0x7b   : > { %v1448_v53 = vsel %vm9666_vm11, %v1443_v40, %v1447_v41  ;;  %v1452_v43 = vor.u32 %v1451_v42, %v1447_v41  ;;  %v571_v57 = vmul.f32 %v9924_v52, %v533_v39  ;;  %v608_v62 = vadd.f32 %v9935_v61, %v570_v25  ;;  %v377_v28 = vld [vmem:[#allocation2 + $0x98] sm:$0x1]  ;;  %v534_v35 = vld [vmem:[%s9637_s12 + $0xb0] sm:$0xff]  ;;  %v324_v40 = vld [vmem:[#allocation2 + $0x9c] sm:$0x1] }
  0x7c   : > { %v914_v54 = vrot.slane %v912_v45, 7  ;;  %v9930_v58 = vld [vmem:[#allocation2 + $0x6c] sm:$0xf]  ;;  %v909_v44 = vor.u32 %v907_v37, %v906_v49  ;;  %v910_v60 = vrot.slane %v906_v49, 4  ;;  %v322_v63 = vsel %vm9577_vm3, 0, %v321_v47  ;;  %v535_v12 = vld [vmem:[%s9637_s12 + $0xb8] sm:$0xff] }
  0x7d   : > { %v1453_v0 = vrot.slane %v1452_v43, 4  ;;  %v1460_v1 = vshrl.u32 %v9930_v58, 16  ;;  %v1463_v3 = vshll.u32 %v9930_v58, 16  ;;  %323 = vst [vmem:[#allocation2 + $0x90] sm:$0x1] %v322_v63  ;;  %v609_v22 = vadd.f32 %v9935_v61, %v571_v57 }
  0x7e   : > { %v917_v4 = vor.u32 %v915_v50, %v914_v54  ;;  %v9942_v7 = vld [vmem:[#allocation2 + $0x70] sm:$0xf]  ;;  %v919_v11 = vrot.slane %v914_v54, 4  ;;  %v1137_v14 = vsel %vm9681_vm12, %v909_v44, %v1136_v55  ;;  %v640_v16 = vmax.f32 %v608_v62, 0.0 }
  0x7f   : > { %v9944_v10 = vld [vmem:[#allocation2 + $0x74] sm:$0x1]  ;;  %v1458_v17 = vsel %vm9666_vm11, %v1453_v0, %v1457_v48  ;;  %v1462_v20 = vrot.slane %v1460_v1, 4  ;;  %v1465_v23 = vrot.slane %v1463_v3, 5  ;;  %v1469_v24 = vshll.u32 %v9942_v7, 16 }
  0x80   : > { %1138 = vst [vmem:[#allocation2 + $0x78] sm:$0xf] %v1137_v14  ;;  %v9952_v31 = vcombine.low %v1448_v53, %v1458_v17  ;;  %v1473_v32 = vshrl.u32 %v9942_v7, 16  ;;  %v1479_v33 = vshll.u32 %v9944_v10, 16  ;;  %v918_v34 = vsel %vm9688_vm13, %v910_v60, %v917_v4  ;;  %v380_v53 = vld [vmem:[#allocation2 + $0xa4] sm:$0x1] }
  0x81   : > { %v1466_v36 = vor.u32 %v1465_v23, %v1462_v20  ;;  %v1471_v37 = vrot.slane %v1469_v24, 5  ;;  %1139 = vst.msk [vmem:[#allocation2 + $0x7c] sm:$0xf] %vm503_vm5, %v918_v34  ;;  %v1141_v38 = vsel %vm9577_vm3, %v919_v11, %v1140_v6  ;;  %v641_v39 = vmax.f32 %v609_v22, 0.0 }
  0x82   : > { %12101 = vst [vmem:[#allocation15_spill] sm:$0xff] %v9952_v31  ;;  %8321 = vmatprep.mubr.msk.bf16.mxu0 %vm1677_vm9, %v9952_v31  ;;  %v1475_v41 = vrot.slane %v1473_v32, 4  ;;  %v1481_v42 = vrot.slane %v1479_v33, 5  ;;  %1142 = vst [vmem:[#allocation2 + $0x80] sm:$0x1] %v1141_v38  ;;  %v7953_v45 = vpack.c.bf16 %v640_v16, %v640_v16  ;;  %v378_v47 = vsel %vm9585_vm6, 0, %v377_v28 }
  0x83   : > { %v1467_v48 = vrot.slane %v1466_v36, 4  ;;  %v7954_v49 = vpack.c.bf16 %v641_v39, %v641_v39  ;;  %379 = vst [vmem:[#allocation2 + $0x98] sm:$0x1] %v378_v47  ;;  %v572_v50 = vmul.f32 %v9924_v52, %v534_v35  ;;  %v573_v25 = vmul.f32 %v9924_v52, %v535_v12  ;;  %v1143_v16 = vld [vmem:[#allocation2 + $0x84] sm:$0xf] }
  0x84   : > { %v1476_v43 = vor.u32 %v1475_v41, %v1471_v37  ;;  %v921_v54 = vshrl.u32 %v7953_v45, 16  ;;  %v924_v55 = vshll.u32 %v7953_v45, 16  ;;  %v325_v57 = vsel %vm9577_vm3, 0, %v324_v40  ;;  %v1147_v32 = vld [vmem:[#allocation2 + $0x8c] sm:$0x1] }
  0x85   : > { %v1472_v44 = vsel %vm9666_vm11, %v1467_v48, %v1471_v37  ;;  %v929_v60 = vshrl.u32 %v7954_v49, 16  ;;  %v932_v62 = vshll.u32 %v7954_v49, 16  ;;  %v610_v63 = vadd.f32 %v9935_v61, %v572_v50  ;;  %326 = vst [vmem:[#allocation2 + $0x9c] sm:$0x1] %v325_v57  ;;  %v536_v49 = vld [vmem:[%s9637_s12 + $0xc0] sm:$0xff]  ;;  %v537_v50 = vld [vmem:[%s9637_s12 + $0xc8] sm:$0xff] }
  0x86   : > { %v1477_v0 = vrot.slane %v1476_v43, 4  ;;  %v923_v3 = vrot.slane %v921_v54, 7  ;;  %v611_v4 = vadd.f32 %v9935_v61, %v573_v25  ;;  %v381_v6 = vsel %vm9585_vm6, 0, %v380_v53  ;;  %v327_v25 = vld [vmem:[#allocation2 + $0xa8] sm:$0x1] }
  0x87   : > { %v9974_v1 = vld [vmem:[#allocation2 + $0x78] sm:$0xf]  ;;  %v931_v22 = vrot.slane %v929_v60, 7  ;;  %v642_v17 = vmax.f32 %v610_v63, 0.0  ;;  %382 = vst [vmem:[#allocation2 + $0xa4] sm:$0x1] %v381_v6 }
  0x88   : > { %v1484_v11 = vshrl.u32 %v9974_v1, 16  ;;  %v1487_v14 = vshll.u32 %v9974_v1, 16  ;;  %v1482_v20 = vsel %vm9666_vm11, %v1477_v0, %v1481_v42  ;;  %v9983_v23 = vld [vmem:[#allocation2 + $0x7c] sm:$0xf]  ;;  %v926_v24 = vor.u32 %v924_v55, %v923_v3  ;;  %v383_v63 = vld [vmem:[#allocation2 + $0xb0] sm:$0x1] }
  0x89   : > { %v927_v28 = vrot.slane %v923_v3, 4  ;;  %v643_v33 = vmax.f32 %v611_v4, 0.0  ;;  %v9985_v34 = vcombine.low %v1472_v44, %v1482_v20  ;;  %v9987_v35 = vld [vmem:[#allocation2 + $0x80] sm:$0x1]  ;;  %v1493_v37 = vshll.u32 %v9983_v23, 16  ;;  %v539_v20 = vld [vmem:[%s9637_s12 + $0xd8] sm:$0xff] }
  0x8a   : > { %v1486_v12 = vrot.slane %v1484_v11, 4  ;;  %v1489_v36 = vrot.slane %v1487_v14, 5  ;;  %v1497_v38 = vshrl.u32 %v9983_v23, 16  ;;  %v1503_v39 = vshll.u32 %v9987_v35, 16  ;;  %v538_v11 = vld [vmem:[%s9637_s12 + $0xd0] sm:$0xff] }
  0x8b   : > { %12102 = vst [vmem:[#allocation16_spill] sm:$0xff] %v9985_v34  ;;  %v934_v40 = vor.u32 %v932_v62, %v931_v22  ;;  %v936_v41 = vrot.slane %v931_v22, 4  ;;  %8322 = vmatmul.mubr.msk.bf16.gmra.mrb[16].mxu0 %vm1677_vm9, %v9985_v34  ;;  %v1495_v45 = vrot.slane %v1493_v37, 5  ;;  %v1144_v47 = vsel %vm9681_vm12, %v926_v24, %v1143_v16 }
  0x8c   : > { %v1490_v42 = vor.u32 %v1489_v36, %v1486_v12  ;;  %v7955_v48 = vpack.c.bf16 %v642_v17, %v642_v17  ;;  %v1499_v53 = vrot.slane %v1497_v38, 4  ;;  %v1505_v43 = vrot.slane %v1503_v39, 5  ;;  %1145 = vst [vmem:[#allocation2 + $0x84] sm:$0xf] %v1144_v47 }
  0x8d   : > { %v935_v54 = vsel %vm9688_vm13, %v927_v28, %v934_v40  ;;  %v1148_v55 = vsel %vm9577_vm3, %v936_v41, %v1147_v32  ;;  %v7956_v44 = vpack.c.bf16 %v643_v33, %v643_v33  ;;  %v574_v3 = vmul.f32 %v9924_v52, %v536_v49  ;;  %v1150_v28 = vld [vmem:[#allocation2 + $0x90] sm:$0xf] }
  0x8e   : > { %v1491_v57 = vrot.slane %v1490_v42, 4  ;;  %1146 = vst.msk [vmem:[#allocation2 + $0x88] sm:$0xf] %vm503_vm5, %v935_v54  ;;  %1149 = vst [vmem:[#allocation2 + $0x8c] sm:$0x1] %v1148_v55  ;;  %v938_v60 = vshrl.u32 %v7955_v48, 16  ;;  %v1500_v0 = vor.u32 %v1499_v53, %v1495_v45  ;;  %v575_v4 = vmul.f32 %v9924_v52, %v537_v50 }
  0x8f   : > { %v941_v62 = vshll.u32 %v7955_v48, 16  ;;  %v328_v6 = vsel %vm9577_vm3, 0, %v327_v25  ;;  %v946_v16 = vshrl.u32 %v7956_v44, 16  ;;  %v949_v17 = vshll.u32 %v7956_v44, 16  ;;  %v1154_v53 = vld [vmem:[#allocation2 + $0x98] sm:$0x1] }
  0x90   : > { %v1496_v14 = vsel %vm9666_vm11, %v1491_v57, %v1495_v45  ;;  %v940_v22 = vrot.slane %v938_v60, 7  ;;  %329 = vst [vmem:[#allocation2 + $0xa8] sm:$0x1] %v328_v6  ;;  %v1501_v24 = vrot.slane %v1500_v0, 4  ;;  %v612_v32 = vadd.f32 %v9935_v61, %v574_v3 }
  0x91   : > { %v613_v33 = vadd.f32 %v9935_v61, %v575_v4  ;;  %v384_v12 = vsel %vm9585_vm6, 0, %v383_v63  ;;  %v948_v38 = vrot.slane %v946_v16, 7  ;;  %v576_v39 = vmul.f32 %v9924_v52, %v538_v11 }
  0x92   : > { %v943_v36 = vor.u32 %v941_v62, %v940_v22  ;;  %v944_v37 = vrot.slane %v940_v22, 4  ;;  %385 = vst [vmem:[#allocation2 + $0xb0] sm:$0x1] %v384_v12  ;;  %v1506_v40 = vsel %vm9666_vm11, %v1501_v24, %v1505_v43  ;;  %v644_v41 = vmax.f32 %v612_v32, 0.0  ;;  %v330_v22 = vld [vmem:[#allocation2 + $0xb4] sm:$0x1] }
  0x93   : > { %v645_v42 = vmax.f32 %v613_v33, 0.0  ;;  %v577_v45 = vmul.f32 %v9924_v52, %v539_v20  ;;  %v10019_v47 = vcombine.low %v1496_v14, %v1506_v40  ;;  %v10021_v48 = vld [vmem:[#allocation2 + $0x84] sm:$0xf]  ;;  %v951_v49 = vor.u32 %v949_v17, %v948_v38 }
  0x94   : > { %v953_v50 = vrot.slane %v948_v38, 4  ;;  %v1151_v25 = vsel %vm9681_vm12, %v943_v36, %v1150_v28  ;;  %v1508_v43 = vshrl.u32 %v10021_v48, 16  ;;  %v1511_v57 = vshll.u32 %v10021_v48, 16  ;;  %v386_v36 = vld [vmem:[#allocation2 + $0xbc] sm:$0x1] }
  0x95   : > { %12103 = vst [vmem:[#allocation17_spill] sm:$0xff] %v10019_v47  ;;  %v10025_v54 = vld [vmem:[#allocation2 + $0x88] sm:$0xf]  ;;  %v10027_v55 = vld [vmem:[#allocation2 + $0x8c] sm:$0x1]  ;;  %v7957_v44 = vpack.c.bf16 %v644_v41, %v644_v41  ;;  %v7958_v60 = vpack.c.bf16 %v645_v42, %v645_v42  ;;  %8325 = vmatprep.mubr.msk.bf16.mxu0 %vm1677_vm9, %v10019_v47  ;;  %v952_v3 = vsel %vm9688_vm13, %v944_v37, %v951_v49  ;;  %v331_v41 = vsel %vm9577_vm3, 0, %v330_v22 }
  0x96   : > { %1152 = vst [vmem:[#allocation2 + $0x90] sm:$0xf] %v1151_v25  ;;  %v1517_v62 = vshll.u32 %v10025_v54, 16  ;;  %v1521_v63 = vshrl.u32 %v10025_v54, 16  ;;  %v1527_v0 = vshll.u32 %v10027_v55, 16  ;;  %v1510_v4 = vrot.slane %v1508_v43, 4 }
  0x97   : > { %v1513_v6 = vrot.slane %v1511_v57, 5  ;;  %1153 = vst.msk [vmem:[#allocation2 + $0x94] sm:$0xf] %vm503_vm5, %v952_v3  ;;  %v1155_v11 = vsel %vm9577_vm3, %v953_v50, %v1154_v53  ;;  %v955_v14 = vshrl.u32 %v7957_v44, 16  ;;  %v958_v24 = vshll.u32 %v7957_v44, 16 }
  0x98   : > { %v1519_v16 = vrot.slane %v1517_v62, 5  ;;  %v1523_v17 = vrot.slane %v1521_v63, 4  ;;  %v1529_v20 = vrot.slane %v1527_v0, 5  ;;  %1156 = vst [vmem:[#allocation2 + $0x98] sm:$0x1] %v1155_v11  ;;  %v963_v33 = vshrl.u32 %v7958_v60, 16 }
  0x99   : > { %v1514_v28 = vor.u32 %v1513_v6, %v1510_v4  ;;  %v957_v32 = vrot.slane %v955_v14, 7  ;;  %v966_v12 = vshll.u32 %v7958_v60, 16  ;;  %v614_v38 = vadd.f32 %v9935_v61, %v576_v39  ;;  %v1157_v53 = vld [vmem:[#allocation2 + $0x9c] sm:$0xf]  ;;  %332 = vst [vmem:[#allocation2 + $0xb4] sm:$0x1] %v331_v41 }
  0x9a   : > { %v1524_v37 = vor.u32 %v1523_v17, %v1519_v16  ;;  %v615_v40 = vadd.f32 %v9935_v61, %v577_v45  ;;  %v965_v25 = vrot.slane %v963_v33, 7  ;;  %v387_v62 = vsel %vm9585_vm6, 0, %v386_v36  ;;  %v1161_v3 = vld [vmem:[#allocation2 + $0xa4] sm:$0x1]  ;;  %v10235_v47 = vld [vmem:[#allocation2 + $0x34] sm:$0xf] }
  0x9b   : > { %v1515_v42 = vrot.slane %v1514_v28, 4  ;;  %v960_v49 = vor.u32 %v958_v24, %v957_v32  ;;  %v961_v50 = vrot.slane %v957_v32, 4  ;;  %v646_v44 = vmax.f32 %v614_v38, 0.0  ;;  %388 = vst [vmem:[#allocation2 + $0xbc] sm:$0x1] %v387_v62  ;;  %v540_v33 = vld [vmem:[%s9637_s12 + $0xe0] sm:$0xff] }
  0x9c   : > { %v1525_v43 = vrot.slane %v1524_v37, 4  ;;  %v647_v60 = vmax.f32 %v615_v40, 0.0  ;;  %v968_v0 = vor.u32 %v966_v12, %v965_v25  ;;  %v970_v11 = vrot.slane %v965_v25, 4 }
  0x9d   : > { %v10045_v57 = vld [vmem:[#allocation2 + $0x90] sm:$0xf]  ;;  %v1520_v39 = vsel %vm9666_vm11, %v1515_v42, %v1519_v16  ;;  %v1158_v14 = vsel %vm9681_vm12, %v960_v49, %v1157_v53  ;;  %v7959_v22 = vpack.c.bf16 %v646_v44, %v646_v44  ;;  %v541_v49 = vld [vmem:[%s9637_s12 + $0xe8] sm:$0xff]  ;;  %vm2199_vm14 = vcmask 1042432  }
  0x9e   : > { %v1532_v45 = vshrl.u32 %v10045_v57, 16  ;;  %v1535_v63 = vshll.u32 %v10045_v57, 16  ;;  %v1530_v4 = vsel %vm9666_vm11, %v1525_v43, %v1529_v20  ;;  %v10055_v6 = vld [vmem:[#allocation2 + $0x94] sm:$0xf]  ;;  %1159 = vst [vmem:[#allocation2 + $0x9c] sm:$0xf] %v1158_v14  ;;  %v969_v36 = vsel %vm9688_vm13, %v961_v50, %v968_v0 }
  0x9f   : > { %v10059_v17 = vcombine.low %v1520_v39, %v1530_v4  ;;  %v10061_v16 = vld [vmem:[#allocation2 + $0x98] sm:$0x1]  ;;  %v1541_v32 = vshll.u32 %v10055_v6, 16  ;;  %v1545_v20 = vshrl.u32 %v10055_v6, 16  ;;  %v1162_v37 = vsel %vm9577_vm3, %v970_v11, %v1161_v3  ;;  %1160 = vst.msk [vmem:[#allocation2 + $0xa0] sm:$0xf] %vm503_vm5, %v969_v36 }
  0xa0   : > { %v1534_v24 = vrot.slane %v1532_v45, 4  ;;  %v1537_v28 = vrot.slane %v1535_v63, 5  ;;  %v1551_v12 = vshll.u32 %v10061_v16, 16  ;;  %1163 = vst [vmem:[#allocation2 + $0xa4] sm:$0x1] %v1162_v37  ;;  %v7960_v41 = vpack.c.bf16 %v647_v60, %v647_v60 }
  0xa1   : > { %12104 = vst [vmem:[#allocation18_spill] sm:$0xff] %v10059_v17  ;;  %8326 = vmatmul.mubr.msk.bf16.gmra.mrb[20].mxu0 %vm1677_vm9, %v10059_v17  ;;  %v1543_v40 = vrot.slane %v1541_v32, 5  ;;  %v972_v42 = vshrl.u32 %v7959_v22, 16  ;;  %v1547_v25 = vrot.slane %v1545_v20, 4  ;;  %v975_v53 = vshll.u32 %v7959_v22, 16 }
  0xa2   : > { %v1538_v38 = vor.u32 %v1537_v28, %v1534_v24  ;;  %v578_v43 = vmul.f32 %v9924_v52, %v540_v33  ;;  %v980_v62 = vshrl.u32 %v7960_v41, 16  ;;  %v983_v39 = vshll.u32 %v7960_v41, 16  ;;  %v1164_v14 = vld [vmem:[#allocation2 + $0xa8] sm:$0xf]  ;;  %v10176_v17 = vld [vmem:[#allocation2] sm:$0xf] }
  0xa3   : > { %v974_v50 = vrot.slane %v972_v42, 7  ;;  %v1548_v45 = vor.u32 %v1547_v25, %v1543_v40  ;;  %v1553_v63 = vrot.slane %v1551_v12, 5  ;;  %v579_v0 = vmul.f32 %v9924_v52, %v541_v49 }
  0xa4   : > { %v1539_v44 = vrot.slane %v1538_v38, 4  ;;  %v616_v3 = vadd.f32 %v9935_v61, %v578_v43  ;;  %v982_v11 = vrot.slane %v980_v62, 7  ;;  %v1168_v38 = vld [vmem:[#allocation2 + $0xb0] sm:$0x1]  ;;  %vm2200_vm15 = vcmask 1046532  }
  0xa5   : > { %v977_v60 = vor.u32 %v975_v53, %v974_v50  ;;  %v1549_v24 = vrot.slane %v1548_v45, 4  ;;  %v10080_v22 = vld [vmem:[#allocation2 + $0x9c] sm:$0xf]  ;;  %v978_v28 = vrot.slane %v974_v50, 4  ;;  %v617_v32 = vadd.f32 %v9935_v61, %v579_v0  ;;  %vm10224_vm2 = vmor %vm2199_vm14, %vm2200_vm15 }
  0xa6   : > { %v1544_v4 = vsel %vm9666_vm11, %v1539_v44, %v1543_v40  ;;  %v648_v33 = vmax.f32 %v616_v3, 0.0  ;;  %v1556_v20 = vshrl.u32 %v10080_v22, 16  ;;  %v1559_v12 = vshll.u32 %v10080_v22, 16  ;;  %v10087_v41 = vld [vmem:[#allocation2 + $0xa0] sm:$0xf] }
  0xa7   : > { %v985_v36 = vor.u32 %v983_v39, %v982_v11  ;;  %v987_v37 = vrot.slane %v982_v11, 4  ;;  %v1554_v40 = vsel %vm9666_vm11, %v1549_v24, %v1553_v63  ;;  %v10089_v42 = vld [vmem:[#allocation2 + $0xa4] sm:$0x1]  ;;  %v1165_v49 = vsel %vm9681_vm12, %v977_v60, %v1164_v14 }
  0xa8   : > { %v649_v25 = vmax.f32 %v617_v32, 0.0  ;;  %v7961_v53 = vpack.c.bf16 %v648_v33, %v648_v33  ;;  %v10093_v43 = vcombine.low %v1544_v4, %v1554_v40  ;;  %v1558_v44 = vrot.slane %v1556_v20, 4  ;;  %1166 = vst [vmem:[#allocation2 + $0xa8] sm:$0xf] %v1165_v49 }
  0xa9   : > { %v1561_v50 = vrot.slane %v1559_v12, 5  ;;  %v1565_v62 = vshll.u32 %v10087_v41, 16  ;;  %v1569_v39 = vshrl.u32 %v10087_v41, 16  ;;  %v1575_v45 = vshll.u32 %v10089_v42, 16 }
  0xaa   : > { %12105 = vst [vmem:[#allocation19_spill] sm:$0xff] %v10093_v43  ;;  %v986_v63 = vsel %vm9688_vm13, %v978_v28, %v985_v36  ;;  %v1169_v0 = vsel %vm9577_vm3, %v987_v37, %v1168_v38  ;;  %8329 = vmatprep.mubr.msk.bf16.mxu0 %vm1677_vm9, %v10093_v43  ;;  %v7962_v60 = vpack.c.bf16 %v649_v25, %v649_v25  ;;  %v989_v11 = vshrl.u32 %v7961_v53, 16  ;;  %v1171_v38 = vld [vmem:[#allocation2 + $0xb4] sm:$0xf]  ;;  %v10174_v43 = vld [vmem:[#allocation2 + $0x4] sm:$0xf] }
  0xab   : > { %v1562_v3 = vor.u32 %v1561_v50, %v1558_v44  ;;  %v1567_v4 = vrot.slane %v1565_v62, 5  ;;  %1167 = vst.msk [vmem:[#allocation2 + $0xac] sm:$0xf] %vm503_vm5, %v986_v63  ;;  %1170 = vst [vmem:[#allocation2 + $0xb0] sm:$0x1] %v1169_v0  ;;  %v1571_v14 = vrot.slane %v1569_v39, 4 }
  0xac   : > { %v992_v24 = vshll.u32 %v7961_v53, 16  ;;  %v991_v33 = vrot.slane %v989_v11, 7  ;;  %v997_v20 = vshrl.u32 %v7962_v60, 16  ;;  %v1000_v12 = vshll.u32 %v7962_v60, 16  ;;  %v1175_v0 = vld [vmem:[#allocation2 + $0xbc] sm:$0x1] }
  0xad   : > { %v1563_v32 = vrot.slane %v1562_v3, 4  ;;  %v1572_v28 = vor.u32 %v1571_v14, %v1567_v4  ;;  %v1577_v36 = vrot.slane %v1575_v45, 5  ;;  %v2298_v59 = vrot.slane %v10089_v42, 5 }
  0xae   : > { %v994_v40 = vor.u32 %v992_v24, %v991_v33  ;;  %v999_v37 = vrot.slane %v997_v20, 7  ;;  %v995_v62 = vrot.slane %v991_v33, 4 }
  0xaf   : > { %v1568_v49 = vsel %vm9666_vm11, %v1563_v32, %v1567_v4  ;;  %v1573_v44 = vrot.slane %v1572_v28, 4  ;;  %v10107_v50 = vld [vmem:[#allocation2 + $0xa8] sm:$0xf] }
  0xb0   : > { %v1580_v25 = vshrl.u32 %v10107_v50, 16  ;;  %v1583_v53 = vshll.u32 %v10107_v50, 16  ;;  %v1002_v39 = vor.u32 %v1000_v12, %v999_v37  ;;  %v1004_v63 = vrot.slane %v999_v37, 4 }
  0xb1   : > { %v1578_v45 = vsel %vm9666_vm11, %v1573_v44, %v1577_v36  ;;  %v1172_v4 = vsel %vm9681_vm12, %v994_v40, %v1171_v38  ;;  %v10133_v37 = vcombine.low %v10021_v48, %v10025_v54  ;;  %v10141_v44 = vcombine.low %v10080_v22, %v10087_v41 }
  0xb2   : > { %v10113_v3 = vld [vmem:[#allocation2 + $0xac] sm:$0xf]  ;;  %v10115_v60 = vld [vmem:[#allocation2 + $0xb0] sm:$0x1]  ;;  %v10119_v11 = vcombine.low %v1568_v49, %v1578_v45  ;;  %v1582_v14 = vrot.slane %v1580_v25, 4  ;;  %v1585_v24 = vrot.slane %v1583_v53, 5  ;;  %v1003_v12 = vsel %vm9688_vm13, %v995_v62, %v1002_v39 }
  0xb3   : > { %v1589_v32 = vshll.u32 %v10113_v3, 16  ;;  %1173 = vst [vmem:[#allocation2 + $0xb4] sm:$0xf] %v1172_v4  ;;  %v1593_v33 = vshrl.u32 %v10113_v3, 16  ;;  %v1599_v20 = vshll.u32 %v10115_v60, 16  ;;  %v1176_v28 = vsel %vm9577_vm3, %v1004_v63, %v1175_v0 }
  0xb4   : > { %12106 = vst [vmem:[#allocation20_spill] sm:$0xff] %v10119_v11  ;;  %8330 = vmatmul.mubr.msk.bf16.gmra.mrb[24].mxu0 %vm1677_vm9, %v10119_v11  ;;  %v1586_v36 = vor.u32 %v1585_v24, %v1582_v14  ;;  %1174 = vst.msk [vmem:[#allocation2 + $0xb8] sm:$0xf] %vm503_vm5, %v1003_v12  ;;  %v10137_v49 = vcombine.low %v10045_v57, %v10055_v6  ;;  %v10145_v25 = vcombine.low %v10107_v50, %v10113_v3 }
  0xb5   : > { %v1591_v40 = vrot.slane %v1589_v32, 5  ;;  %1177 = vst [vmem:[#allocation2 + $0xbc] sm:$0x1] %v1176_v28  ;;  %v1595_v38 = vrot.slane %v1593_v33, 4  ;;  %v1601_v39 = vrot.slane %v1599_v20, 5  ;;  %v7526_v13 = vrot.slane %v10107_v50, 9 }
  0xb6   : > { %v1587_v62 = vrot.slane %v1586_v36, 4 }
  0xb7   : > { %v1596_v53 = vor.u32 %v1595_v38, %v1591_v40 }
  0xb8   : > { %v1592_v63 = vsel %vm9666_vm11, %v1587_v62, %v1591_v40 }
  0xb9   : > { %v1597_v0 = vrot.slane %v1596_v53, 4 }
  0xba   : > { %v10149_v45 = vld [vmem:[#allocation2 + $0xb4] sm:$0xf] }
  0xbb   : > { %v1604_v4 = vshrl.u32 %v10149_v45, 16  ;;  %v1607_v14 = vshll.u32 %v10149_v45, 16  ;;  %v1602_v24 = vsel %vm9666_vm11, %v1597_v0, %v1601_v39  ;;  %v10155_v32 = vld [vmem:[#allocation2 + $0xb8] sm:$0xf]  ;;  %v7527_v42 = vrot.slane %v10149_v45, 9 }
  0xbc   : > { %v10157_v33 = vld [vmem:[#allocation2 + $0xbc] sm:$0x1]  ;;  %v10159_v12 = vcombine.low %v1592_v63, %v1602_v24  ;;  %v1613_v36 = vshll.u32 %v10155_v32, 16  ;;  %v1617_v40 = vshrl.u32 %v10155_v32, 16  ;;  %v10166_v62 = vcombine.low %v10149_v45, %v10155_v32 }
  0xbd   : > { %v1606_v20 = vrot.slane %v1604_v4, 4  ;;  %v1609_v28 = vrot.slane %v1607_v14, 5  ;;  %v1623_v38 = vshll.u32 %v10157_v33, 16 }
  0xbe   : > { %12107 = vst [vmem:[#allocation21_spill] sm:$0xff] %v10159_v12  ;;  %8333 = vmatprep.mubr.msk.bf16.mxu0 %vm1677_vm9, %v10159_v12  ;;  %v1615_v39 = vrot.slane %v1613_v36, 5  ;;  %v1619_v0 = vrot.slane %v1617_v40, 4  ;;  %v7480_v12 = vcombine.low %v10176_v17, %v10174_v43  ;;  %v10187_v36 = vld [vmem:[#allocation2 + $0x10] sm:$0xf] }
  0xbf   : > { %v1610_v53 = vor.u32 %v1609_v28, %v1606_v20  ;;  %v1625_v4 = vrot.slane %v1623_v38, 5  ;;  %v10185_v28 = vld [vmem:[#allocation2 + $0xc] sm:$0xf]  ;;  %v10193_v40 = vld [vmem:[#allocation2 + $0x18] sm:$0xf] }
  0xc0   : > { %v1620_v24 = vor.u32 %v1619_v0, %v1615_v39  ;;  %v10195_v38 = vld [vmem:[#allocation2 + $0x1c] sm:$0xf]  ;;  %v10209_v0 = vld [vmem:[%s12004_s1 + $0x6] sm:$0x3] }
  0xc1   : > { %v1611_v63 = vrot.slane %v1610_v53, 4  ;;  %v9476_v53 = vld [vmem:[%s12004_s1 + $0x4] sm:$0x3] }
  0xc2   : > { %v1621_v8 = vrot.slane %v1620_v24, 4  ;;  %v2284_v24 = vrot.slane %v10027_v55, 5  ;;  %v2291_v55 = vrot.slane %v10061_v16, 5  ;;  %v2295_v16 = vrot.slane %v10087_v41, 5 }
  0xc3   : > { %v1616_v14 = vsel %vm9666_vm11, %v1611_v63, %v1615_v39  ;;  %v2413_v39 = vsel %vm1726_vm0, %v9476_v53, 0  ;;  %v2281_v63 = vrot.slane %v10025_v54, 5  ;;  %v2288_v54 = vrot.slane %v10055_v6, 5 }
  0xc4   : > { %v1626_v11 = vsel %vm9666_vm11, %v1621_v8, %v1625_v4  ;;  %v10191_v8 = vcombine.low %v10185_v28, %v10187_v36  ;;  %v7524_v4 = vrot.slane %v10045_v57, 9  ;;  %v7525_v57 = vrot.slane %v10080_v22, 9 }
  0xc5   : > { %v10180_v20 = vcombine.low %v1616_v14, %v1626_v11  ;;  %v10199_v11 = vcombine.low %v10193_v40, %v10195_v38  ;;  %v10218_v14 = vld [vmem:[#allocation2 + $0x28] sm:$0xf]  ;;  %v2283_v6 = vrot.slane %v2281_v63, 4  ;;  %v2302_v41 = vrot.slane %v10113_v3, 5 }
  0xc6   : > { %v2289_v22 = vsel %vm10224_vm2, %v7524_v4, %v2288_v54  ;;  %v2305_v4 = vrot.slane %v10115_v60, 5 }
  0xc7   : > { %12108 = vst [vmem:[#allocation22_spill] sm:$0xff] %v10180_v20  ;;  %8334 = vmatmul.mubr.msk.bf16.gmra.mrb[28].mxu0 %vm1677_vm9, %v10180_v20  ;;  %v10233_v20 = vld [vmem:[#allocation2 + $0x30] sm:$0xf]  ;;  %v2285_v29 = vsel %vm10224_vm2, %v2283_v6, %v2284_v24  ;;  %v2303_v24 = vsel %vm10224_vm2, %v7526_v13, %v2302_v41 }
  0xc8   : > { %8339 = vmatprep.mubr.msk.bf16.mxu0 %vm1677_vm9, %v7480_v12  ;;  %v7523_v12 = vrot.slane %v10021_v48, 9  ;;  %v10216_v48 = vld [vmem:[#allocation2 + $0x24] sm:$0xf]  ;;  %v10239_v34 = vcombine.low %v10233_v20, %v10235_v47 }
  0xc9   : > { %v10222_v53 = vcombine.low %v10216_v48, %v10218_v14 }
  0xca   : > { %v2282_v31 = vsel %vm10224_vm2, %v7523_v12, %v2281_v63  ;;  %v2296_v12 = vsel %vm10224_vm2, %v7525_v57, %v2295_v16  ;;  %v2297_v63 = vrot.slane %v2295_v16, 4  ;;  %v2304_v57 = vrot.slane %v2302_v41, 4  ;;  %v10293_v16 = vld [vmem:[#allocation2 + $0x48] sm:$0xf] }
  0xcb   : > { %v10255_v51 = vcombine.low %v2282_v31, %v2285_v29  ;;  %v2309_v29 = vrot.slane %v10155_v32, 5  ;;  %v2312_v31 = vrot.slane %v10157_v33, 5  ;;  %v10285_v32 = vld [vmem:[#allocation2 + $0x3c] sm:$0xf]  ;;  %v10287_v33 = vld [vmem:[#allocation2 + $0x40] sm:$0xf]  ;;  %v10319_v41 = vcombine.low %v9930_v58, %v9942_v7 }
  0xcc   : > { %v2299_v50 = vsel %vm10224_vm2, %v2297_v63, %v2298_v59  ;;  %v2306_v3 = vsel %vm10224_vm2, %v2304_v57, %v2305_v4  ;;  %v10311_v63 = vcombine.low %v9893_v9, %v9906_v19  ;;  %v10323_v4 = vcombine.low %v9974_v1, %v9983_v23 }
  0xcd   : > { %v10267_v6 = vcombine.low %v2296_v12, %v2299_v50  ;;  %v2310_v59 = vsel %vm10224_vm2, %v7527_v42, %v2309_v29  ;;  %v2311_v60 = vrot.slane %v2309_v29, 4  ;;  %v10307_v12 = vcombine.low %v9881_v27, %v9874_v18  ;;  %v542_v18 = vld [vmem:[%s9637_s12 + $0xf0] sm:$0xff]  ;;  %v543_v27 = vld [vmem:[%s9637_s12 + $0xf8] sm:$0xff] }
  0xce   : > { %v580_v42 = vmul.f32 %v9924_v52, %v542_v18  ;;  %v581_v9 = vmul.f32 %v9924_v52, %v543_v27 }
  0xcf   : > { %8340 = vmatmul.mubr.msk.bf16.vlgmr.msra.gmra.mrb[0].mxu0 %vm1677_vm9, %v10191_v8  ;;  %v2313_v13 = vsel %vm10224_vm2, %v2311_v60, %v2312_v31 }
  0xd0   : > { %8372 = vmatpush3.bf16.msra.mxu0 %v2413_v39  ;;  %8343 = vmatprep.mubr.msk.bf16.mxu0 %vm1677_vm9, %v10199_v11  ;;  %v2290_v39 = vrot.slane %v2288_v54, 4  ;;  %v10283_v45 = vcombine.low %v2310_v59, %v2313_v13  ;;  %v618_v19 = vadd.f32 %v9935_v61, %v580_v42  ;;  %v619_v50 = vadd.f32 %v9935_v61, %v581_v9 }
  0xd1   : > { %9430 = vmatprep.subr.msk.bf16.mxu0 %vm1726_vm0, %v10209_v0  ;;  %v2204_v42 = vrot.slane %v10174_v43, 5  ;;  %v2211_v43 = vrot.slane %v10187_v36, 5 }
  0xd2   : > { %v2292_v15 = vsel %vm10224_vm2, %v2290_v39, %v2291_v55  ;;  %v10291_v55 = vcombine.low %v10285_v32, %v10287_v33  ;;  %v650_v57 = vmax.f32 %v618_v19, 0.0  ;;  %v651_v29 = vmax.f32 %v619_v50, 0.0 }
  0xd3   : > { %v10261_v54 = vcombine.low %v2289_v22, %v2292_v15  ;;  %v10275_v15 = vcombine.low %v2303_v24, %v2306_v3  ;;  %v10295_v22 = vld [vmem:[#allocation2 + $0x4c] sm:$0xf]  ;;  %v333_v24 = vld [vmem:[#allocation2 + $0xc0] sm:$0x1] }
  0xd4   : > { %v10299_v39 = vcombine.low %v10293_v16, %v10295_v22  ;;  %v334_v31 = vsel %vm9577_vm3, 0, %v333_v24  ;;  %v7963_v3 = vpack.c.bf16 %v650_v57, %v650_v57  ;;  %v7964_v59 = vpack.c.bf16 %v651_v29, %v651_v29 }
  0xd5   : > { %335 = vst [vmem:[#allocation2 + $0xc0] sm:$0x1] %v334_v31  ;;  %v9485_v31 = vld [vmem:[#allocation2 + $0x8] sm:$0x1] }
  0xd6   : > { %v1006_v52 = vshrl.u32 %v7963_v3, 16  ;;  %v1014_v60 = vshrl.u32 %v7964_v59, 16  ;;  %v1009_v18 = vshll.u32 %v7963_v3, 16  ;;  %v1017_v27 = vshll.u32 %v7964_v59, 16 }
  0xd7   : > { %8344 = vmatmul.mubr.msk.bf16.gmra.mrb[4].mxu0 %vm1677_vm9, %v10222_v53  ;;  %v2207_v46 = vrot.slane %v9485_v31, 5  ;;  %v7512_v3 = vrot.slane %v10176_v17, 9  ;;  %v2218_v17 = vrot.slane %v10195_v38, 5 }
  0xd8   : > { %8347 = vmatprep.mubr.msk.bf16.mxu0 %vm1677_vm9, %v10239_v34  ;;  %v1008_v13 = vrot.slane %v1006_v52, 7  ;;  %v10341_v61 = vrot.slane %v1014_v60, 7  ;;  %v2206_v52 = vrot.slane %v2204_v42, 4 }
  0xd9   : > { %v2205_v59 = vsel %vm10224_vm2, %v7512_v3, %v2204_v42  ;;  %v2220_v36 = vrot.slane %v2218_v17, 4  ;;  %v2225_v42 = vrot.slane %v10218_v14, 5  ;;  %v2619_v14 = vsel %vm1726_vm0, %v10209_v0, 0 }
  0xda   : > { %v1011_v9 = vor.u32 %v1009_v18, %v1008_v13  ;;  %v1012_v19 = vrot.slane %v1008_v13, 4  ;;  %v1019_v50 = vor.u32 %v1017_v27, %v10341_v61  ;;  %v2208_v60 = vsel %vm10224_vm2, %v2206_v52, %v2207_v46  ;;  %v9486_v13 = vld [vmem:[#allocation2 + $0x14] sm:$0x1] }
  0xdb   : > { %v2214_v18 = vrot.slane %v9486_v13, 5  ;;  %v7529_v27 = vcombine.low %v2205_v59, %v2208_v60  ;;  %v7515_v52 = vrot.slane %v10216_v48, 9  ;;  %v9488_v59 = vld [vmem:[#allocation2 + $0x2c] sm:$0x1]  ;;  %v7516_v13 = vrot.slane %v10233_v20, 9 }
  0xdc   : > { %v1178_v24 = vld [vmem:[#allocation2 + $0xc0] sm:$0xf]  ;;  %v1020_v57 = vsel %vm9688_vm13, %v1012_v19, %v1019_v50  ;;  %v2213_v19 = vrot.slane %v2211_v43, 4  ;;  %v7514_v50 = vrot.slane %v10193_v40, 9  ;;  %v2228_v60 = vrot.slane %v9488_v59, 5 }
  0xdd   : > { %v1179_v29 = vsel %vm9681_vm12, %v1011_v9, %v1178_v24  ;;  %1181 = vst.msk [vmem:[#allocation2 + $0xc4] sm:$0xf] %vm503_vm5, %v1020_v57  ;;  %v7513_v9 = vrot.slane %v10185_v28, 9  ;;  %v9487_v24 = vld [vmem:[#allocation2 + $0x20] sm:$0x1]  ;;  %v2226_v0 = vsel %vm10224_vm2, %v7515_v52, %v2225_v42  ;;  %v2239_v48 = vrot.slane %v10287_v33, 5 }
  0xde   : > { %1180 = vst [vmem:[#allocation2 + $0xc0] sm:$0xf] %v1179_v29  ;;  %v2221_v57 = vrot.slane %v9487_v24, 5  ;;  %v2215_v38 = vsel %vm10224_vm2, %v2213_v19, %v2214_v18  ;;  %v2219_v28 = vsel %vm10224_vm2, %v7514_v50, %v2218_v17  ;;  %v2232_v29 = vrot.slane %v10235_v47, 5  ;;  %v9489_v18 = vld [vmem:[#allocation2 + $0x38] sm:$0x1] }
  0xdf   : > { %8348 = vmatmul.mubr.msk.bf16.gmra.mrb[8].mxu0 %vm1677_vm9, %v10291_v55  ;;  %v2212_v46 = vsel %vm10224_vm2, %v7513_v9, %v2211_v43  ;;  %v2227_v43 = vrot.slane %v2225_v42, 4  ;;  %v10387_v47 = vld [vmem:[%s12004_s1 + $0x8] sm:$0x3]  ;;  %v2246_v50 = vrot.slane %v10295_v22, 5  ;;  %v7518_v42 = vrot.slane %v10293_v16, 9 }
  0xe0   : > { %8351 = vmatprep.mubr.msk.bf16.mxu0 %vm1677_vm9, %v10299_v39  ;;  %v2222_v40 = vsel %vm10224_vm2, %v2220_v36, %v2221_v57  ;;  %v10376_v31 = vcombine.low %v2212_v46, %v2215_v38  ;;  %v2234_v17 = vrot.slane %v2232_v29, 4  ;;  %v2233_v9 = vsel %vm10224_vm2, %v7516_v13, %v2232_v29  ;;  %v9490_v38 = vld [vmem:[#allocation2 + $0x44] sm:$0x1]  ;;  %v9492_v52 = vld [vmem:[#allocation2 + $0x58] sm:$0xf] }
  0xe1   : > { %v10378_v3 = vcombine.low %v2219_v28, %v2222_v40  ;;  %v2229_v20 = vsel %vm10224_vm2, %v2227_v43, %v2228_v60  ;;  %v7517_v57 = vrot.slane %v10285_v32, 9  ;;  %v2241_v46 = vrot.slane %v2239_v48, 4  ;;  %v9491_v40 = vld [vmem:[#allocation2 + $0x50] sm:$0x1]  ;;  %v9493_v60 = vld [vmem:[#allocation2 + $0x64] sm:$0xf] }
  0xe2   : > { %v10405_v36 = vcombine.low %v2226_v0, %v2229_v20  ;;  %v2242_v33 = vrot.slane %v9490_v38, 5  ;;  %v2248_v28 = vrot.slane %v2246_v50, 4  ;;  %v2249_v29 = vrot.slane %v9491_v40, 5  ;;  %v9495_v20 = vld [vmem:[#allocation2 + $0x5c] sm:$0x1] }
  0xe3   : > { %v2240_v22 = vsel %vm10224_vm2, %v7517_v57, %v2239_v48  ;;  %v2253_v43 = vrot.slane %v9492_v52, 5  ;;  %v2247_v16 = vsel %vm10224_vm2, %v7518_v42, %v2246_v50  ;;  %v2256_v48 = vrot.slane %v9495_v20, 5 }
  0xe4   : > { %v2243_v32 = vsel %vm10224_vm2, %v2241_v46, %v2242_v33  ;;  %v2250_v59 = vsel %vm10224_vm2, %v2248_v28, %v2249_v29  ;;  %v9497_v46 = vld [vmem:[#allocation2 + $0x68] sm:$0x1]  ;;  %v2267_v42 = vrot.slane %v9942_v7, 5  ;;  %v2274_v29 = vrot.slane %v9983_v23, 5 }
  0xe5   : > { %v10423_v13 = vcombine.low %v2240_v22, %v2243_v32  ;;  %v2255_v0 = vrot.slane %v2253_v43, 4  ;;  %v2263_v38 = vrot.slane %v9497_v46, 5  ;;  %v7521_v52 = vrot.slane %v9930_v58, 9  ;;  %v7616_v46 = vld [vmem:[%s12004_s1 + $0xc] sm:$0x3] }
  0xe6   : > { %v2276_v7 = vrot.slane %v2274_v29, 4 }
  0xe7   : > { %8352 = vmatmul.mubr.msk.bf16.gmra.mrb[12].mxu0 %vm1677_vm9, %v10307_v12  ;;  %v2257_v33 = vsel %vm10224_vm2, %v2255_v0, %v2256_v48  ;;  %v2268_v23 = vsel %vm10224_vm2, %v7521_v52, %v2267_v42  ;;  %v1021_v0 = vrot.slane %v10341_v61, 4  ;;  %v2847_v61 = vsel %vm1726_vm0, %v10387_v47, 0  ;;  %v12119_v52 = vld [vmem:[#allocation17_spill] sm:$0xff] }
  0xe8   : > { %8355 = vmatprep.mubr.msk.bf16.mxu0 %vm1677_vm9, %v10311_v63 }
  0xef   : > { %8356 = vmatmul.mubr.msk.bf16.gmra.mrb[16].mxu0 %vm1677_vm9, %v10319_v41 }
  0xf0   : > { %8359 = vmatprep.mubr.msk.bf16.mxu0 %vm1677_vm9, %v10323_v4 }
  0xf7   : > { %8360 = vmatmul.mubr.msk.bf16.gmra.mrb[20].mxu0 %vm1677_vm9, %v10133_v37 }
  0xf8   : > { %8363 = vmatprep.mubr.msk.bf16.mxu0 %vm1677_vm9, %v10137_v49 }
  0xff   : > { %8364 = vmatmul.mubr.msk.bf16.gmra.mrb[24].mxu0 %vm1677_vm9, %v10141_v44 }
 0x100   : > { %8367 = vmatprep.mubr.msk.bf16.mxu0 %vm1677_vm9, %v10145_v25 }
 0x107   : > { %8368 = vmatmul.mubr.msk.bf16.gmra.mrb[28].mxu0 %vm1677_vm9, %v10166_v62 }
 0x108   : > { %8373 = vmatprep.mubr.msk.bf16.mxu0 %vm1677_vm9, %v7529_v27  ;;  %v2235_v27 = vrot.slane %v9489_v18, 5  ;;  %v9494_v18 = vld [vmem:[#allocation2 + $0x54] sm:$0xf] }
 0x10a   : > { %v2236_v19 = vsel %vm10224_vm2, %v2234_v17, %v2235_v27  ;;  %v10425_v17 = vcombine.low %v2247_v16, %v2250_v59  ;;  %v7519_v27 = vrot.slane %v9494_v18, 9  ;;  %v2270_v16 = vrot.slane %v9944_v10, 5  ;;  %v389_v18 = vld [vmem:[#allocation2 + $0xc8] sm:$0x1] }
 0x10b   : > { %v10407_v24 = vcombine.low %v2233_v9, %v2236_v19  ;;  %v9496_v9 = vld [vmem:[#allocation2 + $0x60] sm:$0xf]  ;;  %v7522_v59 = vrot.slane %v9974_v1, 9 }
 0x10c   : > { %v7520_v19 = vrot.slane %v9496_v9, 9  ;;  %v2254_v50 = vsel %vm10224_vm2, %v7519_v27, %v2253_v43  ;;  %v2269_v43 = vrot.slane %v2267_v42, 4  ;;  %v390_v27 = vsel %vm9585_vm6, 0, %v389_v18  ;;  %v7598_v9 = vld [vmem:[%s12004_s1 + $0xa] sm:$0x3]  ;;  %v12114_v42 = vld [vmem:[#allocation12_spill] sm:$0xff] }
 0x10d   : > { %v10441_v22 = vcombine.low %v2254_v50, %v2257_v33  ;;  %v2275_v10 = vsel %vm10224_vm2, %v7522_v59, %v2274_v29  ;;  %391 = vst [vmem:[#allocation2 + $0xc8] sm:$0x1] %v390_v27  ;;  %v12112_v50 = vld [vmem:[#allocation10_spill] sm:$0xff]  ;;  %v12113_v33 = vld [vmem:[#allocation11_spill] sm:$0xff]  ;;  %v12118_v29 = vld [vmem:[#allocation16_spill] sm:$0xff] }
 0x10e   : > { %v2271_v58 = vsel %vm10224_vm2, %v2269_v43, %v2270_v16  ;;  %v12121_v27 = vld [vmem:[#allocation19_spill] sm:$0xff] }
 0x10f   : > { %8374 = vmatmul.mubr.msk.bf16.vlgmr.msra.gmra.mrb[0].mxu0 %vm1677_vm9, %v10376_v31 }
 0x110   : > { %8406 = vmatpush3.bf16.msra.mxu0 %v2619_v14  ;;  %8377 = vmatprep.mubr.msk.bf16.mxu0 %vm1677_vm9, %v10378_v3  ;;  %v2260_v14 = vrot.slane %v9493_v60, 5  ;;  %v2277_v60 = vrot.slane %v9987_v35, 5 }
 0x111   : > { %9431 = vmatprep.subr.msk.bf16.mxu0 %vm1726_vm0, %v10387_v47  ;;  %v10522_v47 = vld [vmem:[#allocation2 + $0xc4] sm:$0xf] }
 0x112   : > { %v2262_v57 = vrot.slane %v2260_v14, 4  ;;  %v2261_v28 = vsel %vm10224_vm2, %v7520_v19, %v2260_v14  ;;  %v2278_v1 = vsel %vm10224_vm2, %v2276_v7, %v2277_v60  ;;  %v10461_v14 = vcombine.low %v2268_v23, %v2271_v58  ;;  %v12120_v7 = vld [vmem:[#allocation18_spill] sm:$0xff] }
 0x113   : > { %v10463_v35 = vcombine.low %v2275_v10, %v2278_v1  ;;  %v2828_v59 = vshrl.u32 %v10522_v47, 16  ;;  %v2824_v60 = vshll.u32 %v10522_v47, 16 }
 0x114   : > { %v2264_v40 = vsel %vm10224_vm2, %v2262_v57, %v2263_v38  ;;  %v1182_v20 = vld [vmem:[#allocation2 + $0xc8] sm:$0x1]  ;;  %v3059_v57 = vsel %vm1726_vm0, %v7598_v9, 0  ;;  %v12111_v38 = vld [vmem:[#allocation9_spill] sm:$0xff] }
 0x115   : > { %v10443_v32 = vcombine.low %v2261_v28, %v2264_v40  ;;  %v1183_v48 = vsel %vm9577_vm3, %v1021_v0, %v1182_v20  ;;  %v12116_v28 = vld [vmem:[#allocation14_spill] sm:$0xff]  ;;  %v12117_v40 = vld [vmem:[#allocation15_spill] sm:$0xff]  ;;  %v2826_v10 = vrot.slane %v2824_v60, 5  ;;  %v2830_v1 = vrot.slane %v2828_v59, 4  ;;  %v12122_v0 = vld [vmem:[#allocation20_spill] sm:$0xff] }
 0x116   : > { %1184 = vst [vmem:[#allocation2 + $0xc8] sm:$0x1] %v1183_v48  ;;  %v12124_v59 = vld [vmem:[#allocation21_spill] sm:$0xff]  ;;  %v12125_v60 = vld [vmem:[#allocation22_spill] sm:$0xff] }
 0x117   : > { %8378 = vmatmul.mubr.msk.bf16.gmra.mrb[4].mxu0 %vm1677_vm9, %v10405_v36  ;;  %v2831_v48 = vor.u32 %v2830_v1, %v2826_v10 }
 0x118   : > { %8381 = vmatprep.mubr.msk.bf16.mxu0 %vm1677_vm9, %v10407_v24 }
 0x119   : > { %v2832_v26 = vrot.slane %v2831_v48, 4  ;;  %v7634_v48 = vld [vmem:[%s12004_s1 + $0xe] sm:$0x3] }
 0x11d   : > { %v1235_v18 = vld [vmem:[#allocation2 + $0xc8] sm:$0x1] }
 0x11f   : > { %8382 = vmatmul.mubr.msk.bf16.gmra.mrb[8].mxu0 %vm1677_vm9, %v10423_v13 }
 0x120   : > { %8385 = vmatprep.mubr.msk.bf16.mxu0 %vm1677_vm9, %v10425_v17 }
 0x127   : > { %8386 = vmatmul.mubr.msk.bf16.gmra.mrb[12].mxu0 %vm1677_vm9, %v10441_v22 }
 0x128   : > { %8389 = vmatprep.mubr.msk.bf16.mxu0 %vm1677_vm9, %v10443_v32 }
 0x12f   : > { %8390 = vmatmul.mubr.msk.bf16.gmra.mrb[16].mxu0 %vm1677_vm9, %v10461_v14 }
 0x130   : > { %8393 = vmatprep.mubr.msk.bf16.mxu0 %vm1677_vm9, %v10463_v35 }
 0x137   : > { %8394 = vmatmul.mubr.msk.bf16.gmra.mrb[20].mxu0 %vm1677_vm9, %v10255_v51 }
 0x138   : > { %8397 = vmatprep.mubr.msk.bf16.mxu0 %vm1677_vm9, %v10261_v54 }
 0x13f   : > { %8398 = vmatmul.mubr.msk.bf16.gmra.mrb[24].mxu0 %vm1677_vm9, %v10267_v6 }
 0x140   : > { %8401 = vmatprep.mubr.msk.bf16.mxu0 %vm1677_vm9, %v10275_v15 }
 0x147   : > { %8402 = vmatmul.mubr.msk.bf16.gmra.mrb[28].mxu0 %vm1677_vm9, %v10283_v45 }
 0x148   : > { %8407 = vmatprep.mubr.msk.bf16.mxu0 %vm1677_vm9, %v10191_v8  ;;  %v10520_v8 = vld [vmem:[#allocation2 + $0xc0] sm:$0xf] }
 0x149   : > { %v10526_v19 = vcombine.low %v10520_v8, %v10522_v47  ;;  %v2815_v43 = vshrl.u32 %v10520_v8, 16  ;;  %v2818_v16 = vshll.u32 %v10520_v8, 16 }
 0x14b   : > { %v2817_v23 = vrot.slane %v2815_v43, 4  ;;  %v2820_v58 = vrot.slane %v2818_v16, 5  ;;  %v12123_v16 = vmov 0  }
 0x14d   : > { %v2821_v20 = vor.u32 %v2820_v58, %v2817_v23 }
 0x14f   : > { %8408 = vmatmul.mubr.msk.bf16.vlgmr.msra.gmra.mrb[0].mxu0 %vm1677_vm9, %v10199_v11  ;;  %v2822_v30 = vrot.slane %v2821_v20, 4  ;;  %v3265_v20 = vsel %vm1726_vm0, %v7616_v46, 0 }
 0x150   : > { %8440 = vmatpush3.bf16.msra.mxu0 %v2847_v61  ;;  %8411 = vmatprep.mubr.msk.bf16.mxu0 %vm1677_vm9, %v10222_v53  ;;  %v2834_v61 = vshll.u32 %v1235_v18, 16 }
 0x151   : > { %9432 = vmatprep.subr.msk.bf16.mxu0 %vm1726_vm0, %v7598_v9  ;;  %v336_v9 = vld [vmem:[#allocation2 + $0xcc] sm:$0x1]  ;;  %v2827_v58 = vsel %vm9666_vm11, %v2822_v30, %v2826_v10 }
 0x152   : > { %v2836_v43 = vrot.slane %v2834_v61, 5  ;;  %v3048_v61 = vrot.slane %v1235_v18, 5  ;;  %v7653_v18 = vld [vmem:[%s12004_s1 + $0x10] sm:$0x3] }
 0x154   : > { %v2837_v1 = vsel %vm9666_vm11, %v2832_v26, %v2836_v43  ;;  %v392_v26 = vld [vmem:[#allocation2 + $0xd4] sm:$0x1] }
 0x155   : > { %v393_v30 = vsel %vm9585_vm6, 0, %v392_v26 }
 0x156   : > { %394 = vst [vmem:[#allocation2 + $0xd4] sm:$0x1] %v393_v30  ;;  %v410_v30 = vld [vmem:[#allocation3 + $0x3c] sm:$0x1] }
 0x157   : > { %8412 = vmatmul.mubr.msk.bf16.gmra.mrb[4].mxu0 %vm1677_vm9, %v10239_v34  ;;  %511 = vst.msk [vmem:[#allocation2 + $0xd4] sm:$0x1] %vm282_vm1, %v12123_v16 }
 0x158   : > { %8415 = vmatprep.mubr.msk.bf16.mxu0 %vm1677_vm9, %v10291_v55 }
 0x15f   : > { %8416 = vmatmul.mubr.msk.bf16.gmra.mrb[8].mxu0 %vm1677_vm9, %v10299_v39 }
 0x160   : > { %8419 = vmatprep.mubr.msk.bf16.mxu0 %vm1677_vm9, %v10307_v12 }
 0x167   : > { %8420 = vmatmul.mubr.msk.bf16.gmra.mrb[12].mxu0 %vm1677_vm9, %v10311_v63 }
 0x168   : > { %8423 = vmatprep.mubr.msk.bf16.mxu0 %vm1677_vm9, %v10319_v41 }
 0x16f   : > { %8424 = vmatmul.mubr.msk.bf16.gmra.mrb[16].mxu0 %vm1677_vm9, %v10323_v4 }
 0x170   : > { %8427 = vmatprep.mubr.msk.bf16.mxu0 %vm1677_vm9, %v10133_v37 }
 0x177   : > { %8428 = vmatmul.mubr.msk.bf16.gmra.mrb[20].mxu0 %vm1677_vm9, %v10137_v49 }
 0x178   : > { %8431 = vmatprep.mubr.msk.bf16.mxu0 %vm1677_vm9, %v10141_v44 }
 0x17f   : > { %8432 = vmatmul.mubr.msk.bf16.gmra.mrb[24].mxu0 %vm1677_vm9, %v10145_v25 }
 0x180   : > { %8435 = vmatprep.mubr.msk.bf16.mxu0 %vm1677_vm9, %v10166_v62 }
 0x187   : > { %8436 = vmatmul.mubr.msk.bf16.gmra.mrb[28].mxu0 %vm1677_vm9, %v10526_v19 }
 0x188   : > { %8441 = vmatprep.mubr.msk.bf16.mxu0 %vm1677_vm9, %v9750_v21  ;;  %v12115_v21 = vld [vmem:[#allocation13_spill] sm:$0xff] }
 0x18f   : > { %8442 = vmatmul.mubr.msk.bf16.vlgmr.msra.gmra.mrb[0].mxu0 %vm1677_vm9, %v12111_v38 }
 0x190   : > { %8474 = vmatpush3.bf16.msra.mxu0 %v3059_v57  ;;  %8445 = vmatprep.mubr.msk.bf16.mxu0 %vm1677_vm9, %v12112_v50  ;;  %v337_v57 = vsel %vm9577_vm3, 0, %v336_v9  ;;  %v10577_v9 = vcombine.low %v2827_v58, %v2837_v1  ;;  %v458_v58 = vld [vmem:[#allocation3 + $0x2c] sm:$0x1] }
 0x191   : > { %9433 = vmatprep.subr.msk.bf16.mxu0 %vm1726_vm0, %v7616_v46  ;;  %338 = vst [vmem:[#allocation2 + $0xcc] sm:$0x1] %v337_v57  ;;  %v7597_v46 = vrot.slane %v10520_v8, 9  ;;  %v3493_v8 = vsel %vm1726_vm0, %v7634_v48, 0  ;;  %v459_v1 = vsel %vm9585_vm6, 0, %v458_v58 }
 0x192   : > { %509 = vst.msk [vmem:[#allocation2 + $0xcc] sm:$0xf] %vm503_vm5, %v12123_v16  ;;  %460 = vst [vmem:[#allocation3 + $0x2c] sm:$0x1] %v459_v1 }
 0x197   : > { %8446 = vmatmul.mubr.msk.bf16.gmra.mrb[4].mxu0 %vm1677_vm9, %v12113_v33 }
 0x198   : > { %8449 = vmatprep.mubr.msk.bf16.mxu0 %vm1677_vm9, %v12114_v42 }
 0x19f   : > { %8450 = vmatmul.mubr.msk.bf16.gmra.mrb[8].mxu0 %vm1677_vm9, %v12115_v21 }
 0x1a0   : > { %8453 = vmatprep.mubr.msk.bf16.mxu0 %vm1677_vm9, %v12116_v28 }
 0x1a7   : > { %8454 = vmatmul.mubr.msk.bf16.gmra.mrb[12].mxu0 %vm1677_vm9, %v12117_v40 }
 0x1a8   : > { %8457 = vmatprep.mubr.msk.bf16.mxu0 %vm1677_vm9, %v12118_v29 }
 0x1af   : > { %8458 = vmatmul.mubr.msk.bf16.gmra.mrb[16].mxu0 %vm1677_vm9, %v12119_v52 }
 0x1b0   : > { %8461 = vmatprep.mubr.msk.bf16.mxu0 %vm1677_vm9, %v12120_v7 }
 0x1b7   : > { %8462 = vmatmul.mubr.msk.bf16.gmra.mrb[20].mxu0 %vm1677_vm9, %v12121_v27 }
 0x1b8   : > { %8465 = vmatprep.mubr.msk.bf16.mxu0 %vm1677_vm9, %v12122_v0 }
 0x1bf   : > { %8466 = vmatmul.mubr.msk.bf16.gmra.mrb[24].mxu0 %vm1677_vm9, %v12124_v59 }
 0x1c0   : > { %8469 = vmatprep.mubr.msk.bf16.mxu0 %vm1677_vm9, %v12125_v60 }
 0x1c7   : > { %8470 = vmatmul.mubr.msk.bf16.gmra.mrb[28].mxu0 %vm1677_vm9, %v10577_v9 }
 0x1c8   : > { %8475 = vmatprep.mubr.msk.bf16.mxu0 %vm1677_vm9, %v10376_v31  ;;  %v3045_v31 = vrot.slane %v10522_v47, 5 }
 0x1ca   : > { %v3047_v10 = vrot.slane %v3045_v31, 4  ;;  %v3046_v57 = vsel %vm10224_vm2, %v7597_v46, %v3045_v31  ;;  %v411_v31 = vsel %vm9577_vm3, 0, %v410_v30  ;;  %v467_v46 = vld [vmem:[#allocation3 + $0x50] sm:$0x1] }
 0x1cb   : > { %412 = vst [vmem:[#allocation3 + $0x3c] sm:$0x1] %v411_v31  ;;  %v491_v30 = vld [vmem:[#allocation3 + $0xb0] sm:$0x1] }
 0x1cc   : > { %v3049_v43 = vsel %vm10224_vm2, %v3047_v10, %v3048_v61  ;;  %v468_v10 = vsel %vm9585_vm6, 0, %v467_v46  ;;  %v464_v61 = vld [vmem:[#allocation3 + $0x44] sm:$0x1]  ;;  %v492_v31 = vsel %vm9585_vm6, 0, %v491_v30 }
 0x1cd   : > { %v10626_v47 = vcombine.low %v3046_v57, %v3049_v43  ;;  %469 = vst [vmem:[#allocation3 + $0x50] sm:$0x1] %v468_v10  ;;  %v465_v57 = vsel %vm9585_vm6, 0, %v464_v61  ;;  %v449_v43 = vld [vmem:[#allocation3 + $0x8] sm:$0x1] }
 0x1ce   : > { %466 = vst [vmem:[#allocation3 + $0x44] sm:$0x1] %v465_v57  ;;  %v488_v46 = vld [vmem:[#allocation3 + $0xa4] sm:$0x1]  ;;  %493 = vst [vmem:[#allocation3 + $0xb0] sm:$0x1] %v492_v31 }
 0x1cf   : > { %8476 = vmatmul.mubr.msk.bf16.vlgmr.msra.gmra.mrb[0].mxu0 %vm1677_vm9, %v10378_v3  ;;  %v489_v10 = vsel %vm9585_vm6, 0, %v488_v46  ;;  %v443_v61 = vld [vmem:[#allocation3 + $0xc0] sm:$0x1] }
 0x1d0   : > { %8508 = vmatpush3.bf16.msra.mxu0 %v3265_v20  ;;  %8479 = vmatprep.mubr.msk.bf16.mxu0 %vm1677_vm9, %v10405_v36  ;;  %v413_v20 = vld [vmem:[#allocation3 + $0x48] sm:$0x1]  ;;  %490 = vst [vmem:[#allocation3 + $0xa4] sm:$0x1] %v489_v10  ;;  %v444_v57 = vsel %vm9577_vm3, 0, %v443_v61 }
 0x1d1   : > { %9434 = vmatprep.subr.msk.bf16.mxu0 %vm1726_vm0, %v7634_v48  ;;  %v414_v26 = vsel %vm9577_vm3, 0, %v413_v20  ;;  %445 = vst [vmem:[#allocation3 + $0xc0] sm:$0x1] %v444_v57 }
 0x1d2   : > { %415 = vst [vmem:[#allocation3 + $0x48] sm:$0x1] %v414_v26 }
 0x1d7   : > { %8480 = vmatmul.mubr.msk.bf16.gmra.mrb[4].mxu0 %vm1677_vm9, %v10407_v24 }
 0x1d8   : > { %8483 = vmatprep.mubr.msk.bf16.mxu0 %vm1677_vm9, %v10423_v13 }
 0x1df   : > { %8484 = vmatmul.mubr.msk.bf16.gmra.mrb[8].mxu0 %vm1677_vm9, %v10425_v17 }
 0x1e0   : > { %8487 = vmatprep.mubr.msk.bf16.mxu0 %vm1677_vm9, %v10441_v22 }
 0x1e7   : > { %8488 = vmatmul.mubr.msk.bf16.gmra.mrb[12].mxu0 %vm1677_vm9, %v10443_v32 }
 0x1e8   : > { %8491 = vmatprep.mubr.msk.bf16.mxu0 %vm1677_vm9, %v10461_v14 }
 0x1ef   : > { %8492 = vmatmul.mubr.msk.bf16.gmra.mrb[16].mxu0 %vm1677_vm9, %v10463_v35 }
 0x1f0   : > { %8495 = vmatprep.mubr.msk.bf16.mxu0 %vm1677_vm9, %v10255_v51 }
 0x1f7   : > { %8496 = vmatmul.mubr.msk.bf16.gmra.mrb[20].mxu0 %vm1677_vm9, %v10261_v54 }
 0x1f8   : > { %8499 = vmatprep.mubr.msk.bf16.mxu0 %vm1677_vm9, %v10267_v6 }
 0x1ff   : > { %8500 = vmatmul.mubr.msk.bf16.gmra.mrb[24].mxu0 %vm1677_vm9, %v10275_v15 }
 0x200   : > { %8503 = vmatprep.mubr.msk.bf16.mxu0 %vm1677_vm9, %v10283_v45 }
 0x207   : > { %8504 = vmatmul.mubr.msk.bf16.gmra.mrb[28].mxu0 %vm1677_vm9, %v10626_v47 }
 0x208   : > { %8509 = vmatprep.mubr.msk.bf16.mxu0 %vm1677_vm9, %v10199_v11  ;;  %v10667_v11 = vld [vmem:[#allocation2 + $0xd0] sm:$0xf] }
 0x20f   : > { %8510 = vmatmul.mubr.msk.bf16.vlgmr.msra.gmra.mrb[0].mxu0 %vm1677_vm9, %v10222_v53 }
 0x210   : > { %8542 = vmatpush3.bf16.msra.mxu0 %v3493_v8  ;;  %8513 = vmatprep.mubr.msk.bf16.mxu0 %vm1677_vm9, %v10239_v34  ;;  %v10665_v34 = vld [vmem:[#allocation2 + $0xcc] sm:$0xf]  ;;  %v419_v8 = vld [vmem:[#allocation3 + $0x60] sm:$0x1] }
 0x211   : > { %9435 = vmatprep.subr.msk.bf16.mxu0 %vm1726_vm0, %v7653_v18  ;;  %v3464_v53 = vshll.u32 %v10665_v34, 16 }
 0x217   : > { %8514 = vmatmul.mubr.msk.bf16.gmra.mrb[4].mxu0 %vm1677_vm9, %v10291_v55  ;;  %v3474_v55 = vshrl.u32 %v10667_v11, 16 }
 0x218   : > { %8517 = vmatprep.mubr.msk.bf16.mxu0 %vm1677_vm9, %v10299_v39  ;;  %v3470_v39 = vshll.u32 %v10667_v11, 16 }
 0x21f   : > { %8518 = vmatmul.mubr.msk.bf16.gmra.mrb[8].mxu0 %vm1677_vm9, %v10307_v12 }
 0x220   : > { %8521 = vmatprep.mubr.msk.bf16.mxu0 %vm1677_vm9, %v10311_v63  ;;  %v3466_v63 = vrot.slane %v3464_v53, 5 }
 0x227   : > { %8522 = vmatmul.mubr.msk.bf16.gmra.mrb[12].mxu0 %vm1677_vm9, %v10319_v41  ;;  %v3472_v41 = vrot.slane %v3470_v39, 5 }
 0x228   : > { %8525 = vmatprep.mubr.msk.bf16.mxu0 %vm1677_vm9, %v10323_v4  ;;  %v3476_v4 = vrot.slane %v3474_v55, 4  ;;  %v470_v55 = vld [vmem:[#allocation3 + $0x5c] sm:$0x1] }
 0x22f   : > { %8526 = vmatmul.mubr.msk.bf16.gmra.mrb[16].mxu0 %vm1677_vm9, %v10133_v37  ;;  %v7617_v37 = vcombine.low %v10665_v34, %v10667_v11 }
 0x230   : > { %8529 = vmatprep.mubr.msk.bf16.mxu0 %vm1677_vm9, %v10137_v49  ;;  %v401_v49 = vld [vmem:[#allocation3 + $0x18] sm:$0x1] }
 0x237   : > { %8530 = vmatmul.mubr.msk.bf16.gmra.mrb[20].mxu0 %vm1677_vm9, %v10141_v44  ;;  %v402_v44 = vsel %vm9577_vm3, 0, %v401_v49 }
 0x238   : > { %8533 = vmatprep.mubr.msk.bf16.mxu0 %vm1677_vm9, %v10145_v25  ;;  %403 = vst [vmem:[#allocation3 + $0x18] sm:$0x1] %v402_v44  ;;  %v3705_v25 = vsel %vm1726_vm0, %v7653_v18, 0  ;;  %v420_v18 = vsel %vm9577_vm3, 0, %v419_v8  ;;  %v497_v8 = vld [vmem:[#allocation3 + $0xc8] sm:$0x1] }
 0x239   : > { %421 = vst [vmem:[#allocation3 + $0x60] sm:$0x1] %v420_v18  ;;  %v494_v18 = vld [vmem:[#allocation3 + $0xbc] sm:$0x1] }
 0x23f   : > { %8534 = vmatmul.mubr.msk.bf16.gmra.mrb[24].mxu0 %vm1677_vm9, %v10166_v62  ;;  %v3461_v62 = vshrl.u32 %v10665_v34, 16 }
 0x240   : > { %8537 = vmatprep.mubr.msk.bf16.mxu0 %vm1677_vm9, %v10526_v19  ;;  %v1238_v19 = vld [vmem:[#allocation2 + $0xd4] sm:$0x1] }
 0x241   : > { %v3463_v12 = vrot.slane %v3461_v62, 4 }
 0x247   : > { %8538 = vmatmul.mubr.msk.bf16.gmra.mrb[28].mxu0 %vm1677_vm9, %v7617_v37  ;;  %v473_v37 = vld [vmem:[#allocation3 + $0x68] sm:$0x1] }
 0x248   : > { %8543 = vmatprep.mubr.msk.bf16.mxu0 %vm1677_vm9, %v12111_v38  ;;  %v3467_v38 = vor.u32 %v3466_v63, %v3463_v12  ;;  %v474_v49 = vsel %vm9585_vm6, 0, %v473_v37  ;;  %v471_v63 = vsel %vm9585_vm6, 0, %v470_v55  ;;  %v10841_v37 = vld [vmem:[%s12008_s5] ss:$0 sm:$0xff] }
 0x249   : > { %475 = vst [vmem:[#allocation3 + $0x68] sm:$0x1] %v474_v49  ;;  %472 = vst [vmem:[#allocation3 + $0x5c] sm:$0x1] %v471_v63 }
 0x24f   : > { %8544 = vmatmul.mubr.msk.bf16.vlgmr.msra.gmra.mrb[0].mxu0 %vm1677_vm9, %v12112_v50  ;;  %v3477_v50 = vor.u32 %v3476_v4, %v3472_v41 }
 0x250   : > { %8576 = vmatpush3.bf16.msra.mxu0 %v3705_v25  ;;  %8547 = vmatprep.mubr.msk.bf16.mxu0 %vm1677_vm9, %v12113_v33  ;;  %v3480_v33 = vshll.u32 %v1238_v19, 16  ;;  %v4547_v25 = vld [vmem:[#allocation3 + $0x4] sm:$0xf] }
 0x251   : > { %v4611_v39 = vshll.u32 %v4547_v25, 16  ;;  %v4615_v12 = vshrl.u32 %v4547_v25, 16 }
 0x257   : > { %8548 = vmatmul.mubr.msk.bf16.gmra.mrb[4].mxu0 %vm1677_vm9, %v12114_v42  ;;  %v3468_v42 = vrot.slane %v3467_v38, 4 }
 0x258   : > { %8551 = vmatprep.mubr.msk.bf16.mxu0 %vm1677_vm9, %v12115_v21  ;;  %v3478_v21 = vrot.slane %v3477_v50, 4  ;;  %v4613_v50 = vrot.slane %v4611_v39, 5 }
 0x25f   : > { %8552 = vmatmul.mubr.msk.bf16.gmra.mrb[8].mxu0 %vm1677_vm9, %v12116_v28  ;;  %v3482_v28 = vrot.slane %v3480_v33, 5  ;;  %v4617_v33 = vrot.slane %v4615_v12, 4 }
 0x260   : > { %8555 = vmatprep.mubr.msk.bf16.mxu0 %vm1677_vm9, %v12117_v40  ;;  %v3473_v40 = vsel %vm9666_vm11, %v3468_v42, %v3472_v41  ;;  %v7705_v41 = vld [vmem:[%s12005_s2 + $0x2] sm:$0x3] }
 0x261   : > { %9436 = vmatprep.subr.msk.bf16.mxu1 %vm1726_vm0, %v7705_v41 }
 0x267   : > { %8556 = vmatmul.mubr.msk.bf16.gmra.mrb[12].mxu0 %vm1677_vm9, %v12118_v29  ;;  %v3483_v29 = vsel %vm9666_vm11, %v3478_v21, %v3482_v28  ;;  %v5084_v21 = vsel %vm1726_vm0, %v7705_v41, 0 }
 0x268   : > { %8559 = vmatprep.mubr.msk.bf16.mxu0 %vm1677_vm9, %v12119_v52  ;;  %v7635_v52 = vcombine.low %v3473_v40, %v3483_v29  ;;  %v4618_v40 = vor.u32 %v4617_v33, %v4613_v50  ;;  %8610 = vmatpush3.bf16.msra.mxu1 %v5084_v21 }
 0x26f   : > { %8560 = vmatmul.mubr.msk.bf16.gmra.mrb[16].mxu0 %vm1677_vm9, %v12120_v7 }
 0x270   : > { %8563 = vmatprep.mubr.msk.bf16.mxu0 %vm1677_vm9, %v12121_v27  ;;  %v404_v27 = vld [vmem:[#allocation3 + $0x24] sm:$0x1] }
 0x277   : > { %8564 = vmatmul.mubr.msk.bf16.gmra.mrb[20].mxu0 %vm1677_vm9, %v12122_v0  ;;  %v405_v0 = vsel %vm9577_vm3, 0, %v404_v27  ;;  %v428_v27 = vld [vmem:[#allocation3 + $0x84] sm:$0x1] }
 0x278   : > { %8567 = vmatprep.mubr.msk.bf16.mxu0 %vm1677_vm9, %v12124_v59  ;;  %v461_v59 = vld [vmem:[#allocation3 + $0x38] sm:$0x1]  ;;  %406 = vst [vmem:[#allocation3 + $0x24] sm:$0x1] %v405_v0  ;;  %v429_v0 = vsel %vm9577_vm3, 0, %v428_v27 }
 0x279   : > { %430 = vst [vmem:[#allocation3 + $0x84] sm:$0x1] %v429_v0  ;;  %v4434_v27 = vld [vmem:[#allocation3 + $0x18] sm:$0xf] }
 0x27f   : > { %8568 = vmatmul.mubr.msk.bf16.gmra.mrb[24].mxu0 %vm1677_vm9, %v12125_v60  ;;  %v462_v60 = vsel %vm9585_vm6, 0, %v461_v59  ;;  %v485_v59 = vld [vmem:[#allocation3 + $0x98] sm:$0x1] }
 0x280   : > { %8571 = vmatprep.mubr.msk.bf16.mxu0 %vm1677_vm9, %v10577_v9  ;;  %463 = vst [vmem:[#allocation3 + $0x38] sm:$0x1] %v462_v60  ;;  %v395_v9 = vld [vmem:[#allocation3] sm:$0x1]  ;;  %v482_v60 = vld [vmem:[#allocation3 + $0x8c] sm:$0x1] }
 0x281   : > { %v396_v48 = vsel %vm9577_vm3, 0, %v395_v9  ;;  %v486_v58 = vsel %vm9585_vm6, 0, %v485_v59  ;;  %v483_v1 = vsel %vm9585_vm6, 0, %v482_v60  ;;  %v437_v9 = vld [vmem:[#allocation3 + $0xa8] sm:$0x1] }
 0x282   : > { %397 = vst [vmem:[#allocation3] sm:$0x1] %v396_v48  ;;  %487 = vst [vmem:[#allocation3 + $0x98] sm:$0x1] %v486_v58  ;;  %v438_v20 = vsel %vm9577_vm3, 0, %v437_v9 }
 0x283   : > { %4539 = vst.msk [vmem:[#allocation3] sm:$0xf] %vm503_vm5, %v12123_v16  ;;  %484 = vst [vmem:[#allocation3 + $0x8c] sm:$0x1] %v483_v1  ;;  %v434_v48 = vld [vmem:[#allocation3 + $0x9c] sm:$0x1] }
 0x284   : > { %439 = vst [vmem:[#allocation3 + $0xa8] sm:$0x1] %v438_v20  ;;  %v435_v26 = vsel %vm9577_vm3, 0, %v434_v48 }
 0x285   : > { %436 = vst [vmem:[#allocation3 + $0x9c] sm:$0x1] %v435_v26 }
 0x287   : > { %8572 = vmatmul.mubr.msk.bf16.gmra.mrb[28].mxu0 %vm1677_vm9, %v7635_v52  ;;  %v425_v52 = vld [vmem:[#allocation3 + $0x78] sm:$0x1] }
 0x288   : > { %8577 = vmatprep.mubr.msk.bf16.mxu0 %vm1677_vm9, %v10378_v3  ;;  %v3691_v3 = vrot.slane %v10667_v11, 5 }
 0x28a   : > { %v4546_v44 = vld [vmem:[#allocation3] sm:$0xf] }
 0x28b   : > { %v4602_v62 = vshrl.u32 %v4546_v44, 16  ;;  %v4605_v53 = vshll.u32 %v4546_v44, 16  ;;  %v10846_v44 = vld [vmem:[%s12009_s6] ss:$0 sm:$0xff] }
 0x28d   : > { %v4607_v38 = vrot.slane %v4605_v53, 5 }
 0x28f   : > { %8578 = vmatmul.mubr.msk.bf16.vlgmr.msra.gmra.mrb[0].mxu0 %vm1677_vm9, %v10405_v36  ;;  %v7652_v36 = vrot.slane %v10665_v34, 9  ;;  %v416_v34 = vld [vmem:[#allocation3 + $0x54] sm:$0x1] }
 0x290   : > { %8581 = vmatprep.mubr.msk.bf16.mxu0 %vm1677_vm9, %v10407_v24  ;;  %v3693_v24 = vrot.slane %v3691_v3, 4  ;;  %v417_v11 = vsel %vm9577_vm3, 0, %v416_v34  ;;  %v498_v34 = vsel %vm9585_vm6, 0, %v497_v8 }
 0x291   : > { %418 = vst [vmem:[#allocation3 + $0x54] sm:$0x1] %v417_v11  ;;  %v495_v11 = vsel %vm9585_vm6, 0, %v494_v18  ;;  %499 = vst [vmem:[#allocation3 + $0xc8] sm:$0x1] %v498_v34 }
 0x292   : > { %496 = vst [vmem:[#allocation3 + $0xbc] sm:$0x1] %v495_v11 }
 0x297   : > { %8582 = vmatmul.mubr.msk.bf16.gmra.mrb[4].mxu0 %vm1677_vm9, %v10423_v13  ;;  %v3694_v13 = vrot.slane %v1238_v19, 5  ;;  %v4604_v19 = vrot.slane %v4602_v62, 4 }
 0x298   : > { %8585 = vmatprep.mubr.msk.bf16.mxu0 %vm1677_vm9, %v10425_v17 }
 0x299   : > { %v4608_v28 = vor.u32 %v4607_v38, %v4604_v19 }
 0x29f   : > { %8586 = vmatmul.mubr.msk.bf16.gmra.mrb[8].mxu0 %vm1677_vm9, %v10441_v22  ;;  %v455_v22 = vld [vmem:[#allocation3 + $0x20] sm:$0x1] }
 0x2a0   : > { %8589 = vmatprep.mubr.msk.bf16.mxu0 %vm1677_vm9, %v10443_v32  ;;  %v452_v32 = vld [vmem:[#allocation3 + $0x14] sm:$0x1] }
 0x2a7   : > { %8590 = vmatmul.mubr.msk.bf16.gmra.mrb[12].mxu0 %vm1677_vm9, %v10461_v14  ;;  %v453_v14 = vsel %vm9585_vm6, 0, %v452_v32 }
 0x2a8   : > { %8593 = vmatprep.mubr.msk.bf16.mxu0 %vm1677_vm9, %v10463_v35  ;;  %454 = vst [vmem:[#allocation3 + $0x14] sm:$0x1] %v453_v14  ;;  %v407_v35 = vld [vmem:[#allocation3 + $0x30] sm:$0x1]  ;;  %v10810_v14 = vld [vmem:[%s12005_s2] sm:$0x3] }
 0x2a9   : > { %v408_v7 = vsel %vm9577_vm3, 0, %v407_v35  ;;  %9437 = vmatprep.subr.msk.bf16.mxu1 %vm1726_vm0, %v10810_v14  ;;  %v431_v35 = vld [vmem:[#allocation3 + $0x90] sm:$0x1] }
 0x2aa   : > { %409 = vst [vmem:[#allocation3 + $0x30] sm:$0x1] %v408_v7  ;;  %v432_v7 = vsel %vm9577_vm3, 0, %v431_v35 }
 0x2ab   : > { %433 = vst [vmem:[#allocation3 + $0x90] sm:$0x1] %v432_v7 }
 0x2af   : > { %8594 = vmatmul.mubr.msk.bf16.gmra.mrb[16].mxu0 %vm1677_vm9, %v10255_v51  ;;  %v3692_v51 = vsel %vm10224_vm2, %v7652_v36, %v3691_v3  ;;  %v426_v3 = vsel %vm9577_vm3, 0, %v425_v52  ;;  %v422_v36 = vld [vmem:[#allocation3 + $0x6c] sm:$0x1]  ;;  %v4431_v18 = vld [vmem:[#allocation3 + $0x14] sm:$0x1] }
 0x2b0   : > { %8597 = vmatprep.mubr.msk.bf16.mxu0 %vm1677_vm9, %v10261_v54  ;;  %v3695_v54 = vsel %vm10224_vm2, %v3693_v24, %v3694_v13  ;;  %v4609_v24 = vrot.slane %v4608_v28, 4  ;;  %v4619_v13 = vrot.slane %v4618_v40, 4  ;;  %427 = vst [vmem:[#allocation3 + $0x78] sm:$0x1] %v426_v3 }
 0x2b7   : > { %8598 = vmatmul.mubr.msk.bf16.gmra.mrb[20].mxu0 %vm1677_vm9, %v10267_v6  ;;  %v7654_v6 = vcombine.low %v3692_v51, %v3695_v54  ;;  %v423_v51 = vsel %vm9577_vm3, 0, %v422_v36  ;;  %v479_v54 = vld [vmem:[#allocation3 + $0x80] sm:$0x1] }
 0x2b8   : > { %8601 = vmatprep.mubr.msk.bf16.mxu0 %vm1677_vm9, %v10275_v15  ;;  %v398_v15 = vld [vmem:[#allocation3 + $0xc] sm:$0x1]  ;;  %424 = vst [vmem:[#allocation3 + $0x6c] sm:$0x1] %v423_v51 }
 0x2b9   : > { %v399_v17 = vsel %vm9577_vm3, 0, %v398_v15  ;;  %v4614_v15 = vsel %vm9666_vm11, %v4609_v24, %v4613_v50 }
 0x2ba   : > { %400 = vst [vmem:[#allocation3 + $0xc] sm:$0x1] %v399_v17 }
 0x2bf   : > { %8602 = vmatmul.mubr.msk.bf16.gmra.mrb[24].mxu0 %vm1677_vm9, %v10283_v45  ;;  %v456_v45 = vsel %vm9585_vm6, 0, %v455_v22 }
 0x2c0   : > { %8605 = vmatprep.mubr.msk.bf16.mxu0 %vm1677_vm9, %v10626_v47  ;;  %457 = vst [vmem:[#allocation3 + $0x20] sm:$0x1] %v456_v45  ;;  %v450_v47 = vsel %vm9585_vm6, 0, %v449_v43  ;;  %v476_v45 = vld [vmem:[#allocation3 + $0x74] sm:$0x1] }
 0x2c1   : > { %451 = vst [vmem:[#allocation3 + $0x8] sm:$0x1] %v450_v47  ;;  %v477_v32 = vsel %vm9585_vm6, 0, %v476_v45  ;;  %v440_v43 = vld [vmem:[#allocation3 + $0xb4] sm:$0x1] }
 0x2c2   : > { %4541 = vst.msk [vmem:[#allocation3 + $0x8] sm:$0x1] %vm282_vm1, %v12123_v16  ;;  %478 = vst [vmem:[#allocation3 + $0x74] sm:$0x1] %v477_v32  ;;  %v441_v47 = vsel %vm9577_vm3, 0, %v440_v43 }
 0x2c3   : > { %442 = vst [vmem:[#allocation3 + $0xb4] sm:$0x1] %v441_v47  ;;  %v4427_v20 = vld [vmem:[#allocation3 + $0xc] sm:$0xf] }
 0x2c7   : > { %8606 = vmatmul.mubr.msk.bf16.gmra.mrb[28].mxu0 %vm1677_vm9, %v7654_v6  ;;  %v480_v6 = vsel %vm9585_vm6, 0, %v479_v54  ;;  %v4438_v46 = vld [vmem:[#allocation3 + $0x20] sm:$0x1] }
 0x2c8   : > { %481 = vst [vmem:[#allocation3 + $0x80] sm:$0x1] %v480_v6 }
 0x2c9   : > { %v4548_v4 = vld [vmem:[#allocation3 + $0x8] sm:$0x1] }
 0x2ca   : > { %v4621_v42 = vshll.u32 %v4548_v4, 16 }
 0x2cc   : > { %v4623_v29 = vrot.slane %v4621_v42, 5 }
 0x2ce   : > { %v4624_v17 = vsel %vm9666_vm11, %v4619_v13, %v4623_v29 }
 0x2cf   : > { %v7706_v22 = vcombine.low %v4614_v15, %v4624_v17 }
 0x2d1   : > { %8611 = vmatprep.mubr.msk.bf16.mxu1 %vm1677_vm9, %v7706_v22 }
 0x362   : > { %v8579_v49 = vpop.f32.mrb[0].mxu0 }
 0x363   : > { %v3909_v25 = vmul.f32 %v8579_v49, %v10841_v37  ;;  %v3741_v62 = vpop.f32.mrb[1].mxu0 }
 0x364   : > { %v3907_v53 = vmul.f32 %v10841_v37, %v3741_v62  ;;  %v8580_v55 = vpop.f32.mrb[2].mxu0 }
 0x365   : > { %v3948_v39 = vadd.f32 %v10846_v44, %v3909_v25  ;;  %v3910_v12 = vmul.f32 %v8580_v55, %v10841_v37  ;;  %v3744_v63 = vpop.f32.mrb[3].mxu0 }
 0x366   : > { %v3946_v41 = vadd.f32 %v10846_v44, %v3907_v53  ;;  %v3908_v4 = vmul.f32 %v10841_v37, %v3744_v63 }
 0x367   : > { %v3980_v19 = vmax.f32 %v3948_v39, 0.0  ;;  %v3949_v38 = vadd.f32 %v10846_v44, %v3910_v12 }
 0x368   : > { %v3978_v50 = vmax.f32 %v3946_v41, 0.0  ;;  %v3947_v33 = vadd.f32 %v10846_v44, %v3908_v4 }
 0x369   : > { %v7967_v42 = vpack.c.bf16 %v3980_v19, %v3980_v19  ;;  %v3981_v21 = vmax.f32 %v3949_v38, 0.0 }
 0x36a   : > { %v7965_v28 = vpack.c.bf16 %v3978_v50, %v3978_v50  ;;  %v3979_v40 = vmax.f32 %v3947_v33, 0.0  ;;  %v8583_v29 = vpop.f32.mrb[4].mxu0 }
 0x36b   : > { %v4124_v52 = vshrl.u32 %v7967_v42, 16  ;;  %v4127_v3 = vshll.u32 %v7967_v42, 16  ;;  %v7968_v36 = vpack.c.bf16 %v3981_v21, %v3981_v21  ;;  %v3913_v24 = vmul.f32 %v8583_v29, %v10841_v37  ;;  %v3757_v13 = vpop.f32.mrb[5].mxu0 }
 0x36c   : > { %v4107_v51 = vshrl.u32 %v7965_v28, 16  ;;  %v4110_v54 = vshll.u32 %v7965_v28, 16  ;;  %v7966_v6 = vpack.c.bf16 %v3979_v40, %v3979_v40  ;;  %v3911_v15 = vmul.f32 %v10841_v37, %v3757_v13  ;;  %v8584_v17 = vpop.f32.mrb[6].mxu0 }
 0x36d   : > { %v4126_v22 = vrot.slane %v4124_v52, 7  ;;  %v4132_v45 = vshrl.u32 %v7968_v36, 16  ;;  %v4135_v32 = vshll.u32 %v7968_v36, 16  ;;  %v3952_v35 = vadd.f32 %v10846_v44, %v3913_v24  ;;  %v3760_v7 = vpop.f32.mrb[7].mxu0 }
 0x36e   : > { %v4109_v0 = vrot.slane %v4107_v51, 7  ;;  %v4115_v59 = vshrl.u32 %v7966_v6, 16  ;;  %v4118_v60 = vshll.u32 %v7966_v6, 16  ;;  %v3950_v58 = vadd.f32 %v10846_v44, %v3911_v15  ;;  %v4441_v15 = vld [vmem:[#allocation3 + $0x24] sm:$0xf] }
 0x36f   : > { %v4129_v1 = vor.u32 %v4127_v3, %v4126_v22  ;;  %v4130_v9 = vrot.slane %v4126_v22, 4  ;;  %v4134_v48 = vrot.slane %v4132_v45, 7  ;;  %v3984_v26 = vmax.f32 %v3952_v35, 0.0  ;;  %v4448_v3 = vld [vmem:[#allocation3 + $0x30] sm:$0xf] }
 0x370   : > { %v4112_v30 = vor.u32 %v4110_v54, %v4109_v0  ;;  %v4113_v31 = vrot.slane %v4109_v0, 4  ;;  %v4117_v10 = vrot.slane %v4115_v59, 7  ;;  %v3982_v61 = vmax.f32 %v3950_v58, 0.0 }
 0x371   : > { %v4435_v43 = vsel %vm9681_vm12, %v4129_v1, %v4434_v27  ;;  %v4137_v47 = vor.u32 %v4135_v32, %v4134_v48  ;;  %v4139_v8 = vrot.slane %v4134_v48, 4  ;;  %v7971_v34 = vpack.c.bf16 %v3984_v26, %v3984_v26 }
 0x372   : > { %4436 = vst [vmem:[#allocation3 + $0x18] sm:$0xf] %v4435_v43  ;;  %v4428_v11 = vsel %vm9681_vm12, %v4112_v30, %v4427_v20  ;;  %v4120_v49 = vor.u32 %v4118_v60, %v4117_v10  ;;  %v4122_v25 = vrot.slane %v4117_v10, 4  ;;  %v7969_v62 = vpack.c.bf16 %v3982_v61, %v3982_v61  ;;  %v8587_v53 = vpop.f32.mrb[8].mxu0 }
 0x373   : > { %4429 = vst [vmem:[#allocation3 + $0xc] sm:$0xf] %v4428_v11  ;;  %v4138_v39 = vsel %vm9688_vm13, %v4130_v9, %v4137_v47  ;;  %v4439_v12 = vsel %vm9577_vm3, %v4139_v8, %v4438_v46  ;;  %v4158_v63 = vshrl.u32 %v7971_v34, 16  ;;  %v4161_v41 = vshll.u32 %v7971_v34, 16  ;;  %v3773_v4 = vpop.f32.mrb[9].mxu0 }
 0x374   : > { %4437 = vst.msk [vmem:[#allocation3 + $0x1c] sm:$0xf] %vm503_vm5, %v4138_v39  ;;  %4440 = vst [vmem:[#allocation3 + $0x20] sm:$0x1] %v4439_v12  ;;  %v4121_v19 = vsel %vm9688_vm13, %v4113_v31, %v4120_v49  ;;  %v4432_v38 = vsel %vm9577_vm3, %v4122_v25, %v4431_v18  ;;  %v4141_v50 = vshrl.u32 %v7969_v62, 16  ;;  %v4144_v33 = vshll.u32 %v7969_v62, 16 }
 0x375   : > { %v8588_v42 = vpop.f32.mrb[10].mxu0  ;;  %4430 = vst.msk [vmem:[#allocation3 + $0x10] sm:$0xf] %vm503_vm5, %v4121_v19  ;;  %4433 = vst [vmem:[#allocation3 + $0x14] sm:$0x1] %v4432_v38  ;;  %v10874_v21 = vrot.slane %v4158_v63, 7  ;;  %v3914_v28 = vmul.f32 %v8584_v17, %v10841_v37  ;;  %v3912_v40 = vmul.f32 %v10841_v37, %v3760_v7  ;;  %v3917_v29 = vmul.f32 %v8587_v53, %v10841_v37 }
 0x376   : > { %v3776_v52 = vpop.f32.mrb[11].mxu0  ;;  %v10879_v36 = vrot.slane %v4141_v50, 7  ;;  %v3915_v24 = vmul.f32 %v10841_v37, %v3773_v4  ;;  %v3918_v13 = vmul.f32 %v8588_v42, %v10841_v37  ;;  %v4452_v50 = vld [vmem:[#allocation3 + $0x38] sm:$0x1] }
 0x377   : > { %v3916_v51 = vmul.f32 %v10841_v37, %v3776_v52  ;;  %v4163_v54 = vor.u32 %v4161_v41, %v10874_v21  ;;  %v4164_v6 = vrot.slane %v10874_v21, 4  ;;  %v3953_v17 = vadd.f32 %v10846_v44, %v3914_v28 }
 0x378   : > { %v3951_v22 = vadd.f32 %v10846_v44, %v3912_v40  ;;  %v4146_v45 = vor.u32 %v4144_v33, %v10879_v36  ;;  %v4147_v32 = vrot.slane %v10879_v36, 4  ;;  %v3956_v35 = vadd.f32 %v10846_v44, %v3917_v29  ;;  %v4445_v33 = vld [vmem:[#allocation3 + $0x2c] sm:$0x1] }
 0x379   : > { %v3954_v7 = vadd.f32 %v10846_v44, %v3915_v24  ;;  %v4449_v27 = vsel %vm9681_vm12, %v4163_v54, %v4448_v3  ;;  %v3985_v0 = vmax.f32 %v3953_v17, 0.0  ;;  %v3957_v60 = vadd.f32 %v10846_v44, %v3918_v13  ;;  %v4462_v24 = vld [vmem:[#allocation3 + $0x48] sm:$0xf]  ;;  %v4455_v13 = vld [vmem:[#allocation3 + $0x3c] sm:$0xf] }
 0x37a   : > { %v3983_v59 = vmax.f32 %v3951_v22, 0.0  ;;  %4450 = vst [vmem:[#allocation3 + $0x30] sm:$0xf] %v4449_v27  ;;  %v4442_v58 = vsel %vm9681_vm12, %v4146_v45, %v4441_v15  ;;  %v3988_v1 = vmax.f32 %v3956_v35, 0.0  ;;  %v3955_v20 = vadd.f32 %v10846_v44, %v3916_v51  ;;  %v8591_v48 = vpop.f32.mrb[12].mxu0 }
 0x37b   : > { %v3986_v9 = vmax.f32 %v3954_v7, 0.0  ;;  %4443 = vst [vmem:[#allocation3 + $0x24] sm:$0xf] %v4442_v58  ;;  %v7972_v26 = vpack.c.bf16 %v3985_v0, %v3985_v0  ;;  %v3989_v31 = vmax.f32 %v3957_v60, 0.0  ;;  %v3921_v46 = vmul.f32 %v8591_v48, %v10841_v37  ;;  %v3789_v10 = vpop.f32.mrb[13].mxu0 }
 0x37c   : > { %v7970_v30 = vpack.c.bf16 %v3983_v59, %v3983_v59  ;;  %v7975_v61 = vpack.c.bf16 %v3988_v1, %v3988_v1  ;;  %v3987_v47 = vmax.f32 %v3955_v20, 0.0  ;;  %v3919_v8 = vmul.f32 %v10841_v37, %v3789_v10  ;;  %v8592_v18 = vpop.f32.mrb[14].mxu0 }
 0x37d   : > { %v7973_v43 = vpack.c.bf16 %v3986_v9, %v3986_v9  ;;  %v4166_v34 = vshrl.u32 %v7972_v26, 16  ;;  %v4169_v11 = vshll.u32 %v7972_v26, 16  ;;  %v3792_v62 = vpop.f32.mrb[15].mxu0  ;;  %v7976_v19 = vpack.c.bf16 %v3989_v31, %v3989_v31 }
 0x37e   : > { %v4149_v49 = vshrl.u32 %v7970_v30, 16  ;;  %v4152_v25 = vshll.u32 %v7970_v30, 16  ;;  %v4192_v53 = vshrl.u32 %v7975_v61, 16  ;;  %v4195_v39 = vshll.u32 %v7975_v61, 16  ;;  %v4466_v61 = vld [vmem:[#allocation3 + $0x50] sm:$0x1] }
 0x37f   : > { %v4175_v12 = vshrl.u32 %v7973_v43, 16  ;;  %v4178_v63 = vshll.u32 %v7973_v43, 16  ;;  %v4168_v41 = vrot.slane %v4166_v34, 7  ;;  %v7974_v38 = vpack.c.bf16 %v3987_v47, %v3987_v47 }
 0x380   : > { %v4151_v4 = vrot.slane %v4149_v49, 7  ;;  %v4194_v42 = vrot.slane %v4192_v53, 7  ;;  %v3960_v28 = vadd.f32 %v10846_v44, %v3921_v46  ;;  %v3958_v40 = vadd.f32 %v10846_v44, %v3919_v8 }
 0x381   : > { %v4177_v21 = vrot.slane %v4175_v12, 7  ;;  %v4171_v29 = vor.u32 %v4169_v11, %v4168_v41  ;;  %v4173_v52 = vrot.slane %v4168_v41, 4  ;;  %v4200_v60 = vshrl.u32 %v7976_v19, 16 }
 0x382   : > { %v4154_v3 = vor.u32 %v4152_v25, %v4151_v4  ;;  %v4156_v36 = vrot.slane %v4151_v4, 4  ;;  %v4197_v51 = vor.u32 %v4195_v39, %v4194_v42  ;;  %v4198_v54 = vrot.slane %v4194_v42, 4  ;;  %v8595_v22 = vpop.f32.mrb[16].mxu0  ;;  %v4459_v25 = vld [vmem:[#allocation3 + $0x44] sm:$0x1] }
 0x383   : > { %v4180_v15 = vor.u32 %v4178_v63, %v4177_v21  ;;  %v4181_v17 = vrot.slane %v4177_v21, 4  ;;  %v4172_v45 = vsel %vm9688_vm13, %v4164_v6, %v4171_v29  ;;  %v4453_v35 = vsel %vm9577_vm3, %v4173_v52, %v4452_v50  ;;  %v3805_v0 = vpop.f32.mrb[17].mxu0  ;;  %v4476_v29 = vld [vmem:[#allocation3 + $0x60] sm:$0xf] }
 0x384   : > { %v4155_v7 = vsel %vm9688_vm13, %v4147_v32, %v4154_v3  ;;  %v4446_v27 = vsel %vm9577_vm3, %v4156_v36, %v4445_v33  ;;  %4451 = vst.msk [vmem:[#allocation3 + $0x34] sm:$0xf] %vm503_vm5, %v4172_v45  ;;  %4454 = vst [vmem:[#allocation3 + $0x38] sm:$0x1] %v4453_v35  ;;  %v4463_v59 = vsel %vm9681_vm12, %v4197_v51, %v4462_v24  ;;  %v4203_v58 = vshll.u32 %v7976_v19, 16  ;;  %v8596_v1 = vpop.f32.mrb[18].mxu0 }
 0x385   : > { %4444 = vst.msk [vmem:[#allocation3 + $0x28] sm:$0xf] %vm503_vm5, %v4155_v7  ;;  %4447 = vst [vmem:[#allocation3 + $0x2c] sm:$0x1] %v4446_v27  ;;  %v4456_v6 = vsel %vm9681_vm12, %v4180_v15, %v4455_v13  ;;  %v4183_v32 = vshrl.u32 %v7974_v38, 16  ;;  %v4186_v9 = vshll.u32 %v7974_v38, 16  ;;  %v3922_v31 = vmul.f32 %v8592_v18, %v10841_v37 }
 0x386   : > { %4464 = vst [vmem:[#allocation3 + $0x48] sm:$0xf] %v4463_v59  ;;  %4457 = vst [vmem:[#allocation3 + $0x3c] sm:$0xf] %v4456_v6  ;;  %v3992_v20 = vmax.f32 %v3960_v28, 0.0  ;;  %v3990_v48 = vmax.f32 %v3958_v40, 0.0  ;;  %v3920_v46 = vmul.f32 %v10841_v37, %v3792_v62  ;;  %v3925_v10 = vmul.f32 %v8595_v22, %v10841_v37 }
 0x387   : > { %v10916_v26 = vpop.f32.mrb[19].mxu0  ;;  %v4202_v30 = vrot.slane %v4200_v60, 7  ;;  %v4185_v43 = vrot.slane %v4183_v32, 7  ;;  %v3923_v34 = vmul.f32 %v10841_v37, %v3805_v0  ;;  %v3961_v53 = vadd.f32 %v10846_v44, %v3922_v31  ;;  %v4469_v15 = vld [vmem:[#allocation3 + $0x54] sm:$0xf] }
 0x388   : > { %v7979_v47 = vpack.c.bf16 %v3992_v20, %v3992_v20  ;;  %v7977_v8 = vpack.c.bf16 %v3990_v48, %v3990_v48  ;;  %v3959_v39 = vadd.f32 %v10846_v44, %v3920_v46  ;;  %v3964_v36 = vadd.f32 %v10846_v44, %v3925_v10  ;;  %v4549_v32 = vld [vmem:[#allocation3 + $0xc] sm:$0xf]  ;;  %v4480_v31 = vld [vmem:[#allocation3 + $0x68] sm:$0x1] }
 0x389   : > { %v4205_v11 = vor.u32 %v4203_v58, %v4202_v30  ;;  %v4207_v49 = vrot.slane %v4202_v30, 4  ;;  %v4188_v12 = vor.u32 %v4186_v9, %v4185_v43  ;;  %v4190_v63 = vrot.slane %v4185_v43, 4 }
 0x38a   : > { %v4226_v18 = vshrl.u32 %v7979_v47, 16  ;;  %v4229_v41 = vshll.u32 %v7979_v47, 16  ;;  %v4209_v19 = vshrl.u32 %v7977_v8, 16  ;;  %v4212_v38 = vshll.u32 %v7977_v8, 16  ;;  %v10928_v50 = vpop.f32.mrb[20].mxu0 }
 0x38b   : > { %v4206_v62 = vsel %vm9688_vm13, %v4198_v54, %v4205_v11  ;;  %v4467_v4 = vsel %vm9577_vm3, %v4207_v49, %v4466_v61  ;;  %v4189_v33 = vsel %vm9688_vm13, %v4181_v17, %v4188_v12  ;;  %v4460_v42 = vsel %vm9577_vm3, %v4190_v63, %v4459_v25  ;;  %v10935_v40 = vpop.f32.mrb[21].mxu0 }
 0x38c   : > { %4465 = vst.msk [vmem:[#allocation3 + $0x4c] sm:$0xf] %vm503_vm5, %v4206_v62  ;;  %4468 = vst [vmem:[#allocation3 + $0x50] sm:$0x1] %v4467_v4  ;;  %v4228_v21 = vrot.slane %v4226_v18, 7  ;;  %v3993_v28 = vmax.f32 %v3961_v53, 0.0  ;;  %v3962_v24 = vadd.f32 %v10846_v44, %v3923_v34  ;;  %v3926_v22 = vmul.f32 %v8596_v1, %v10841_v37 }
 0x38d   : > { %4458 = vst.msk [vmem:[#allocation3 + $0x40] sm:$0xf] %vm503_vm5, %v4189_v33  ;;  %4461 = vst [vmem:[#allocation3 + $0x44] sm:$0x1] %v4460_v42  ;;  %v4211_v52 = vrot.slane %v4209_v19, 7  ;;  %v3991_v3 = vmax.f32 %v3959_v39, 0.0  ;;  %v3924_v61 = vmul.f32 %v10841_v37, %v10916_v26 }
 0x38e   : > { %v10940_v13 = vpop.f32.mrb[22].mxu0  ;;  %v4231_v51 = vor.u32 %v4229_v41, %v4228_v21  ;;  %v4232_v54 = vrot.slane %v4228_v21, 4  ;;  %v7980_v17 = vpack.c.bf16 %v3993_v28, %v3993_v28  ;;  %v3996_v0 = vmax.f32 %v3964_v36, 0.0  ;;  %v4473_v53 = vld [vmem:[#allocation3 + $0x5c] sm:$0x1] }
 0x38f   : > { %v10943_v45 = vpop.f32.mrb[23].mxu0  ;;  %v4214_v35 = vor.u32 %v4212_v38, %v4211_v52  ;;  %v4215_v7 = vrot.slane %v4211_v52, 4  ;;  %v7978_v27 = vpack.c.bf16 %v3991_v3, %v3991_v3  ;;  %v3994_v58 = vmax.f32 %v3962_v24, 0.0  ;;  %v4490_v33 = vld [vmem:[#allocation3 + $0x78] sm:$0xf] }
 0x390   : > { %v4477_v59 = vsel %vm9681_vm12, %v4231_v51, %v4476_v29  ;;  %v4234_v6 = vshrl.u32 %v7980_v17, 16  ;;  %v4237_v60 = vshll.u32 %v7980_v17, 16  ;;  %v7983_v1 = vpack.c.bf16 %v3996_v0, %v3996_v0  ;;  %v4550_v28 = vld [vmem:[#allocation3 + $0x10] sm:$0xf]  ;;  %v4483_v24 = vld [vmem:[#allocation3 + $0x6c] sm:$0xf] }
 0x391   : > { %4478 = vst [vmem:[#allocation3 + $0x60] sm:$0xf] %v4477_v59  ;;  %v4470_v9 = vsel %vm9681_vm12, %v4214_v35, %v4469_v15  ;;  %v4217_v20 = vshrl.u32 %v7978_v27, 16  ;;  %v4220_v48 = vshll.u32 %v7978_v27, 16  ;;  %v7981_v46 = vpack.c.bf16 %v3994_v58, %v3994_v58  ;;  %v4551_v17 = vld [vmem:[#allocation3 + $0x14] sm:$0x1] }
 0x392   : > { %4471 = vst [vmem:[#allocation3 + $0x54] sm:$0xf] %v4470_v9  ;;  %v4236_v30 = vrot.slane %v4234_v6, 7  ;;  %v3965_v10 = vadd.f32 %v10846_v44, %v3926_v22  ;;  %v4260_v47 = vshrl.u32 %v7983_v1, 16  ;;  %v4263_v8 = vshll.u32 %v7983_v1, 16  ;;  %v10952_v11 = vpop.f32.mrb[24].mxu0 }
 0x393   : > { %v4219_v43 = vrot.slane %v4217_v20, 7  ;;  %v4626_v34 = vshrl.u32 %v4549_v32, 16  ;;  %v4243_v39 = vshrl.u32 %v7981_v46, 16  ;;  %v4246_v12 = vshll.u32 %v7981_v46, 16  ;;  %v10954_v63 = vpop.f32.mrb[25].mxu0 }
 0x394   : > { %v4239_v49 = vor.u32 %v4237_v60, %v4236_v30  ;;  %v4241_v25 = vrot.slane %v4236_v30, 4  ;;  %v10956_v62 = vrot.slane %v4260_v47, 7  ;;  %v3997_v4 = vmax.f32 %v3965_v10, 0.0  ;;  %v10958_v19 = vpop.f32.mrb[26].mxu0  ;;  %v10986_v9 = vld [vmem:[#allocation3 + $0x18] sm:$0xf] }
 0x395   : > { %v4222_v18 = vor.u32 %v4220_v48, %v4219_v43  ;;  %v4224_v41 = vrot.slane %v4219_v43, 4  ;;  %v10964_v42 = vrot.slane %v4243_v39, 7  ;;  %v3963_v21 = vadd.f32 %v10846_v44, %v3924_v61  ;;  %v10967_v29 = vpop.f32.mrb[27].mxu0  ;;  %v10988_v20 = vld [vmem:[#allocation3 + $0x1c] sm:$0xf] }
 0x396   : > { %v4240_v26 = vsel %vm9688_vm13, %v4232_v54, %v4239_v49  ;;  %v4481_v38 = vsel %vm9577_vm3, %v4241_v25, %v4480_v31  ;;  %v4265_v36 = vor.u32 %v4263_v8, %v10956_v62  ;;  %v7984_v54 = vpack.c.bf16 %v3997_v4, %v3997_v4  ;;  %v4494_v47 = vld [vmem:[#allocation3 + $0x80] sm:$0x1]  ;;  %v4487_v4 = vld [vmem:[#allocation3 + $0x74] sm:$0x1] }
 0x397   : > { %4479 = vst.msk [vmem:[#allocation3 + $0x64] sm:$0xf] %vm503_vm5, %v4240_v26  ;;  %4482 = vst [vmem:[#allocation3 + $0x68] sm:$0x1] %v4481_v38  ;;  %v4223_v52 = vsel %vm9688_vm13, %v4215_v7, %v4222_v18  ;;  %v4474_v3 = vsel %vm9577_vm3, %v4224_v41, %v4473_v53  ;;  %v4248_v51 = vor.u32 %v4246_v12, %v10964_v42  ;;  %v3995_v15 = vmax.f32 %v3963_v21, 0.0 }
 0x398   : > { %4472 = vst.msk [vmem:[#allocation3 + $0x58] sm:$0xf] %vm503_vm5, %v4223_v52  ;;  %4475 = vst [vmem:[#allocation3 + $0x5c] sm:$0x1] %v4474_v3  ;;  %v10979_v22 = vsel %vm1726_vm0, %v10810_v14, 0  ;;  %v4491_v35 = vsel %vm9681_vm12, %v4265_v36, %v4490_v33  ;;  %v4628_v7 = vrot.slane %v4626_v34, 4 }
 0x399   : > { %v4629_v27 = vshll.u32 %v4549_v32, 16  ;;  %v4635_v0 = vshll.u32 %v4550_v28, 16  ;;  %v4266_v59 = vrot.slane %v10956_v62, 4  ;;  %4492 = vst [vmem:[#allocation3 + $0x78] sm:$0xf] %v4491_v35  ;;  %v4484_v6 = vsel %vm9681_vm12, %v4248_v51, %v4483_v24 }
 0x39a   : > { %v4268_v60 = vshrl.u32 %v7984_v54, 16  ;;  %v7982_v58 = vpack.c.bf16 %v3995_v15, %v3995_v15  ;;  %4485 = vst [vmem:[#allocation3 + $0x6c] sm:$0xf] %v4484_v6  ;;  %v4639_v1 = vshrl.u32 %v4550_v28, 16  ;;  %v4645_v30 = vshll.u32 %v4551_v17, 16  ;;  %v10990_v31 = vpop.f32.mrb[28].mxu0 }
 0x39b   : > { %v4631_v14 = vrot.slane %v4629_v27, 5  ;;  %v4637_v48 = vrot.slane %v4635_v0, 5  ;;  %v4249_v32 = vrot.slane %v10964_v42, 4  ;;  %v4271_v10 = vshll.u32 %v7984_v54, 16  ;;  %v10993_v43 = vpop.f32.mrb[29].mxu0 }
 0x39c   : > { %v4270_v46 = vrot.slane %v4268_v60, 7  ;;  %v4251_v61 = vshrl.u32 %v7982_v58, 16  ;;  %v4254_v8 = vshll.u32 %v7982_v58, 16  ;;  %v4641_v49 = vrot.slane %v4639_v1, 4  ;;  %v10995_v53 = vpop.f32.mrb[30].mxu0 }
 0x39d   : > { %v4632_v34 = vor.u32 %v4631_v14, %v4628_v7  ;;  %v4647_v25 = vrot.slane %v4645_v30, 5  ;;  %v4650_v41 = vshrl.u32 %v10986_v9, 16  ;;  %v10998_v62 = vpop.f32.mrb[31].mxu0  ;;  %v4653_v33 = vshll.u32 %v10986_v9, 16  ;;  %v4554_v36 = vld [vmem:[#allocation3 + $0x20] sm:$0x1] }
 0x39e   : > { %v4273_v39 = vor.u32 %v4271_v10, %v4270_v46  ;;  %v4275_v12 = vrot.slane %v4270_v46, 4  ;;  %v4253_v18 = vrot.slane %v4251_v61, 7  ;;  %v4642_v38 = vor.u32 %v4641_v49, %v4637_v48  ;;  %v11019_v58 = vld [vmem:[#allocation3 + $0x24] sm:$0xf] }
 0x39f   : > { %v4633_v26 = vrot.slane %v4632_v34, 4  ;;  %v4659_v42 = vshll.u32 %v10988_v20, 16  ;;  %v4652_v54 = vrot.slane %v4650_v41, 4  ;;  %v4655_v15 = vrot.slane %v4653_v33, 5 }
 0x3a0   : > { %v4274_v21 = vsel %vm9688_vm13, %v4266_v59, %v4273_v39  ;;  %v4495_v28 = vsel %vm9577_vm3, %v4275_v12, %v4494_v47  ;;  %v4256_v52 = vor.u32 %v4254_v8, %v4253_v18  ;;  %v4258_v3 = vrot.slane %v4253_v18, 4  ;;  %v11039_v8 = vld [vmem:[#allocation3 + $0x28] sm:$0xf] }
 0x3a1   : > { %4493 = vst.msk [vmem:[#allocation3 + $0x7c] sm:$0xf] %vm503_vm5, %v4274_v21  ;;  %4496 = vst [vmem:[#allocation3 + $0x80] sm:$0x1] %v4495_v28  ;;  %v4638_v24 = vsel %vm9666_vm11, %v4633_v26, %v4637_v48  ;;  %v4643_v51 = vrot.slane %v4642_v38, 4  ;;  %v4661_v7 = vrot.slane %v4659_v42, 5  ;;  %v4656_v59 = vor.u32 %v4655_v15, %v4652_v54 }
 0x3a2   : > { %v4257_v17 = vsel %vm9688_vm13, %v4249_v32, %v4256_v52  ;;  %v4488_v35 = vsel %vm9577_vm3, %v4258_v3, %v4487_v4  ;;  %v4663_v27 = vshrl.u32 %v10988_v20, 16  ;;  %v4669_v6 = vshll.u32 %v4554_v36, 16  ;;  %v4504_v54 = vld [vmem:[#allocation3 + $0x90] sm:$0xf] }
 0x3a3   : > { %4486 = vst.msk [vmem:[#allocation3 + $0x70] sm:$0xf] %vm503_vm5, %v4257_v17  ;;  %4489 = vst [vmem:[#allocation3 + $0x74] sm:$0x1] %v4488_v35  ;;  %v4648_v0 = vsel %vm9666_vm11, %v4643_v51, %v4647_v25  ;;  %v3929_v60 = vmul.f32 %v10928_v50, %v10841_v37  ;;  %v3927_v1 = vmul.f32 %v10841_v37, %v10935_v40  ;;  %v4657_v32 = vrot.slane %v4656_v59, 4 }
 0x3a4   : > { %v11021_v14 = vcombine.low %v4638_v24, %v4648_v0  ;;  %v4665_v48 = vrot.slane %v4663_v27, 4  ;;  %v3930_v30 = vmul.f32 %v10940_v13, %v10841_v37  ;;  %v4671_v46 = vrot.slane %v4669_v6, 5  ;;  %v11033_v50 = vld [vmem:[%s12005_s2 + $0x4] sm:$0x3]  ;;  %v4497_v0 = vld [vmem:[#allocation3 + $0x84] sm:$0xf] }
 0x3a5   : > { %v3968_v10 = vadd.f32 %v10846_v44, %v3929_v60  ;;  %v3928_v61 = vmul.f32 %v10841_v37, %v10943_v45  ;;  %v3966_v40 = vadd.f32 %v10846_v44, %v3927_v1  ;;  %v4674_v34 = vshrl.u32 %v11019_v58, 16 }
 0x3a6   : > { %12129 = vst [vmem:[#allocation9_spill] sm:$0xff] %v11021_v14  ;;  %8612 = vmatmul.mubr.msk.bf16.vlgmr.msra.gmra.mrb[0].mxu1 %vm1677_vm9, %v11021_v14  ;;  %v4666_v47 = vor.u32 %v4665_v48, %v4661_v7  ;;  %v3969_v13 = vadd.f32 %v10846_v44, %v3930_v30  ;;  %v4662_v45 = vsel %vm9666_vm11, %v4657_v32, %v4661_v7  ;;  %v4677_v39 = vshll.u32 %v11019_v58, 16  ;;  %v4508_v30 = vld [vmem:[#allocation3 + $0x98] sm:$0x1] }
 0x3a7   : > { %8644 = vmatpush3.bf16.msra.mxu1 %v10979_v22  ;;  %v4000_v49 = vmax.f32 %v3968_v10, 0.0  ;;  %v3967_v25 = vadd.f32 %v10846_v44, %v3928_v61  ;;  %v3998_v18 = vmax.f32 %v3966_v40, 0.0  ;;  %v4676_v4 = vrot.slane %v4674_v34, 4  ;;  %v4501_v40 = vld [vmem:[#allocation3 + $0x8c] sm:$0x1] }
 0x3a8   : > { %v4667_v12 = vrot.slane %v4666_v47, 4  ;;  %v4001_v41 = vmax.f32 %v3969_v13, 0.0  ;;  %9438 = vmatprep.subr.msk.bf16.mxu1 %vm1726_vm0, %v11033_v50  ;;  %v4679_v33 = vrot.slane %v4677_v39, 5  ;;  %v4683_v22 = vshll.u32 %v11039_v8, 16  ;;  %v4557_v39 = vld [vmem:[#allocation3 + $0x2c] sm:$0x1] }
 0x3a9   : > { %v7987_v26 = vpack.c.bf16 %v4000_v49, %v4000_v49  ;;  %v3999_v38 = vmax.f32 %v3967_v25, 0.0  ;;  %v7985_v21 = vpack.c.bf16 %v3998_v18, %v3998_v18  ;;  %v4687_v52 = vshrl.u32 %v11039_v8, 16 }
 0x3aa   : > { %v4672_v42 = vsel %vm9666_vm11, %v4667_v12, %v4671_v46  ;;  %v7988_v28 = vpack.c.bf16 %v4001_v41, %v4001_v41  ;;  %v4680_v60 = vor.u32 %v4679_v33, %v4676_v4  ;;  %v4685_v32 = vrot.slane %v4683_v22, 5  ;;  %v11057_v12 = vld [vmem:[#allocation3 + $0x30] sm:$0xf] }
 0x3ab   : > { %v11053_v3 = vcombine.low %v4662_v45, %v4672_v42  ;;  %v4294_v36 = vshrl.u32 %v7987_v26, 16  ;;  %v4297_v24 = vshll.u32 %v7987_v26, 16  ;;  %v7986_v51 = vpack.c.bf16 %v3999_v38, %v3999_v38  ;;  %v11063_v38 = vld [vmem:[#allocation3 + $0x34] sm:$0xf] }
 0x3ac   : > { %v4277_v15 = vshrl.u32 %v7985_v21, 16  ;;  %v4280_v17 = vshll.u32 %v7985_v21, 16  ;;  %v4302_v35 = vshrl.u32 %v7988_v28, 16  ;;  %v4305_v7 = vshll.u32 %v7988_v28, 16  ;;  %v11071_v28 = vld [vmem:[#allocation3 + $0x38] sm:$0x1] }
 0x3ad   : > { %12130 = vst [vmem:[#allocation10_spill] sm:$0xff] %v11053_v3  ;;  %8615 = vmatprep.mubr.msk.bf16.mxu1 %vm1677_vm9, %v11053_v3  ;;  %v4296_v27 = vrot.slane %v4294_v36, 7  ;;  %v4285_v59 = vshrl.u32 %v7986_v51, 16  ;;  %v4288_v6 = vshll.u32 %v7986_v51, 16  ;;  %v4689_v46 = vrot.slane %v4687_v52, 4 }
 0x3ae   : > { %v4279_v48 = vrot.slane %v4277_v15, 7  ;;  %v4304_v1 = vrot.slane %v4302_v35, 7  ;;  %v4681_v13 = vrot.slane %v4680_v60, 4  ;;  %v4698_v51 = vshrl.u32 %v11057_v12, 16 }
 0x3af   : > { %v4299_v10 = vor.u32 %v4297_v24, %v4296_v27  ;;  %v4300_v61 = vrot.slane %v4296_v27, 4  ;;  %v4287_v47 = vrot.slane %v4285_v59, 7  ;;  %v4690_v21 = vor.u32 %v4689_v46, %v4685_v32 }
 0x3b0   : > { %v4282_v34 = vor.u32 %v4280_v17, %v4279_v48  ;;  %v4283_v45 = vrot.slane %v4279_v48, 4  ;;  %v4307_v49 = vor.u32 %v4305_v7, %v4304_v1  ;;  %v4309_v25 = vrot.slane %v4304_v1, 4 }
 0x3b1   : > { %v4505_v18 = vsel %vm9681_vm12, %v4299_v10, %v4504_v54  ;;  %v4290_v41 = vor.u32 %v4288_v6, %v4287_v47  ;;  %v4292_v4 = vrot.slane %v4287_v47, 4  ;;  %v4686_v26 = vsel %vm9666_vm11, %v4681_v13, %v4685_v32 }
 0x3b2   : > { %4506 = vst [vmem:[#allocation3 + $0x90] sm:$0xf] %v4505_v18  ;;  %v4498_v33 = vsel %vm9681_vm12, %v4282_v34, %v4497_v0  ;;  %v4308_v22 = vsel %vm9688_vm13, %v4300_v61, %v4307_v49  ;;  %v4509_v42 = vsel %vm9577_vm3, %v4309_v25, %v4508_v30  ;;  %v4693_v24 = vshll.u32 %v4557_v39, 16  ;;  %v11088_v30 = vld [vmem:[#allocation3 + $0x3c] sm:$0xf] }
 0x3b3   : > { %4499 = vst [vmem:[#allocation3 + $0x84] sm:$0xf] %v4498_v33  ;;  %4507 = vst.msk [vmem:[#allocation3 + $0x94] sm:$0xf] %vm503_vm5, %v4308_v22  ;;  %v4291_v52 = vsel %vm9688_vm13, %v4283_v45, %v4290_v41  ;;  %v4502_v36 = vsel %vm9577_vm3, %v4292_v4, %v4501_v40  ;;  %v4691_v54 = vrot.slane %v4690_v21, 4  ;;  %v4701_v15 = vshll.u32 %v11057_v12, 16 }
 0x3b4   : > { %4510 = vst [vmem:[#allocation3 + $0x98] sm:$0x1] %v4509_v42  ;;  %4500 = vst.msk [vmem:[#allocation3 + $0x88] sm:$0xf] %vm503_vm5, %v4291_v52  ;;  %v4707_v17 = vshll.u32 %v11063_v38, 16  ;;  %v4711_v35 = vshrl.u32 %v11063_v38, 16  ;;  %v3933_v59 = vmul.f32 %v10952_v11, %v10841_v37  ;;  %v3931_v1 = vmul.f32 %v10841_v37, %v10954_v63 }
 0x3b5   : > { %4503 = vst [vmem:[#allocation3 + $0x8c] sm:$0x1] %v4502_v36  ;;  %v4695_v7 = vrot.slane %v4693_v24, 5  ;;  %v4700_v27 = vrot.slane %v4698_v51, 4  ;;  %v4717_v0 = vshll.u32 %v11071_v28, 16  ;;  %v4703_v6 = vrot.slane %v4701_v15, 5 }
 0x3b6   : > { %v4709_v60 = vrot.slane %v4707_v17, 5  ;;  %v4713_v48 = vrot.slane %v4711_v35, 4  ;;  %v3972_v10 = vadd.f32 %v10846_v44, %v3933_v59  ;;  %v3934_v61 = vmul.f32 %v10958_v19, %v10841_v37  ;;  %v11110_v42 = vld [vmem:[#allocation3 + $0x40] sm:$0xf] }
 0x3b7   : > { %v4696_v32 = vsel %vm9666_vm11, %v4691_v54, %v4695_v7  ;;  %v4719_v46 = vrot.slane %v4717_v0, 5  ;;  %v4704_v11 = vor.u32 %v4703_v6, %v4700_v27  ;;  %v3970_v13 = vadd.f32 %v10846_v44, %v3931_v1  ;;  %v4518_v54 = vld [vmem:[#allocation3 + $0xa8] sm:$0xf]  ;;  %v4511_v27 = vld [vmem:[#allocation3 + $0x9c] sm:$0xf] }
 0x3b8   : > { %v11095_v47 = vcombine.low %v4686_v26, %v4696_v32  ;;  %v4714_v40 = vor.u32 %v4713_v48, %v4709_v60  ;;  %v4004_v34 = vmax.f32 %v3972_v10, 0.0  ;;  %v3973_v63 = vadd.f32 %v10846_v44, %v3934_v61  ;;  %v4522_v48 = vld [vmem:[#allocation3 + $0xb0] sm:$0x1] }
 0x3b9   : > { %v3932_v45 = vmul.f32 %v10841_v37, %v10967_v29  ;;  %v4722_v49 = vshrl.u32 %v11088_v30, 16  ;;  %v4705_v25 = vrot.slane %v4704_v11, 4  ;;  %v4002_v19 = vmax.f32 %v3970_v13, 0.0 }
 0x3ba   : > { %12131 = vst [vmem:[#allocation11_spill] sm:$0xff] %v11095_v47  ;;  %8616 = vmatmul.mubr.msk.bf16.gmra.mrb[4].mxu1 %vm1677_vm9, %v11095_v47  ;;  %v4715_v39 = vrot.slane %v4714_v40, 4  ;;  %v4725_v18 = vshll.u32 %v11088_v30, 16  ;;  %v7991_v41 = vpack.c.bf16 %v4004_v34, %v4004_v34  ;;  %v4005_v4 = vmax.f32 %v3973_v63, 0.0  ;;  %v11118_v40 = vld [vmem:[#allocation3 + $0x44] sm:$0x1] }
 0x3bb   : > { %v3971_v26 = vadd.f32 %v10846_v44, %v3932_v45  ;;  %v4724_v33 = vrot.slane %v4722_v49, 4  ;;  %v4710_v22 = vsel %vm9666_vm11, %v4705_v25, %v4709_v60  ;;  %v7989_v29 = vpack.c.bf16 %v4002_v19, %v4002_v19  ;;  %12133 = vst [vmem:[#allocation13_spill] sm:$0xff] %v11118_v40  ;;  %v11120_v25 = vld [vmem:[#allocation3 + $0x48] sm:$0xf] }
 0x3bc   : > { %v4720_v37 = vsel %vm9666_vm11, %v4715_v39, %v4719_v46  ;;  %v4727_v21 = vrot.slane %v4725_v18, 5  ;;  %v4328_v36 = vshrl.u32 %v7991_v41, 16  ;;  %v4331_v24 = vshll.u32 %v7991_v41, 16 }
 0x3bd   : > { %v11112_v52 = vcombine.low %v4710_v22, %v4720_v37  ;;  %v7992_v51 = vpack.c.bf16 %v4005_v4, %v4005_v4  ;;  %v4311_v15 = vshrl.u32 %v7989_v29, 16  ;;  %v4314_v17 = vshll.u32 %v7989_v29, 16  ;;  %v11129_v37 = vld [vmem:[#allocation3 + $0x4c] sm:$0xf] }
 0x3be   : > { %v4003_v44 = vmax.f32 %v3971_v26, 0.0  ;;  %v4728_v35 = vor.u32 %v4727_v21, %v4724_v33  ;;  %v4330_v7 = vrot.slane %v4328_v36, 7  ;;  %v4731_v6 = vshll.u32 %v11110_v42, 16  ;;  %v4515_v36 = vld [vmem:[#allocation3 + $0xa4] sm:$0x1] }
 0x3bf   : > { %12132 = vst [vmem:[#allocation12_spill] sm:$0xff] %v11112_v52  ;;  %8619 = vmatprep.mubr.msk.bf16.mxu1 %vm1677_vm9, %v11112_v52  ;;  %v4336_v0 = vshrl.u32 %v7992_v51, 16  ;;  %v4339_v59 = vshll.u32 %v7992_v51, 16  ;;  %v4313_v60 = vrot.slane %v4311_v15, 7  ;;  %v4735_v46 = vshrl.u32 %v11110_v42, 16 }
 0x3c0   : > { %v7990_v1 = vpack.c.bf16 %v4003_v44, %v4003_v44  ;;  %v4729_v32 = vrot.slane %v4728_v35, 4  ;;  %v4333_v10 = vor.u32 %v4331_v24, %v4330_v7  ;;  %v4334_v61 = vrot.slane %v4330_v7, 4  ;;  %v11135_v24 = vld [vmem:[#allocation3 + $0x50] sm:$0x1] }
 0x3c1   : > { %v4338_v11 = vrot.slane %v4336_v0, 7  ;;  %v4733_v13 = vrot.slane %v4731_v6, 5  ;;  %v4316_v34 = vor.u32 %v4314_v17, %v4313_v60  ;;  %v4317_v63 = vrot.slane %v4313_v60, 4  ;;  %12134 = vst [vmem:[#allocation14_spill] sm:$0xff] %v11135_v24 }
 0x3c2   : > { %v4319_v45 = vshrl.u32 %v7990_v1, 16  ;;  %v4322_v49 = vshll.u32 %v7990_v1, 16  ;;  %v4519_v39 = vsel %vm9681_vm12, %v4333_v10, %v4518_v54  ;;  %v4737_v33 = vrot.slane %v4735_v46, 4 }
 0x3c3   : > { %v4341_v19 = vor.u32 %v4339_v59, %v4338_v11  ;;  %v4343_v18 = vrot.slane %v4338_v11, 4  ;;  %v4734_v41 = vsel %vm9666_vm11, %v4729_v32, %v4733_v13  ;;  %4520 = vst [vmem:[#allocation3 + $0xa8] sm:$0xf] %v4519_v39  ;;  %v4512_v4 = vsel %vm9681_vm12, %v4316_v34, %v4511_v27 }
 0x3c4   : > { %v4321_v26 = vrot.slane %v4319_v45, 7  ;;  %v4741_v22 = vshll.u32 %v11118_v40, 16  ;;  %4513 = vst [vmem:[#allocation3 + $0x9c] sm:$0xf] %v4512_v4  ;;  %v4746_v51 = vshrl.u32 %v11120_v25, 16  ;;  %v4749_v54 = vshll.u32 %v11120_v25, 16 }
 0x3c5   : > { %v4342_v29 = vsel %vm9688_vm13, %v4334_v61, %v4341_v19  ;;  %v4523_v21 = vsel %vm9577_vm3, %v4343_v18, %v4522_v48  ;;  %v4738_v44 = vor.u32 %v4737_v33, %v4733_v13  ;;  %v4755_v0 = vshll.u32 %v11129_v37, 16  ;;  %v9498_v61 = vld [vmem:[%s12008_s5] ss:$0 sm:$0xff]  ;;  %v11152_v13 = vld [vmem:[#allocation3 + $0x54] sm:$0xf] }
 0x3c6   : > { %4521 = vst.msk [vmem:[#allocation3 + $0xac] sm:$0xf] %vm503_vm5, %v4342_v29  ;;  %4524 = vst [vmem:[#allocation3 + $0xb0] sm:$0x1] %v4523_v21  ;;  %v4324_v15 = vor.u32 %v4322_v49, %v4321_v26  ;;  %v4326_v17 = vrot.slane %v4321_v26, 4  ;;  %v4743_v35 = vrot.slane %v4741_v22, 5  ;;  %v3937_v11 = vmul.f32 %v9498_v61, %v10990_v31 }
 0x3c7   : > { %v4748_v7 = vrot.slane %v4746_v51, 4  ;;  %v4751_v27 = vrot.slane %v4749_v54, 5  ;;  %v4759_v59 = vshrl.u32 %v11129_v37, 16  ;;  %v4739_v48 = vrot.slane %v4738_v44, 4  ;;  %v9499_v4 = vld [vmem:[%s12009_s6] ss:$0 sm:$0xff] }
 0x3c8   : > { %v4325_v6 = vsel %vm9688_vm13, %v4317_v63, %v4324_v15  ;;  %v4516_v60 = vsel %vm9577_vm3, %v4326_v17, %v4515_v36  ;;  %v4765_v1 = vshll.u32 %v11135_v24, 16  ;;  %v4757_v46 = vrot.slane %v4755_v0, 5  ;;  %v11164_v29 = vld [vmem:[#allocation3 + $0x58] sm:$0xf] }
 0x3c9   : > { %4514 = vst.msk [vmem:[#allocation3 + $0xa0] sm:$0xf] %vm503_vm5, %v4325_v6  ;;  %4517 = vst [vmem:[#allocation3 + $0xa4] sm:$0x1] %v4516_v60  ;;  %v4752_v32 = vor.u32 %v4751_v27, %v4748_v7  ;;  %v4761_v10 = vrot.slane %v4759_v59, 4  ;;  %v4744_v34 = vsel %vm9666_vm11, %v4739_v48, %v4743_v35  ;;  %v3935_v45 = vmul.f32 %v9498_v61, %v10993_v43 }
 0x3ca   : > { %v4767_v63 = vrot.slane %v4765_v1, 5  ;;  %v3938_v49 = vmul.f32 %v9498_v61, %v10995_v53  ;;  %v11158_v39 = vcombine.low %v4734_v41, %v4744_v34  ;;  %v3976_v26 = vadd.f32 %v9499_v4, %v3937_v11  ;;  %v11177_v60 = vld [vmem:[#allocation3 + $0x60] sm:$0xf] }
 0x3cb   : > { %v4753_v19 = vrot.slane %v4752_v32, 4  ;;  %v4762_v18 = vor.u32 %v4761_v10, %v4757_v46  ;;  %v3974_v31 = vadd.f32 %v9499_v4, %v3935_v45  ;;  %v3936_v22 = vmul.f32 %v9498_v61, %v10998_v62  ;;  %v11179_v32 = vld [vmem:[#allocation3 + $0x5c] sm:$0x1] }
 0x3cc   : > { %12135 = vst [vmem:[#allocation15_spill] sm:$0xff] %v11158_v39  ;;  %v3977_v33 = vadd.f32 %v9499_v4, %v3938_v49  ;;  %v4770_v21 = vshrl.u32 %v11152_v13, 16  ;;  %8620 = vmatmul.mubr.msk.bf16.gmra.mrb[8].mxu1 %vm1677_vm9, %v11158_v39  ;;  %v4008_v41 = vmax.f32 %v3976_v26, 0.0  ;;  %v4773_v36 = vshll.u32 %v11152_v13, 16  ;;  %v4532_v49 = vld [vmem:[#allocation3 + $0xc0] sm:$0xf] }
 0x3cd   : > { %v4758_v43 = vsel %vm9666_vm11, %v4753_v19, %v4757_v46  ;;  %v4763_v53 = vrot.slane %v4762_v18, 4  ;;  %v4006_v51 = vmax.f32 %v3974_v31, 0.0  ;;  %v3975_v15 = vadd.f32 %v9499_v4, %v3936_v22  ;;  %v4525_v31 = vld [vmem:[#allocation3 + $0xb4] sm:$0xf] }
 0x3ce   : > { %v4009_v54 = vmax.f32 %v3977_v33, 0.0  ;;  %v4772_v17 = vrot.slane %v4770_v21, 4  ;;  %v7995_v44 = vpack.c.bf16 %v4008_v41, %v4008_v41  ;;  %v4775_v35 = vrot.slane %v4773_v36, 5  ;;  %v4536_v41 = vld [vmem:[#allocation3 + $0xc8] sm:$0x1] }
 0x3cf   : > { %v4768_v62 = vsel %vm9666_vm11, %v4763_v53, %v4767_v63  ;;  %v4779_v7 = vshll.u32 %v11164_v29, 16  ;;  %v7993_v0 = vpack.c.bf16 %v4006_v51, %v4006_v51  ;;  %v4007_v6 = vmax.f32 %v3975_v15, 0.0 }
 0x3d0   : > { %v11175_v27 = vcombine.low %v4758_v43, %v4768_v62  ;;  %v7996_v59 = vpack.c.bf16 %v4009_v54, %v4009_v54  ;;  %v4362_v48 = vshrl.u32 %v7995_v44, 16  ;;  %v4365_v1 = vshll.u32 %v7995_v44, 16 }
 0x3d1   : > { %v4776_v46 = vor.u32 %v4775_v35, %v4772_v17  ;;  %v11181_v10 = vrot.slane %v4779_v7, 5  ;;  %v4345_v61 = vshrl.u32 %v7993_v0, 16  ;;  %v4348_v11 = vshll.u32 %v7993_v0, 16 }
 0x3d2   : > { %12136 = vst [vmem:[#allocation16_spill] sm:$0xff] %v11175_v27  ;;  %8623 = vmatprep.mubr.msk.bf16.mxu1 %vm1677_vm9, %v11175_v27  ;;  %v4370_v34 = vshrl.u32 %v7996_v59, 16  ;;  %v4373_v63 = vshll.u32 %v7996_v59, 16  ;;  %v4364_v45 = vrot.slane %v4362_v48, 7  ;;  %v7994_v19 = vpack.c.bf16 %v4007_v6, %v4007_v6  ;;  %v11193_v59 = vld [vmem:[#allocation3 + $0x64] sm:$0xf] }
 0x3d3   : > { %v4777_v18 = vrot.slane %v4776_v46, 4  ;;  %v4783_v4 = vshrl.u32 %v11164_v29, 16  ;;  %v4347_v26 = vrot.slane %v4345_v61, 7  ;;  %v4789_v22 = vshll.u32 %v11179_v32, 16  ;;  %v11195_v6 = vld [vmem:[#allocation3 + $0x68] sm:$0x1] }
 0x3d4   : > { %v4372_v33 = vrot.slane %v4370_v34, 7  ;;  %v4794_v21 = vshrl.u32 %v11177_v60, 16  ;;  %v4367_v43 = vor.u32 %v4365_v1, %v4364_v45  ;;  %v4368_v53 = vrot.slane %v4364_v45, 4  ;;  %v4529_v61 = vld [vmem:[#allocation3 + $0xbc] sm:$0x1] }
 0x3d5   : > { %v4353_v36 = vshrl.u32 %v7994_v19, 16  ;;  %v4356_v51 = vshll.u32 %v7994_v19, 16  ;;  %v4350_v54 = vor.u32 %v4348_v11, %v4347_v26  ;;  %v4351_v15 = vrot.slane %v4347_v26, 4  ;;  %v11203_v34 = vld [vmem:[#allocation3 + $0x6c] sm:$0xf] }
 0x3d6   : > { %v4375_v17 = vor.u32 %v4373_v63, %v4372_v33  ;;  %v4377_v62 = vrot.slane %v4372_v33, 4  ;;  %v4533_v44 = vsel %vm9681_vm12, %v4367_v43, %v4532_v49  ;;  %v4782_v7 = vsel %vm9666_vm11, %v4777_v18, %v11181_v10 }
 0x3d7   : > { %v4355_v35 = vrot.slane %v4353_v36, 7  ;;  %v4785_v0 = vrot.slane %v4783_v4, 4  ;;  %4534 = vst [vmem:[#allocation3 + $0xc0] sm:$0xf] %v4533_v44  ;;  %v4526_v48 = vsel %vm9681_vm12, %v4350_v54, %v4525_v31  ;;  %v4791_v11 = vrot.slane %v4789_v22, 5 }
 0x3d8   : > { %v4376_v1 = vsel %vm9688_vm13, %v4368_v53, %v4375_v17  ;;  %v4537_v46 = vsel %vm9577_vm3, %v4377_v62, %v4536_v41  ;;  %4527 = vst [vmem:[#allocation3 + $0xb4] sm:$0xf] %v4526_v48  ;;  %v4796_v57 = vrot.slane %v4794_v21, 4  ;;  %v4797_v19 = vshll.u32 %v11177_v60, 16  ;;  %v11211_v31 = vld [vmem:[#allocation3 + $0x70] sm:$0xf] }
 0x3d9   : > { %4535 = vst.msk [vmem:[#allocation3 + $0xc4] sm:$0xf] %vm503_vm5, %v4376_v1  ;;  %4538 = vst [vmem:[#allocation3 + $0xc8] sm:$0x1] %v4537_v46  ;;  %v4358_v63 = vor.u32 %v4356_v51, %v4355_v35  ;;  %v4360_v45 = vrot.slane %v4355_v35, 4  ;;  %v4786_v49 = vor.u32 %v4785_v0, %v11181_v10  ;;  %v4803_v18 = vshll.u32 %v11193_v59, 16 }
 0x3da   : > { %v4807_v4 = vshrl.u32 %v11193_v59, 16  ;;  %v4813_v26 = vshll.u32 %v11195_v6, 16  ;;  %v4818_v10 = vshrl.u32 %v11203_v34, 16  ;;  %v11218_v21 = vld [vmem:[#allocation3 + $0x78] sm:$0xf]  ;;  %v4799_v53 = vrot.slane %v4797_v19, 5 }
 0x3db   : > { %v4359_v33 = vsel %vm9688_vm13, %v4351_v15, %v4358_v63  ;;  %v4530_v22 = vsel %vm9577_vm3, %v4360_v45, %v4529_v61  ;;  %v4787_v43 = vrot.slane %v4786_v49, 4  ;;  %v4805_v41 = vrot.slane %v4803_v18, 5  ;;  %v11221_v54 = vld [vmem:[#allocation3 + $0x74] sm:$0x1]  ;;  %v11230_v1 = vld [vmem:[#allocation3 + $0x7c] sm:$0xf] }
 0x3dc   : > { %4528 = vst.msk [vmem:[#allocation3 + $0xb8] sm:$0xf] %vm503_vm5, %v4359_v33  ;;  %4531 = vst [vmem:[#allocation3 + $0xbc] sm:$0x1] %v4530_v22  ;;  %v4809_v36 = vrot.slane %v4807_v4, 4  ;;  %v4815_v51 = vrot.slane %v4813_v26, 5  ;;  %v4800_v35 = vor.u32 %v4799_v53, %v4796_v57 }
 0x3dd   : > { %v4792_v55 = vsel %vm9666_vm11, %v4787_v43, %v4791_v11  ;;  %v4820_v15 = vrot.slane %v4818_v10, 4  ;;  %v4821_v17 = vshll.u32 %v11203_v34, 16  ;;  %v4827_v62 = vshll.u32 %v11211_v31, 16  ;;  %v11240_v22 = vld [vmem:[#allocation3 + $0x84] sm:$0xf] }
 0x3de   : > { %v11227_v44 = vcombine.low %v4782_v7, %v4792_v55  ;;  %v4810_v0 = vor.u32 %v4809_v36, %v4805_v41  ;;  %v4831_v48 = vshrl.u32 %v11211_v31, 16  ;;  %v4837_v63 = vshll.u32 %v11221_v54, 16  ;;  %v11236_v7 = vld [vmem:[#allocation3 + $0x80] sm:$0x1]  ;;  %v11246_v55 = vld [vmem:[#allocation3 + $0x88] sm:$0xf] }
 0x3df   : > { %v4823_v46 = vrot.slane %v4821_v17, 5  ;;  %v4829_v61 = vrot.slane %v4827_v62, 5  ;;  %v4842_v45 = vshrl.u32 %v11218_v21, 16  ;;  %v4801_v11 = vrot.slane %v4800_v35, 4 }
 0x3e0   : > { %12137 = vst [vmem:[#allocation17_spill] sm:$0xff] %v11227_v44  ;;  %8624 = vmatmul.mubr.msk.bf16.gmra.mrb[12].mxu1 %vm1677_vm9, %v11227_v44  ;;  %v4811_v49 = vrot.slane %v4810_v0, 4  ;;  %v4833_v19 = vrot.slane %v4831_v48, 4  ;;  %v4845_v57 = vshll.u32 %v11218_v21, 16  ;;  %v4839_v4 = vrot.slane %v4837_v63, 5 }
 0x3e1   : > { %v4824_v18 = vor.u32 %v4823_v46, %v4820_v15  ;;  %v4844_v26 = vrot.slane %v4842_v45, 4  ;;  %v4851_v33 = vshll.u32 %v11230_v1, 16  ;;  %v4806_v43 = vsel %vm9666_vm11, %v4801_v11, %v4805_v41  ;;  %v11253_v41 = vld [vmem:[#allocation3 + $0x90] sm:$0xf]  ;;  %v11259_v11 = vld [vmem:[#allocation3 + $0x8c] sm:$0x1] }
 0x3e2   : > { %v4816_v10 = vsel %vm9666_vm11, %v4811_v49, %v4815_v51  ;;  %v4834_v53 = vor.u32 %v4833_v19, %v4829_v61  ;;  %v4847_v36 = vrot.slane %v4845_v57, 5  ;;  %v4855_v35 = vshrl.u32 %v11230_v1, 16  ;;  %v11292_v44 = vld [vmem:[#allocation3 + $0xa4] sm:$0x1] }
 0x3e3   : > { %v11248_v17 = vcombine.low %v4806_v43, %v4816_v10  ;;  %v4825_v62 = vrot.slane %v4824_v18, 4  ;;  %v4853_v15 = vrot.slane %v4851_v33, 5  ;;  %v4861_v46 = vshll.u32 %v11236_v7, 16  ;;  %v11265_v43 = vld [vmem:[#allocation3 + $0x94] sm:$0xf] }
 0x3e4   : > { %v4835_v0 = vrot.slane %v4834_v53, 4  ;;  %v4848_v48 = vor.u32 %v4847_v36, %v4844_v26  ;;  %v4866_v63 = vshrl.u32 %v11240_v22, 16  ;;  %v4857_v45 = vrot.slane %v4855_v35, 4 }
 0x3e5   : > { %12138 = vst [vmem:[#allocation18_spill] sm:$0xff] %v11248_v17  ;;  %8627 = vmatprep.mubr.msk.bf16.mxu1 %vm1677_vm9, %v11248_v17  ;;  %v4830_v51 = vsel %vm9666_vm11, %v4825_v62, %v4829_v61  ;;  %v4869_v49 = vshll.u32 %v11240_v22, 16  ;;  %v4875_v19 = vshll.u32 %v11246_v55, 16  ;;  %v4863_v26 = vrot.slane %v4861_v46, 5 }
 0x3e6   : > { %v4840_v57 = vsel %vm9666_vm11, %v4835_v0, %v4839_v4  ;;  %v4849_v18 = vrot.slane %v4848_v48, 4  ;;  %v4868_v33 = vrot.slane %v4866_v63, 4  ;;  %v4858_v53 = vor.u32 %v4857_v45, %v4853_v15  ;;  %v11276_v48 = vld [vmem:[#allocation3 + $0x98] sm:$0x1] }
 0x3e7   : > { %v11267_v10 = vcombine.low %v4830_v51, %v4840_v57  ;;  %v4871_v36 = vrot.slane %v4869_v49, 5  ;;  %v4877_v61 = vrot.slane %v4875_v19, 5  ;;  %v4879_v35 = vshrl.u32 %v11246_v55, 16  ;;  %v11281_v19 = vld [vmem:[#allocation3 + $0x9c] sm:$0xf] }
 0x3e8   : > { %v4854_v62 = vsel %vm9666_vm11, %v4849_v18, %v4853_v15  ;;  %v4885_v5 = vshll.u32 %v11259_v11, 16  ;;  %v4890_v16 = vshrl.u32 %v11253_v41, 16  ;;  %v4859_v4 = vrot.slane %v4858_v53, 4 }
 0x3e9   : > { %12139 = vst [vmem:[#allocation19_spill] sm:$0xff] %v11267_v10  ;;  %8628 = vmatmul.mubr.msk.bf16.gmra.mrb[16].mxu1 %vm1677_vm9, %v11267_v10  ;;  %v4872_v0 = vor.u32 %v4871_v36, %v4868_v33  ;;  %v4893_v46 = vshll.u32 %v11253_v41, 16  ;;  %v4899_v63 = vshll.u32 %v11265_v43, 16  ;;  %v4881_v51 = vrot.slane %v4879_v35, 4  ;;  %v11285_v33 = vld [vmem:[#allocation3 + $0xa0] sm:$0xf] }
 0x3ea   : > { %v4887_v45 = vrot.slane %v4885_v5, 5  ;;  %v4892_v15 = vrot.slane %v4890_v16, 4  ;;  %v4903_v49 = vshrl.u32 %v11265_v43, 16  ;;  %v4864_v57 = vsel %vm9666_vm11, %v4859_v4, %v4863_v26 }
 0x3eb   : > { %v4873_v18 = vrot.slane %v4872_v0, 4  ;;  %v4895_v2 = vrot.slane %v4893_v46, 5  ;;  %v4901_v53 = vrot.slane %v4899_v63, 5  ;;  %v11287_v36 = vcombine.low %v4854_v62, %v4864_v57 }
 0x3ec   : > { %v4882_v10 = vor.u32 %v4881_v51, %v4877_v61  ;;  %v4905_v17 = vrot.slane %v4903_v49, 4  ;;  %v4909_v35 = vshll.u32 %v11276_v48, 16  ;;  %v4914_v27 = vshrl.u32 %v11281_v19, 16 }
 0x3ed   : > { %12140 = vst [vmem:[#allocation20_spill] sm:$0xff] %v11287_v36  ;;  %v4878_v5 = vsel %vm9666_vm11, %v4873_v18, %v4877_v61  ;;  %v4896_v16 = vor.u32 %v4895_v2, %v4892_v15  ;;  %v4917_v26 = vshll.u32 %v11281_v19, 16  ;;  %8631 = vmatprep.mubr.msk.bf16.mxu1 %vm1677_vm9, %v11287_v36  ;;  %v4923_v46 = vshll.u32 %v11285_v33, 16  ;;  %v11300_v2 = vld [vmem:[#allocation3 + $0xa8] sm:$0xf] }
 0x3ee   : > { %v4883_v4 = vrot.slane %v4882_v10, 4  ;;  %v4906_v62 = vor.u32 %v4905_v17, %v4901_v53  ;;  %v4911_v0 = vrot.slane %v4909_v35, 5  ;;  %v4916_v51 = vrot.slane %v4914_v27, 4  ;;  %v11305_v36 = vld [vmem:[#allocation3 + $0xac] sm:$0xf] }
 0x3ef   : > { %v4897_v63 = vrot.slane %v4896_v16, 4  ;;  %v4919_v49 = vrot.slane %v4917_v26, 5  ;;  %v4927_v61 = vshrl.u32 %v11285_v33, 16  ;;  %v4925_v18 = vrot.slane %v4923_v46, 5  ;;  %v11313_v26 = vld [vmem:[#allocation3 + $0xb0] sm:$0x1] }
 0x3f0   : > { %v4888_v15 = vsel %vm9666_vm11, %v4883_v4, %v4887_v45  ;;  %v4907_v57 = vrot.slane %v4906_v62, 4  ;;  %v4933_v39 = vshll.u32 %v11292_v44, 16  ;;  %v4938_v45 = vshrl.u32 %v11300_v2, 16  ;;  %v11317_v62 = vld [vmem:[#allocation3 + $0xb4] sm:$0xf] }
 0x3f1   : > { %v11307_v17 = vcombine.low %v4878_v5, %v4888_v15  ;;  %v4920_v10 = vor.u32 %v4919_v49, %v4916_v51  ;;  %v4929_v35 = vrot.slane %v4927_v61, 4  ;;  %v4902_v27 = vsel %vm9666_vm11, %v4897_v63, %v4901_v53  ;;  %v11325_v15 = vld [vmem:[#allocation3 + $0xb8] sm:$0xf] }
 0x3f2   : > { %v4912_v16 = vsel %vm9666_vm11, %v4907_v57, %v4911_v0  ;;  %v4941_v4 = vshll.u32 %v11300_v2, 16  ;;  %v4947_v53 = vshll.u32 %v11305_v36, 16  ;;  %v4935_v63 = vrot.slane %v4933_v39, 5 }
 0x3f3   : > { %12141 = vst [vmem:[#allocation21_spill] sm:$0xff] %v11307_v17  ;;  %8632 = vmatmul.mubr.msk.bf16.gmra.mrb[20].mxu1 %vm1677_vm9, %v11307_v17  ;;  %v11321_v5 = vcombine.low %v4902_v27, %v4912_v16  ;;  %v4921_v46 = vrot.slane %v4920_v10, 4  ;;  %v4930_v51 = vor.u32 %v4929_v35, %v4925_v18  ;;  %v4940_v49 = vrot.slane %v4938_v45, 4  ;;  %v11333_v16 = vld [vmem:[#allocation3 + $0xbc] sm:$0x1] }
 0x3f4   : > { %v4943_v0 = vrot.slane %v4941_v4, 5  ;;  %v4951_v61 = vshrl.u32 %v11305_v36, 16  ;;  %v4949_v52 = vrot.slane %v4947_v53, 5  ;;  %v4957_v17 = vshll.u32 %v11313_v26, 16 }
 0x3f5   : > { %12142 = vst [vmem:[#allocation22_spill] sm:$0xff] %v11321_v5  ;;  %8635 = vmatprep.mubr.msk.bf16.mxu1 %vm1677_vm9, %v11321_v5  ;;  %v4931_v57 = vrot.slane %v4930_v51, 4  ;;  %v4962_v27 = vshrl.u32 %v11317_v62, 16  ;;  %v4926_v10 = vsel %vm9666_vm11, %v4921_v46, %v4925_v18  ;;  %v4965_v45 = vshll.u32 %v11317_v62, 16 }
 0x3f6   : > { %v4944_v35 = vor.u32 %v4943_v0, %v4940_v49  ;;  %v4953_v39 = vrot.slane %v4951_v61, 4  ;;  %v4971_v51 = vshll.u32 %v11325_v15, 16  ;;  %v4975_v53 = vshrl.u32 %v11325_v15, 16 }
 0x3f7   : > { %v4936_v4 = vsel %vm9666_vm11, %v4931_v57, %v4935_v63  ;;  %v4964_v47 = vrot.slane %v4962_v27, 4  ;;  %v4967_v24 = vrot.slane %v4965_v45, 5  ;;  %v4981_v49 = vshll.u32 %v11333_v16, 16 }
 0x3f8   : > { %v11340_v5 = vcombine.low %v4926_v10, %v4936_v4  ;;  %v4945_v3 = vrot.slane %v4944_v35, 4  ;;  %v4954_v14 = vor.u32 %v4953_v39, %v4949_v52  ;;  %v4973_v18 = vrot.slane %v4971_v51, 5  ;;  %v11351_v4 = vld [vmem:[#allocation3] sm:$0xf] }
 0x3f9   : > { %v4977_v46 = vrot.slane %v4975_v53, 4  ;;  %v4959_v61 = vrot.slane %v4957_v17, 5  ;;  %v4968_v40 = vor.u32 %v4967_v24, %v4964_v47  ;;  %v4983_v45 = vrot.slane %v4981_v49, 5 }
 0x3fa   : > { %v4955_v0 = vrot.slane %v4954_v14, 4  ;;  %v4950_v57 = vsel %vm9666_vm11, %v4945_v3, %v4949_v52  ;;  %v11353_v14 = vld [vmem:[#allocation3 + $0x4] sm:$0xf]  ;;  %v11361_v3 = vcombine.low %v11152_v13, %v11164_v29  ;;  %v11365_v52 = vcombine.low %v11177_v60, %v11193_v59 }
 0x3fb   : > { %8636 = vmatmul.mubr.msk.bf16.gmra.mrb[24].mxu1 %vm1677_vm9, %v11340_v5  ;;  %v4978_v63 = vor.u32 %v4977_v46, %v4973_v18  ;;  %v4969_v10 = vrot.slane %v4968_v40, 4  ;;  %v7738_v47 = vcombine.low %v11351_v4, %v11353_v14  ;;  %v11369_v40 = vcombine.low %v11203_v34, %v11211_v31 }
 0x3fc   : > { %v4960_v27 = vsel %vm9666_vm11, %v4955_v0, %v4959_v61  ;;  %v11377_v51 = vcombine.low %v11218_v21, %v11230_v1  ;;  %v11381_v53 = vcombine.low %v11240_v22, %v11246_v55  ;;  %v11391_v49 = vcombine.low %v11281_v19, %v11285_v33 }
 0x3fd   : > { %v11349_v35 = vcombine.low %v4950_v57, %v4960_v27  ;;  %v4979_v39 = vrot.slane %v4978_v63, 4  ;;  %v4974_v24 = vsel %vm9666_vm11, %v4969_v10, %v4973_v18  ;;  %v11385_v18 = vcombine.low %v11253_v41, %v11265_v43  ;;  %v11404_v63 = vld [vmem:[#allocation3 + $0xc] sm:$0xf]  ;;  %v11406_v57 = vld [vmem:[#allocation3 + $0x10] sm:$0xf] }
 0x3fe   : > { %v11395_v0 = vcombine.low %v11300_v2, %v11305_v36  ;;  %v11399_v61 = vcombine.low %v11317_v62, %v11325_v15  ;;  %v11410_v27 = vcombine.low %v11404_v63, %v11406_v57  ;;  %v5766_v10 = vsel %vm1726_vm0, %v11033_v50, 0 }
 0x3ff   : > { %12143 = vst [vmem:[#allocation7_spill] sm:$0xff] %v11349_v35  ;;  %8639 = vmatprep.mubr.msk.bf16.mxu1 %vm1677_vm9, %v11349_v35  ;;  %v4984_v17 = vsel %vm9666_vm11, %v4979_v39, %v4983_v45  ;;  %v11416_v39 = vcombine.low %v10986_v9, %v10988_v20  ;;  %v11421_v45 = vld [vmem:[%s12005_s2 + $0x6] sm:$0x3]  ;;  %v7777_v50 = vrot.slane %v11152_v13, 9  ;;  %v5606_v9 = vrot.slane %v11164_v29, 5 }
 0x400   : > { %v11387_v46 = vcombine.low %v4974_v24, %v4984_v17  ;;  %v11435_v20 = vcombine.low %v11057_v12, %v11063_v38  ;;  %v11439_v24 = vcombine.low %v11088_v30, %v11110_v42  ;;  %v7778_v17 = vrot.slane %v11177_v60, 9 }
 0x401   : > { %v5608_v13 = vrot.slane %v5606_v9, 4  ;;  %v5609_v29 = vrot.slane %v11179_v32, 5  ;;  %v5616_v12 = vrot.slane %v11195_v6, 5  ;;  %v5620_v35 = vrot.slane %v11211_v31, 5 }
 0x402   : > { %12144 = vst [vmem:[#allocation8_spill] sm:$0xff] %v11387_v46 }
 0x403   : > { %8640 = vmatmul.mubr.msk.bf16.gmra.mrb[28].mxu1 %vm1677_vm9, %v11387_v46  ;;  %v7779_v46 = vrot.slane %v11203_v34, 9  ;;  %v5610_v60 = vsel %vm10224_vm2, %v5608_v13, %v5609_v29  ;;  %v5622_v34 = vrot.slane %v5620_v35, 4  ;;  %v5641_v29 = vrot.slane %v11265_v43, 5 }
 0x404   : > { %8645 = vmatprep.mubr.msk.bf16.mxu1 %vm1677_vm9, %v7738_v47  ;;  %v11429_v47 = vcombine.low %v11019_v58, %v11039_v8  ;;  %v5613_v58 = vrot.slane %v11193_v59, 5  ;;  %v5607_v8 = vsel %vm10224_vm2, %v7777_v50, %v5606_v9  ;;  %v5623_v59 = vrot.slane %v11221_v54, 5 }
 0x405   : > { %v7780_v50 = vrot.slane %v11218_v21, 9  ;;  %v5627_v9 = vrot.slane %v11230_v1, 5  ;;  %v11458_v32 = vcombine.low %v5607_v8, %v5610_v60  ;;  %v5630_v54 = vrot.slane %v11236_v7, 5 }
 0x406   : > { %v5615_v23 = vrot.slane %v5613_v58, 4  ;;  %v5624_v21 = vsel %vm10224_vm2, %v5622_v34, %v5623_v59  ;;  %v5634_v1 = vrot.slane %v11246_v55, 5  ;;  %v7782_v8 = vrot.slane %v11253_v41, 9 }
 0x407   : > { %v5628_v31 = vsel %vm10224_vm2, %v7780_v50, %v5627_v9  ;;  %v5629_v13 = vrot.slane %v5627_v9, 4  ;;  %v5643_v60 = vrot.slane %v5641_v29, 4  ;;  %v7783_v59 = vrot.slane %v11281_v19, 9 }
 0x408   : > { %v5617_v6 = vsel %vm10224_vm2, %v5615_v23, %v5616_v12  ;;  %v7781_v23 = vrot.slane %v11240_v22, 9  ;;  %v5636_v55 = vrot.slane %v5634_v1, 4  ;;  %v5648_v50 = vrot.slane %v11285_v33, 5 }
 0x409   : > { %v5631_v7 = vsel %vm10224_vm2, %v5629_v13, %v5630_v54  ;;  %v5651_v43 = vrot.slane %v11292_v44, 5  ;;  %v7784_v9 = vrot.slane %v11300_v2, 9  ;;  %v5658_v44 = vrot.slane %v11313_v26, 5  ;;  %v11523_v26 = vld [vmem:[#allocation3 + $0xc0] sm:$0xf] }
 0x40a   : > { %v11484_v12 = vcombine.low %v5628_v31, %v5631_v7  ;;  %v5635_v22 = vsel %vm10224_vm2, %v7781_v23, %v5634_v1  ;;  %v5649_v34 = vsel %vm10224_vm2, %v7783_v59, %v5648_v50  ;;  %v5650_v19 = vrot.slane %v5648_v50, 4 }
 0x40b   : > { %8646 = vmatmul.mubr.msk.bf16.vlgmr.msra.gmra.mrb[0].mxu1 %vm1677_vm9, %v11410_v27  ;;  %v7785_v54 = vrot.slane %v11317_v62, 9 }
 0x40c   : > { %8678 = vmatpush3.bf16.msra.mxu1 %v5766_v10  ;;  %8649 = vmatprep.mubr.msk.bf16.mxu1 %vm1677_vm9, %v11416_v39  ;;  %v5614_v10 = vsel %vm10224_vm2, %v7778_v17, %v5613_v58  ;;  %v5621_v17 = vsel %vm10224_vm2, %v7779_v46, %v5620_v35  ;;  %v5637_v35 = vrot.slane %v11259_v11, 5  ;;  %v5644_v11 = vrot.slane %v11276_v48, 5 }
 0x40d   : > { %9439 = vmatprep.subr.msk.bf16.mxu1 %vm1726_vm0, %v11421_v45  ;;  %v11464_v58 = vcombine.low %v5614_v10, %v5617_v6  ;;  %v11478_v46 = vcombine.low %v5621_v17, %v5624_v21  ;;  %v5642_v10 = vsel %vm10224_vm2, %v7782_v8, %v5641_v29  ;;  %v5655_v6 = vrot.slane %v11305_v36, 5  ;;  %v11534_v29 = vld [vmem:[#allocation3 + $0xc8] sm:$0x1] }
 0x40e   : > { %v5638_v41 = vsel %vm10224_vm2, %v5636_v55, %v5637_v35  ;;  %v5645_v48 = vsel %vm10224_vm2, %v5643_v60, %v5644_v11  ;;  %v11511_v36 = vcombine.low %v11120_v25, %v11129_v37  ;;  %v5652_v2 = vsel %vm10224_vm2, %v5650_v19, %v5651_v43  ;;  %v11525_v35 = vld [vmem:[#allocation3 + $0xc4] sm:$0xf] }
 0x40f   : > { %v11498_v17 = vcombine.low %v5635_v22, %v5638_v41  ;;  %v11504_v31 = vcombine.low %v5642_v10, %v5645_v48  ;;  %v5656_v33 = vsel %vm10224_vm2, %v7784_v9, %v5655_v6  ;;  %v5657_v13 = vrot.slane %v5655_v6, 4  ;;  %v9504_v9 = vld [vmem:[#allocation3 + $0x8] sm:$0x1] }
 0x410   : > { %v5662_v21 = vrot.slane %v11325_v15, 5  ;;  %v11519_v23 = vcombine.low %v5649_v34, %v5652_v2  ;;  %v5665_v8 = vrot.slane %v11333_v16, 5  ;;  %v7855_v55 = vrot.slane %v11523_v26, 9 }
 0x411   : > { %v5659_v1 = vsel %vm10224_vm2, %v5657_v13, %v5658_v44  ;;  %v6398_v11 = vrot.slane %v11525_v35, 5  ;;  %v6401_v50 = vrot.slane %v11534_v29, 5  ;;  %v5557_v43 = vrot.slane %v11353_v14, 5  ;;  %v9505_v14 = vld [vmem:[#allocation3 + $0x1c] sm:$0xf] }
 0x412   : > { %v11529_v7 = vcombine.low %v5656_v33, %v5659_v1  ;;  %v5663_v62 = vsel %vm10224_vm2, %v7785_v54, %v5662_v21  ;;  %v5664_v15 = vrot.slane %v5662_v21, 4  ;;  %v5560_v6 = vrot.slane %v9504_v9, 5  ;;  %v9506_v21 = vld [vmem:[#allocation3 + $0x14] sm:$0x1] }
 0x413   : > { %8650 = vmatmul.mubr.msk.bf16.gmra.mrb[4].mxu1 %vm1677_vm9, %v11429_v47  ;;  %v6399_v60 = vsel %vm10224_vm2, %v7855_v55, %v6398_v11  ;;  %v6400_v59 = vrot.slane %v6398_v11, 4  ;;  %v7770_v48 = vrot.slane %v11351_v4, 9  ;;  %v5559_v34 = vrot.slane %v5557_v43, 4  ;;  %v9509_v11 = vld [vmem:[#allocation3 + $0x18] sm:$0xf] }
 0x414   : > { %8653 = vmatprep.mubr.msk.bf16.mxu1 %vm1677_vm9, %v11435_v20  ;;  %v5666_v22 = vsel %vm10224_vm2, %v5664_v15, %v5665_v8  ;;  %v5564_v13 = vrot.slane %v11406_v57, 5  ;;  %v5571_v44 = vrot.slane %v9505_v14, 5  ;;  %v5567_v1 = vrot.slane %v9506_v21, 5  ;;  %v9508_v57 = vld [vmem:[#allocation3 + $0x28] sm:$0xf] }
 0x415   : > { %v11540_v10 = vcombine.low %v5663_v62, %v5666_v22  ;;  %v6402_v16 = vsel %vm10224_vm2, %v6400_v59, %v6401_v50  ;;  %v5558_v19 = vsel %vm10224_vm2, %v7770_v48, %v5557_v43  ;;  %v5561_v33 = vsel %vm10224_vm2, %v5559_v34, %v5560_v6  ;;  %v9507_v62 = vld [vmem:[#allocation3 + $0x20] sm:$0x1]  ;;  %v7837_v34 = vld [vmem:[%s12005_s2 + $0x8] sm:$0x3] }
 0x416   : > { %v11549_v41 = vcombine.low %v6399_v60, %v6402_v16  ;;  %v7787_v2 = vcombine.low %v5558_v19, %v5561_v33  ;;  %v5566_v54 = vrot.slane %v5564_v13, 4  ;;  %v5573_v4 = vrot.slane %v5571_v44, 4  ;;  %v9510_v19 = vld [vmem:[#allocation3 + $0x2c] sm:$0x1] }
 0x417   : > { %v5574_v15 = vrot.slane %v9507_v62, 5  ;;  %v7771_v8 = vrot.slane %v11404_v63, 9  ;;  %v5578_v55 = vrot.slane %v9508_v57, 5  ;;  %v7772_v60 = vrot.slane %v9509_v11, 9  ;;  %v12145_v57 = vld [vmem:[#allocation13_spill] sm:$0xff]  ;;  %v12146_v11 = vld [vmem:[#allocation14_spill] sm:$0xff] }
 0x418   : > { %v5568_v22 = vsel %vm10224_vm2, %v5566_v54, %v5567_v1  ;;  %v5585_v50 = vrot.slane %v11063_v38, 5  ;;  %v5972_v63 = vsel %vm1726_vm0, %v11421_v45, 0  ;;  %v5581_v45 = vrot.slane %v9510_v19, 5  ;;  %v9512_v54 = vld [vmem:[#allocation3 + $0x30] sm:$0xf] }
 0x419   : > { %v5575_v59 = vsel %vm10224_vm2, %v5573_v4, %v5574_v15  ;;  %v5565_v16 = vsel %vm10224_vm2, %v7771_v8, %v5564_v13  ;;  %v5572_v9 = vsel %vm10224_vm2, %v7772_v60, %v5571_v44  ;;  %v5580_v48 = vrot.slane %v5578_v55, 4  ;;  %v9511_v13 = vld [vmem:[#allocation3 + $0x24] sm:$0xf] }
 0x41a   : > { %v11583_v43 = vcombine.low %v5565_v16, %v5568_v22  ;;  %v11589_v6 = vcombine.low %v5572_v9, %v5575_v59  ;;  %v5587_v38 = vrot.slane %v5585_v50, 4  ;;  %v5588_v33 = vrot.slane %v11071_v28, 5 }
 0x41b   : > { %8654 = vmatmul.mubr.msk.bf16.gmra.mrb[8].mxu1 %vm1677_vm9, %v11439_v24  ;;  %v7773_v14 = vrot.slane %v9511_v13, 9  ;;  %v5582_v44 = vsel %vm10224_vm2, %v5580_v48, %v5581_v45  ;;  %v7774_v4 = vrot.slane %v9512_v54, 9  ;;  %v5599_v1 = vrot.slane %v11129_v37, 5  ;;  %v7874_v45 = vld [vmem:[%s12005_s2 + $0xc] sm:$0x3]  ;;  %v12153_v54 = vld [vmem:[#allocation17_spill] sm:$0xff] }
 0x41c   : > { %8657 = vmatprep.mubr.msk.bf16.mxu1 %vm1677_vm9, %v11511_v36  ;;  %v5589_v21 = vsel %vm10224_vm2, %v5587_v38, %v5588_v33  ;;  %v5595_v37 = vrot.slane %v12145_v57, 5  ;;  %v5602_v60 = vrot.slane %v12146_v11, 5  ;;  %v12148_v33 = vld [vmem:[#allocation10_spill] sm:$0xff]  ;;  %v12149_v13 = vld [vmem:[#allocation11_spill] sm:$0xff]  ;;  %v6171_v57 = vshll.u32 %v11523_v26, 16 }
 0x41d   : > { %v5579_v62 = vsel %vm10224_vm2, %v7773_v14, %v5578_v55  ;;  %v5586_v15 = vsel %vm10224_vm2, %v7774_v4, %v5585_v50  ;;  %v7775_v55 = vrot.slane %v11088_v30, 9  ;;  %v7776_v50 = vrot.slane %v11120_v25, 9  ;;  %v7856_v25 = vld [vmem:[%s12005_s2 + $0xa] sm:$0x3]  ;;  %v12150_v14 = vld [vmem:[#allocation12_spill] sm:$0xff]  ;;  %v12154_v4 = vld [vmem:[#allocation18_spill] sm:$0xff] }
 0x41e   : > { %v11608_v28 = vcombine.low %v5579_v62, %v5582_v44  ;;  %v11612_v8 = vcombine.low %v5586_v15, %v5589_v21  ;;  %v6200_v30 = vsel %vm1726_vm0, %v7837_v34, 0  ;;  %v6412_v19 = vsel %vm1726_vm0, %v7856_v25, 0  ;;  %v12151_v44 = vld [vmem:[#allocation15_spill] sm:$0xff]  ;;  %v12157_v62 = vld [vmem:[#allocation21_spill] sm:$0xff] }
 0x41f   : > { %v5600_v48 = vsel %vm10224_vm2, %v7776_v50, %v5599_v1  ;;  %v12155_v21 = vld [vmem:[#allocation19_spill] sm:$0xff]  ;;  %v6181_v15 = vshrl.u32 %v11525_v35, 16 }
 0x421   : > { %v6183_v11 = vrot.slane %v6181_v15, 4 }
 0x423   : > { %8658 = vmatmul.mubr.msk.bf16.gmra.mrb[12].mxu1 %vm1677_vm9, %v11361_v3 }
 0x424   : > { %8661 = vmatprep.mubr.msk.bf16.mxu1 %vm1677_vm9, %v11365_v52 }
 0x42b   : > { %8662 = vmatmul.mubr.msk.bf16.gmra.mrb[16].mxu1 %vm1677_vm9, %v11369_v40 }
 0x42c   : > { %8665 = vmatprep.mubr.msk.bf16.mxu1 %vm1677_vm9, %v11377_v51 }
 0x433   : > { %8666 = vmatmul.mubr.msk.bf16.gmra.mrb[20].mxu1 %vm1677_vm9, %v11381_v53 }
 0x434   : > { %8669 = vmatprep.mubr.msk.bf16.mxu1 %vm1677_vm9, %v11385_v18 }
 0x43b   : > { %8670 = vmatmul.mubr.msk.bf16.gmra.mrb[24].mxu1 %vm1677_vm9, %v11391_v49 }
 0x43c   : > { %8673 = vmatprep.mubr.msk.bf16.mxu1 %vm1677_vm9, %v11395_v0 }
 0x443   : > { %8674 = vmatmul.mubr.msk.bf16.gmra.mrb[28].mxu1 %vm1677_vm9, %v11399_v61 }
 0x444   : > { %8679 = vmatprep.mubr.msk.bf16.mxu1 %vm1677_vm9, %v7787_v2  ;;  %v5592_v2 = vrot.slane %v11110_v42, 5  ;;  %v5601_v42 = vrot.slane %v5599_v1, 4  ;;  %v12156_v1 = vld [vmem:[#allocation20_spill] sm:$0xff] }
 0x446   : > { %v5594_v22 = vrot.slane %v5592_v2, 4  ;;  %v5603_v16 = vsel %vm10224_vm2, %v5601_v42, %v5602_v60  ;;  %v6168_v42 = vshrl.u32 %v11523_v26, 16  ;;  %v12158_v60 = vld [vmem:[#allocation22_spill] sm:$0xff] }
 0x447   : > { %v11632_v38 = vcombine.low %v5600_v48, %v5603_v16 }
 0x448   : > { %v5596_v59 = vsel %vm10224_vm2, %v5594_v22, %v5595_v37  ;;  %v6177_v22 = vshll.u32 %v11525_v35, 16 }
 0x44a   : > { %v6179_v37 = vrot.slane %v6177_v22, 5 }
 0x44b   : > { %8680 = vmatmul.mubr.msk.bf16.vlgmr.msra.gmra.mrb[0].mxu1 %vm1677_vm9, %v11583_v43 }
 0x44c   : > { %8712 = vmatpush3.bf16.msra.mxu1 %v5972_v63  ;;  %8683 = vmatprep.mubr.msk.bf16.mxu1 %vm1677_vm9, %v11589_v6  ;;  %v5593_v63 = vsel %vm10224_vm2, %v7775_v55, %v5592_v2  ;;  %v12152_v2 = vld [vmem:[#allocation16_spill] sm:$0xff]  ;;  %v6170_v55 = vrot.slane %v6168_v42, 4  ;;  %v6184_v50 = vor.u32 %v6183_v11, %v6179_v37 }
 0x44d   : > { %9440 = vmatprep.subr.msk.bf16.mxu1 %vm1726_vm0, %v7837_v34  ;;  %v11628_v9 = vcombine.low %v5593_v63, %v5596_v59  ;;  %v12147_v34 = vld [vmem:[#allocation9_spill] sm:$0xff]  ;;  %v6173_v59 = vrot.slane %v6171_v57, 5  ;;  %v6187_v63 = vshll.u32 %v11534_v29, 16  ;;  %v12163_v57 = vmov 0  }
 0x44e   : > { %v6185_v48 = vrot.slane %v6184_v50, 4 }
 0x44f   : > { %v6174_v16 = vor.u32 %v6173_v59, %v6170_v55  ;;  %v6618_v55 = vsel %vm1726_vm0, %v7874_v45, 0  ;;  %v7892_v59 = vld [vmem:[%s12005_s2 + $0xe] sm:$0x3] }
 0x450   : > { %v6846_v50 = vsel %vm1726_vm0, %v7892_v59, 0 }
 0x453   : > { %8684 = vmatmul.mubr.msk.bf16.gmra.mrb[4].mxu1 %vm1677_vm9, %v11608_v28 }
 0x454   : > { %8687 = vmatprep.mubr.msk.bf16.mxu1 %vm1677_vm9, %v11612_v8 }
 0x45b   : > { %8688 = vmatmul.mubr.msk.bf16.gmra.mrb[8].mxu1 %vm1677_vm9, %v11628_v9 }
 0x45c   : > { %8691 = vmatprep.mubr.msk.bf16.mxu1 %vm1677_vm9, %v11632_v38 }
 0x463   : > { %8692 = vmatmul.mubr.msk.bf16.gmra.mrb[12].mxu1 %vm1677_vm9, %v11458_v32 }
 0x464   : > { %8695 = vmatprep.mubr.msk.bf16.mxu1 %vm1677_vm9, %v11464_v58 }
 0x46b   : > { %8696 = vmatmul.mubr.msk.bf16.gmra.mrb[16].mxu1 %vm1677_vm9, %v11478_v46 }
 0x46c   : > { %8699 = vmatprep.mubr.msk.bf16.mxu1 %vm1677_vm9, %v11484_v12 }
 0x473   : > { %8700 = vmatmul.mubr.msk.bf16.gmra.mrb[20].mxu1 %vm1677_vm9, %v11498_v17 }
 0x474   : > { %8703 = vmatprep.mubr.msk.bf16.mxu1 %vm1677_vm9, %v11504_v31 }
 0x47b   : > { %8704 = vmatmul.mubr.msk.bf16.gmra.mrb[24].mxu1 %vm1677_vm9, %v11519_v23 }
 0x47c   : > { %8707 = vmatprep.mubr.msk.bf16.mxu1 %vm1677_vm9, %v11529_v7 }
 0x483   : > { %8708 = vmatmul.mubr.msk.bf16.gmra.mrb[28].mxu1 %vm1677_vm9, %v11540_v10 }
 0x484   : > { %8713 = vmatprep.mubr.msk.bf16.mxu1 %vm1677_vm9, %v11410_v27  ;;  %v11693_v27 = vcombine.low %v11523_v26, %v11525_v35  ;;  %v12159_v35 = vld [vmem:[#allocation7_spill] sm:$0xff]  ;;  %v6175_v26 = vrot.slane %v6174_v16, 4  ;;  %v7911_v16 = vld [vmem:[%s12005_s2 + $0x10] sm:$0x3] }
 0x486   : > { %v6180_v29 = vsel %vm9666_vm11, %v6175_v26, %v6179_v37  ;;  %v7258_v26 = vld [vmem:[%s9637_s12 + $0x28] sm:$0xff] }
 0x48b   : > { %8714 = vmatmul.mubr.msk.bf16.vlgmr.msra.gmra.mrb[0].mxu1 %vm1677_vm9, %v11416_v39 }
 0x48c   : > { %8746 = vmatpush3.bf16.msra.mxu1 %v6200_v30  ;;  %8717 = vmatprep.mubr.msk.bf16.mxu1 %vm1677_vm9, %v11429_v47  ;;  %v12160_v30 = vld [vmem:[#allocation8_spill] sm:$0xff] }
 0x48d   : > { %9441 = vmatprep.subr.msk.bf16.mxu1 %vm1726_vm0, %v7856_v25  ;;  %v6189_v25 = vrot.slane %v6187_v63, 5 }
 0x48f   : > { %v6190_v42 = vsel %vm9666_vm11, %v6185_v48, %v6189_v25  ;;  %v7260_v48 = vld [vmem:[%s9637_s12 + $0x38] sm:$0xff] }
 0x490   : > { %v11745_v11 = vcombine.low %v6180_v29, %v6190_v42  ;;  %v7263_v42 = vld [vmem:[%s9637_s12 + $0x50] sm:$0xff] }
 0x493   : > { %8718 = vmatmul.mubr.msk.bf16.gmra.mrb[4].mxu1 %vm1677_vm9, %v11435_v20 }
 0x494   : > { %8721 = vmatprep.mubr.msk.bf16.mxu1 %vm1677_vm9, %v11439_v24 }
 0x49b   : > { %8722 = vmatmul.mubr.msk.bf16.gmra.mrb[8].mxu1 %vm1677_vm9, %v11511_v36 }
 0x49c   : > { %8725 = vmatprep.mubr.msk.bf16.mxu1 %vm1677_vm9, %v11361_v3 }
 0x4a3   : > { %8726 = vmatmul.mubr.msk.bf16.gmra.mrb[12].mxu1 %vm1677_vm9, %v11365_v52 }
 0x4a4   : > { %8729 = vmatprep.mubr.msk.bf16.mxu1 %vm1677_vm9, %v11369_v40 }
 0x4ab   : > { %8730 = vmatmul.mubr.msk.bf16.gmra.mrb[16].mxu1 %vm1677_vm9, %v11377_v51 }
 0x4ac   : > { %8733 = vmatprep.mubr.msk.bf16.mxu1 %vm1677_vm9, %v11381_v53 }
 0x4b3   : > { %8734 = vmatmul.mubr.msk.bf16.gmra.mrb[20].mxu1 %vm1677_vm9, %v11385_v18 }
 0x4b4   : > { %8737 = vmatprep.mubr.msk.bf16.mxu1 %vm1677_vm9, %v11391_v49 }
 0x4bb   : > { %8738 = vmatmul.mubr.msk.bf16.gmra.mrb[24].mxu1 %vm1677_vm9, %v11395_v0 }
 0x4bc   : > { %8741 = vmatprep.mubr.msk.bf16.mxu1 %vm1677_vm9, %v11399_v61 }
 0x4c3   : > { %8742 = vmatmul.mubr.msk.bf16.gmra.mrb[28].mxu1 %vm1677_vm9, %v11693_v27 }
 0x4c4   : > { %8747 = vmatprep.mubr.msk.bf16.mxu1 %vm1677_vm9, %v12147_v34  ;;  %v446_v34 = vld [vmem:[#allocation3 + $0xcc] sm:$0x1] }
 0x4c5   : > { %v447_v15 = vsel %vm9577_vm3, 0, %v446_v34 }
 0x4c6   : > { %448 = vst [vmem:[#allocation3 + $0xcc] sm:$0x1] %v447_v15 }
 0x4c7   : > { %4543 = vst.msk [vmem:[#allocation3 + $0xcc] sm:$0xf] %vm503_vm5, %v12163_v57 }
 0x4cb   : > { %8748 = vmatmul.mubr.msk.bf16.vlgmr.msra.gmra.mrb[0].mxu1 %vm1677_vm9, %v12148_v33 }
 0x4cc   : > { %8780 = vmatpush3.bf16.msra.mxu1 %v6412_v19  ;;  %8751 = vmatprep.mubr.msk.bf16.mxu1 %vm1677_vm9, %v12149_v13 }
 0x4cd   : > { %9442 = vmatprep.subr.msk.bf16.mxu1 %vm1726_vm0, %v7874_v45 }
 0x4d3   : > { %8752 = vmatmul.mubr.msk.bf16.gmra.mrb[4].mxu1 %vm1677_vm9, %v12150_v14 }
 0x4d4   : > { %8755 = vmatprep.mubr.msk.bf16.mxu1 %vm1677_vm9, %v12151_v44 }
 0x4db   : > { %8756 = vmatmul.mubr.msk.bf16.gmra.mrb[8].mxu1 %vm1677_vm9, %v12152_v2 }
 0x4dc   : > { %8759 = vmatprep.mubr.msk.bf16.mxu1 %vm1677_vm9, %v12153_v54 }
 0x4e3   : > { %8760 = vmatmul.mubr.msk.bf16.gmra.mrb[12].mxu1 %vm1677_vm9, %v12154_v4 }
 0x4e4   : > { %8763 = vmatprep.mubr.msk.bf16.mxu1 %vm1677_vm9, %v12155_v21 }
 0x4eb   : > { %8764 = vmatmul.mubr.msk.bf16.gmra.mrb[16].mxu1 %vm1677_vm9, %v12156_v1 }
 0x4ec   : > { %8767 = vmatprep.mubr.msk.bf16.mxu1 %vm1677_vm9, %v12157_v62 }
 0x4f3   : > { %8768 = vmatmul.mubr.msk.bf16.gmra.mrb[20].mxu1 %vm1677_vm9, %v12158_v60 }
 0x4f4   : > { %8771 = vmatprep.mubr.msk.bf16.mxu1 %vm1677_vm9, %v11340_v5 }
 0x4fb   : > { %8772 = vmatmul.mubr.msk.bf16.gmra.mrb[24].mxu1 %vm1677_vm9, %v12159_v35 }
 0x4fc   : > { %8775 = vmatprep.mubr.msk.bf16.mxu1 %vm1677_vm9, %v12160_v30 }
 0x503   : > { %8776 = vmatmul.mubr.msk.bf16.gmra.mrb[28].mxu1 %vm1677_vm9, %v11745_v11 }
 0x504   : > { %8781 = vmatprep.mubr.msk.bf16.mxu1 %vm1677_vm9, %v11583_v43  ;;  %v500_v43 = vld [vmem:[#allocation3 + $0xd4] sm:$0x1] }
 0x505   : > { %v501_v37 = vsel %vm9585_vm6, 0, %v500_v43  ;;  %v7262_v43 = vld [vmem:[%s9637_s12 + $0x48] sm:$0xff] }
 0x506   : > { %502 = vst [vmem:[#allocation3 + $0xd4] sm:$0x1] %v501_v37 }
 0x507   : > { %4545 = vst.msk [vmem:[#allocation3 + $0xd4] sm:$0x1] %vm282_vm1, %v12163_v57  ;;  %v7261_v57 = vld [vmem:[%s9637_s12 + $0x40] sm:$0xff] }
 0x50b   : > { %8782 = vmatmul.mubr.msk.bf16.vlgmr.msra.gmra.mrb[0].mxu1 %vm1677_vm9, %v11589_v6 }
 0x50c   : > { %8814 = vmatpush3.bf16.msra.mxu1 %v6618_v55  ;;  %8785 = vmatprep.mubr.msk.bf16.mxu1 %vm1677_vm9, %v11608_v28 }
 0x50d   : > { %9443 = vmatprep.subr.msk.bf16.mxu1 %vm1726_vm0, %v7892_v59 }
 0x513   : > { %8786 = vmatmul.mubr.msk.bf16.gmra.mrb[4].mxu1 %vm1677_vm9, %v11612_v8 }
 0x514   : > { %8789 = vmatprep.mubr.msk.bf16.mxu1 %vm1677_vm9, %v11628_v9 }
 0x51b   : > { %8790 = vmatmul.mubr.msk.bf16.gmra.mrb[8].mxu1 %vm1677_vm9, %v11632_v38 }
 0x51c   : > { %8793 = vmatprep.mubr.msk.bf16.mxu1 %vm1677_vm9, %v11458_v32 }
 0x523   : > { %8794 = vmatmul.mubr.msk.bf16.gmra.mrb[12].mxu1 %vm1677_vm9, %v11464_v58 }
 0x524   : > { %8797 = vmatprep.mubr.msk.bf16.mxu1 %vm1677_vm9, %v11478_v46 }
 0x52b   : > { %8798 = vmatmul.mubr.msk.bf16.gmra.mrb[16].mxu1 %vm1677_vm9, %v11484_v12 }
 0x52c   : > { %8801 = vmatprep.mubr.msk.bf16.mxu1 %vm1677_vm9, %v11498_v17 }
 0x533   : > { %8802 = vmatmul.mubr.msk.bf16.gmra.mrb[20].mxu1 %vm1677_vm9, %v11504_v31 }
 0x534   : > { %8805 = vmatprep.mubr.msk.bf16.mxu1 %vm1677_vm9, %v11519_v23 }
 0x53b   : > { %8806 = vmatmul.mubr.msk.bf16.gmra.mrb[24].mxu1 %vm1677_vm9, %v11529_v7 }
 0x53c   : > { %8809 = vmatprep.mubr.msk.bf16.mxu1 %vm1677_vm9, %v11540_v10 }
 0x543   : > { %8810 = vmatmul.mubr.msk.bf16.gmra.mrb[28].mxu1 %vm1677_vm9, %v11549_v41 }
 0x544   : > { %8815 = vmatprep.mubr.msk.bf16.mxu1 %vm1677_vm9, %v11416_v39 }
 0x54b   : > { %8816 = vmatmul.mubr.msk.bf16.vlgmr.msra.gmra.mrb[0].mxu1 %vm1677_vm9, %v11429_v47 }
 0x54c   : > { %8848 = vmatpush3.bf16.msra.mxu1 %v6846_v50  ;;  %8819 = vmatprep.mubr.msk.bf16.mxu1 %vm1677_vm9, %v11435_v20 }
 0x54d   : > { %9444 = vmatprep.subr.msk.bf16.mxu1 %vm1726_vm0, %v7911_v16 }
 0x553   : > { %8820 = vmatmul.mubr.msk.bf16.gmra.mrb[4].mxu1 %vm1677_vm9, %v11439_v24  ;;  %v4599_v24 = vld [vmem:[#allocation3 + $0xd4] sm:$0x1] }
 0x554   : > { %8823 = vmatprep.mubr.msk.bf16.mxu1 %vm1677_vm9, %v11511_v36 }
 0x55b   : > { %8824 = vmatmul.mubr.msk.bf16.gmra.mrb[8].mxu1 %vm1677_vm9, %v11361_v3  ;;  %v4597_v3 = vld [vmem:[#allocation3 + $0xcc] sm:$0xf] }
 0x55c   : > { %8827 = vmatprep.mubr.msk.bf16.mxu1 %vm1677_vm9, %v11365_v52  ;;  %v4598_v52 = vld [vmem:[#allocation3 + $0xd0] sm:$0xf] }
 0x563   : > { %8828 = vmatmul.mubr.msk.bf16.gmra.mrb[12].mxu1 %vm1677_vm9, %v11369_v40  ;;  %v7875_v40 = vcombine.low %v4597_v3, %v4598_v52 }
 0x564   : > { %8831 = vmatprep.mubr.msk.bf16.mxu1 %vm1677_vm9, %v11377_v51  ;;  %v7058_v51 = vsel %vm1726_vm0, %v7911_v16, 0 }
 0x56b   : > { %8832 = vmatmul.mubr.msk.bf16.gmra.mrb[16].mxu1 %vm1677_vm9, %v11381_v53  ;;  %v6814_v53 = vshrl.u32 %v4597_v3, 16 }
 0x56c   : > { %8835 = vmatprep.mubr.msk.bf16.mxu1 %vm1677_vm9, %v11385_v18  ;;  %v6817_v18 = vshll.u32 %v4597_v3, 16 }
 0x56e   : > { %v6819_v39 = vrot.slane %v6817_v18, 5 }
 0x573   : > { %8836 = vmatmul.mubr.msk.bf16.gmra.mrb[20].mxu1 %vm1677_vm9, %v11391_v49  ;;  %v6827_v49 = vshrl.u32 %v4598_v52, 16 }
 0x574   : > { %8839 = vmatprep.mubr.msk.bf16.mxu1 %vm1677_vm9, %v11395_v0  ;;  %v6823_v0 = vshll.u32 %v4598_v52, 16 }
 0x575   : > { %v6829_v20 = vrot.slane %v6827_v49, 4 }
 0x576   : > { %v6825_v47 = vrot.slane %v6823_v0, 5  ;;  %v7266_v0 = vld [vmem:[%s9637_s12 + $0x68] sm:$0xff] }
 0x57b   : > { %8840 = vmatmul.mubr.msk.bf16.gmra.mrb[24].mxu1 %vm1677_vm9, %v11399_v61  ;;  %v6816_v61 = vrot.slane %v6814_v53, 4  ;;  %v7268_v53 = vld [vmem:[%s9637_s12 + $0x78] sm:$0xff] }
 0x57c   : > { %8843 = vmatprep.mubr.msk.bf16.mxu1 %vm1677_vm9, %v11693_v27  ;;  %v6830_v27 = vor.u32 %v6829_v20, %v6825_v47 }
 0x57d   : > { %v6820_v36 = vor.u32 %v6819_v39, %v6816_v61 }
 0x583   : > { %8844 = vmatmul.mubr.msk.bf16.gmra.mrb[28].mxu1 %vm1677_vm9, %v7875_v40  ;;  %v7265_v40 = vld [vmem:[%s9637_s12 + $0x60] sm:$0xff] }
 0x584   : > { %8849 = vmatprep.mubr.msk.bf16.mxu1 %vm1677_vm9, %v12148_v33  ;;  %v6833_v33 = vshll.u32 %v4599_v24, 16 }
 0x58b   : > { %8850 = vmatmul.mubr.msk.bf16.vlgmr.msra.gmra.mrb[0].mxu1 %vm1677_vm9, %v12149_v13  ;;  %v6821_v13 = vrot.slane %v6820_v36, 4  ;;  %v7271_v36 = vld [vmem:[%s9637_s12 + $0x90] sm:$0xff] }
 0x58c   : > { %8882 = vmatpush3.bf16.msra.mxu1 %v7058_v51  ;;  %8853 = vmatprep.mubr.msk.bf16.mxu1 %vm1677_vm9, %v12150_v14  ;;  %v6831_v14 = vrot.slane %v6830_v27, 4  ;;  %v7269_v27 = vld [vmem:[%s9637_s12 + $0x80] sm:$0xff] }
 0x593   : > { %8854 = vmatmul.mubr.msk.bf16.gmra.mrb[4].mxu1 %vm1677_vm9, %v12151_v44  ;;  %v6835_v44 = vrot.slane %v6833_v33, 5 }
 0x594   : > { %8857 = vmatprep.mubr.msk.bf16.mxu1 %vm1677_vm9, %v12152_v2  ;;  %v6826_v2 = vsel %vm9666_vm11, %v6821_v13, %v6825_v47  ;;  %v7272_v13 = vld [vmem:[%s9637_s12 + $0x98] sm:$0xff] }
 0x59b   : > { %8858 = vmatmul.mubr.msk.bf16.gmra.mrb[8].mxu1 %vm1677_vm9, %v12153_v54 }
 0x59c   : > { %8861 = vmatprep.mubr.msk.bf16.mxu1 %vm1677_vm9, %v12154_v4 }
 0x5a3   : > { %8862 = vmatmul.mubr.msk.bf16.gmra.mrb[12].mxu1 %vm1677_vm9, %v12155_v21 }
 0x5a4   : > { %8865 = vmatprep.mubr.msk.bf16.mxu1 %vm1677_vm9, %v12156_v1 }
 0x5ab   : > { %8866 = vmatmul.mubr.msk.bf16.gmra.mrb[16].mxu1 %vm1677_vm9, %v12157_v62  ;;  %v7259_v62 = vld [vmem:[%s9637_s12 + $0x30] sm:$0xff] }
 0x5ac   : > { %8869 = vmatprep.mubr.msk.bf16.mxu1 %vm1677_vm9, %v12158_v60  ;;  %v7257_v60 = vld [vmem:[%s9637_s12 + $0x20] sm:$0xff] }
 0x5b3   : > { %8870 = vmatmul.mubr.msk.bf16.gmra.mrb[20].mxu1 %vm1677_vm9, %v11340_v5  ;;  %v6836_v5 = vsel %vm9666_vm11, %v6831_v14, %v6835_v44 }
 0x5b4   : > { %8873 = vmatprep.mubr.msk.bf16.mxu1 %vm1677_vm9, %v12159_v35  ;;  %v7893_v54 = vcombine.low %v6826_v2, %v6836_v5  ;;  %v7270_v2 = vld [vmem:[%s9637_s12 + $0x88] sm:$0xff] }
 0x5bb   : > { %8874 = vmatmul.mubr.msk.bf16.gmra.mrb[24].mxu1 %vm1677_vm9, %v12160_v30 }
 0x5bc   : > { %8877 = vmatprep.mubr.msk.bf16.mxu1 %vm1677_vm9, %v11745_v11  ;;  %v7264_v11 = vld [vmem:[%s9637_s12 + $0x58] sm:$0xff] }
 0x5c3   : > { %8878 = vmatmul.mubr.msk.bf16.gmra.mrb[28].mxu1 %vm1677_vm9, %v7893_v54 }
 0x5c4   : > { %8883 = vmatprep.mubr.msk.bf16.mxu1 %vm1677_vm9, %v11589_v6  ;;  %v7253_v6 = vld [vmem:[%s9637_s12] sm:$0xff] }
 0x5cb   : > { %8884 = vmatmul.mubr.msk.bf16.vlgmr.msra.gmra.mrb[0].mxu1 %vm1677_vm9, %v11608_v28 }
 0x5cc   : > { %8887 = vmatprep.mubr.msk.bf16.mxu1 %vm1677_vm9, %v11612_v8  ;;  %v7254_v8 = vld [vmem:[%s9637_s12 + $0x8] sm:$0xff] }
 0x5d3   : > { %8888 = vmatmul.mubr.msk.bf16.gmra.mrb[4].mxu1 %vm1677_vm9, %v11628_v9 }
 0x5d4   : > { %8891 = vmatprep.mubr.msk.bf16.mxu1 %vm1677_vm9, %v11632_v38 }
 0x5db   : > { %8892 = vmatmul.mubr.msk.bf16.gmra.mrb[8].mxu1 %vm1677_vm9, %v11458_v32  ;;  %v7044_v32 = vrot.slane %v4598_v52, 5  ;;  %v7267_v52 = vld [vmem:[%s9637_s12 + $0x70] sm:$0xff] }
 0x5dc   : > { %8895 = vmatprep.mubr.msk.bf16.mxu1 %vm1677_vm9, %v11464_v58  ;;  %v7910_v58 = vrot.slane %v4597_v3, 9 }
 0x5e3   : > { %8896 = vmatmul.mubr.msk.bf16.gmra.mrb[12].mxu1 %vm1677_vm9, %v11478_v46  ;;  %v7046_v46 = vrot.slane %v7044_v32, 4 }
 0x5e4   : > { %8899 = vmatprep.mubr.msk.bf16.mxu1 %vm1677_vm9, %v11484_v12  ;;  %v7047_v12 = vrot.slane %v4599_v24, 5 }
 0x5eb   : > { %8900 = vmatmul.mubr.msk.bf16.gmra.mrb[16].mxu1 %vm1677_vm9, %v11498_v17  ;;  %v7045_v17 = vsel %vm10224_vm2, %v7910_v58, %v7044_v32 }
 0x5ec   : > { %8903 = vmatprep.mubr.msk.bf16.mxu1 %vm1677_vm9, %v11504_v31  ;;  %v7048_v31 = vsel %vm10224_vm2, %v7046_v46, %v7047_v12  ;;  %v7275_v12 = vld [vmem:[%s9637_s12 + $0xb0] sm:$0xff] }
 0x5f3   : > { %8904 = vmatmul.mubr.msk.bf16.gmra.mrb[20].mxu1 %vm1677_vm9, %v11519_v23  ;;  %v7912_v23 = vcombine.low %v7045_v17, %v7048_v31  ;;  %v7273_v17 = vld [vmem:[%s9637_s12 + $0xa0] sm:$0xff] }
 0x5f4   : > { %8907 = vmatprep.mubr.msk.bf16.mxu1 %vm1677_vm9, %v11529_v7  ;;  %v7255_v7 = vld [vmem:[%s9637_s12 + $0x10] sm:$0xff] }
 0x5fb   : > { %8908 = vmatmul.mubr.msk.bf16.gmra.mrb[24].mxu1 %vm1677_vm9, %v11540_v10 }
 0x5fc   : > { %8911 = vmatprep.mubr.msk.bf16.mxu1 %vm1677_vm9, %v11549_v41 }
 0x603   : > { %8912 = vmatmul.mubr.msk.bf16.gmra.mrb[28].mxu1 %vm1677_vm9, %v7912_v23  ;;  %v7276_v23 = vld [vmem:[%s9637_s12 + $0xb8] sm:$0xff] }
 0x69e   : > { %v8885_v10 = vpop.f32.mrb[0].mxu1 }
 0x69f   : > { %v7287_v41 = vadd.f32 %v8885_v10, %v7255_v7  ;;  %v7094_v28 = vpop.f32.mrb[1].mxu1  ;;  %v7274_v10 = vld [vmem:[%s9637_s12 + $0xa8] sm:$0xff] }
 0x6a0   : > { %v7285_v9 = vadd.f32 %v7253_v6, %v7094_v28  ;;  %v8886_v38 = vpop.f32.mrb[2].mxu1 }
 0x6a1   : > { %7319 = vst.msk [vmem:[%s11904_s27 + $0x10] sm:$0xff] %vm1677_vm9, %v7287_v41  ;;  %v7288_v4 = vadd.f32 %v8886_v38, %v7256_v56  ;;  %v7097_v21 = vpop.f32.mrb[3].mxu1  ;;  %v7279_v38 = vld [vmem:[%s9637_s12 + $0xd0] sm:$0xff] }
 0x6a2   : > { %7317 = vst.msk [vmem:[%s11904_s27] sm:$0xff] %vm1677_vm9, %v7285_v9  ;;  %v7286_v1 = vadd.f32 %v7254_v8, %v7097_v21 }
 0x6a3   : > { %7320 = vst.msk [vmem:[%s11904_s27 + $0x18] sm:$0xff] %vm1677_vm9, %v7288_v4  ;;  %v7277_v4 = vld [vmem:[%s9637_s12 + $0xc0] sm:$0xff] }
 0x6a4   : > { %7318 = vst.msk [vmem:[%s11904_s27 + $0x8] sm:$0xff] %vm1677_vm9, %v7286_v1  ;;  %v7280_v1 = vld [vmem:[%s9637_s12 + $0xd8] sm:$0xff] }
 0x6a6   : > { %v8889_v63 = vpop.f32.mrb[4].mxu1 }
 0x6a7   : > { %v7291_v35 = vadd.f32 %v8889_v63, %v7259_v62  ;;  %v7110_v30 = vpop.f32.mrb[5].mxu1  ;;  %v7278_v63 = vld [vmem:[%s9637_s12 + $0xc8] sm:$0xff] }
 0x6a8   : > { %v7289_v25 = vadd.f32 %v7257_v60, %v7110_v30  ;;  %v8890_v34 = vpop.f32.mrb[6].mxu1 }
 0x6a9   : > { %7323 = vst.msk [vmem:[%s11904_s27 + $0x30] sm:$0xff] %vm1677_vm9, %v7291_v35  ;;  %v7292_v19 = vadd.f32 %v8890_v34, %v7260_v48  ;;  %v7113_v15 = vpop.f32.mrb[7].mxu1  ;;  %v7283_v34 = vld [vmem:[%s9637_s12 + $0xf0] sm:$0xff] }
 0x6aa   : > { %7321 = vst.msk [vmem:[%s11904_s27 + $0x20] sm:$0xff] %vm1677_vm9, %v7289_v25  ;;  %v7290_v22 = vadd.f32 %v7258_v26, %v7113_v15 }
 0x6ab   : > { %7324 = vst.msk [vmem:[%s11904_s27 + $0x38] sm:$0xff] %vm1677_vm9, %v7292_v19  ;;  %v7281_v19 = vld [vmem:[%s9637_s12 + $0xe0] sm:$0xff] }
 0x6ac   : > { %7322 = vst.msk [vmem:[%s11904_s27 + $0x28] sm:$0xff] %vm1677_vm9, %v7290_v22  ;;  %v7284_v22 = vld [vmem:[%s9637_s12 + $0xf8] sm:$0xff] }
 0x6ae   : > { %v8893_v29 = vpop.f32.mrb[8].mxu1 }
 0x6af   : > { %v7295_v55 = vadd.f32 %v8893_v29, %v7263_v42  ;;  %v7126_v59 = vpop.f32.mrb[9].mxu1  ;;  %v7282_v29 = vld [vmem:[%s9637_s12 + $0xe8] sm:$0xff] }
 0x6b0   : > { %v7293_v45 = vadd.f32 %v7261_v57, %v7126_v59  ;;  %v8894_v37 = vpop.f32.mrb[10].mxu1 }
 0x6b1   : > { %7327 = vst.msk [vmem:[%s11904_s27 + $0x50] sm:$0xff] %vm1677_vm9, %v7295_v55  ;;  %v7296_v50 = vadd.f32 %v8894_v37, %v7264_v11  ;;  %v7129_v16 = vpop.f32.mrb[11].mxu1 }
 0x6b2   : > { %7325 = vst.msk [vmem:[%s11904_s27 + $0x40] sm:$0xff] %vm1677_vm9, %v7293_v45  ;;  %v7294_v3 = vadd.f32 %v7262_v43, %v7129_v16 }
 0x6b3   : > { %7328 = vst.msk [vmem:[%s11904_s27 + $0x58] sm:$0xff] %vm1677_vm9, %v7296_v50 }
 0x6b4   : > { %7326 = vst.msk [vmem:[%s11904_s27 + $0x48] sm:$0xff] %vm1677_vm9, %v7294_v3 }
 0x6b6   : > { %v8897_v51 = vpop.f32.mrb[12].mxu1 }
 0x6b7   : > { %v7299_v18 = vadd.f32 %v8897_v51, %v7267_v52  ;;  %v7142_v49 = vpop.f32.mrb[13].mxu1 }
 0x6b8   : > { %v7297_v61 = vadd.f32 %v7265_v40, %v7142_v49  ;;  %v8898_v39 = vpop.f32.mrb[14].mxu1 }
 0x6b9   : > { %7331 = vst.msk [vmem:[%s11904_s27 + $0x70] sm:$0xff] %vm1677_vm9, %v7299_v18  ;;  %v7300_v47 = vadd.f32 %v8898_v39, %v7268_v53  ;;  %v7145_v20 = vpop.f32.mrb[15].mxu1 }
 0x6ba   : > { %7329 = vst.msk [vmem:[%s11904_s27 + $0x60] sm:$0xff] %vm1677_vm9, %v7297_v61  ;;  %v7298_v24 = vadd.f32 %v7266_v0, %v7145_v20 }
 0x6bb   : > { %7332 = vst.msk [vmem:[%s11904_s27 + $0x78] sm:$0xff] %vm1677_vm9, %v7300_v47 }
 0x6bc   : > { %7330 = vst.msk [vmem:[%s11904_s27 + $0x68] sm:$0xff] %vm1677_vm9, %v7298_v24 }
 0x6be   : > { %v8901_v33 = vpop.f32.mrb[16].mxu1 }
 0x6bf   : > { %v7303_v14 = vadd.f32 %v8901_v33, %v7271_v36  ;;  %v7158_v44 = vpop.f32.mrb[17].mxu1 }
 0x6c0   : > { %v7301_v5 = vadd.f32 %v7269_v27, %v7158_v44  ;;  %v8902_v54 = vpop.f32.mrb[18].mxu1 }
 0x6c1   : > { %7335 = vst.msk [vmem:[%s11904_s27 + $0x90] sm:$0xff] %vm1677_vm9, %v7303_v14  ;;  %v7304_v32 = vadd.f32 %v8902_v54, %v7272_v13  ;;  %v7161_v58 = vpop.f32.mrb[19].mxu1 }
 0x6c2   : > { %7333 = vst.msk [vmem:[%s11904_s27 + $0x80] sm:$0xff] %vm1677_vm9, %v7301_v5  ;;  %v7302_v46 = vadd.f32 %v7270_v2, %v7161_v58 }
 0x6c3   : > { %7336 = vst.msk [vmem:[%s11904_s27 + $0x98] sm:$0xff] %vm1677_vm9, %v7304_v32 }
 0x6c4   : > { %7334 = vst.msk [vmem:[%s11904_s27 + $0x88] sm:$0xff] %vm1677_vm9, %v7302_v46 }
 0x6c6   : > { %v8905_v31 = vpop.f32.mrb[20].mxu1 }
 0x6c7   : > { %v7307_v7 = vadd.f32 %v8905_v31, %v7275_v12  ;;  %v7174_v6 = vpop.f32.mrb[21].mxu1 }
 0x6c8   : > { %v7305_v56 = vadd.f32 %v7273_v17, %v7174_v6  ;;  %v8906_v41 = vpop.f32.mrb[22].mxu1 }
 0x6c9   : > { %7339 = vst.msk [vmem:[%s11904_s27 + $0xb0] sm:$0xff] %vm1677_vm9, %v7307_v7  ;;  %v7308_v28 = vadd.f32 %v8906_v41, %v7276_v23  ;;  %v7177_v8 = vpop.f32.mrb[23].mxu1 }
 0x6ca   : > { %7337 = vst.msk [vmem:[%s11904_s27 + $0xa0] sm:$0xff] %vm1677_vm9, %v7305_v56  ;;  %v7306_v9 = vadd.f32 %v7274_v10, %v7177_v8 }
 0x6cb   : > { %7340 = vst.msk [vmem:[%s11904_s27 + $0xb8] sm:$0xff] %vm1677_vm9, %v7308_v28 }
 0x6cc   : > { %7338 = vst.msk [vmem:[%s11904_s27 + $0xa8] sm:$0xff] %vm1677_vm9, %v7306_v9 }
 0x6ce   : > { %v8909_v21 = vpop.f32.mrb[24].mxu1 }
 0x6cf   : > { %v7311_v62 = vadd.f32 %v8909_v21, %v7279_v38  ;;  %v7190_v60 = vpop.f32.mrb[25].mxu1 }
 0x6d0   : > { %v7309_v48 = vadd.f32 %v7277_v4, %v7190_v60  ;;  %v8910_v35 = vpop.f32.mrb[26].mxu1 }
 0x6d1   : > { %7343 = vst.msk [vmem:[%s11904_s27 + $0xd0] sm:$0xff] %vm1677_vm9, %v7311_v62  ;;  %v7312_v30 = vadd.f32 %v8910_v35, %v7280_v1  ;;  %v7193_v26 = vpop.f32.mrb[27].mxu1 }
 0x6d2   : > { %7341 = vst.msk [vmem:[%s11904_s27 + $0xc0] sm:$0xff] %vm1677_vm9, %v7309_v48  ;;  %v7310_v25 = vadd.f32 %v7278_v63, %v7193_v26 }
 0x6d3   : > { %7344 = vst.msk [vmem:[%s11904_s27 + $0xd8] sm:$0xff] %vm1677_vm9, %v7312_v30 }
 0x6d4   : > { %7342 = vst.msk [vmem:[%s11904_s27 + $0xc8] sm:$0xff] %vm1677_vm9, %v7310_v25 }
 0x6d6   : > { %v8913_v15 = vpop.f32.mrb[28].mxu1 }
 0x6d7   : > { %v7315_v42 = vadd.f32 %v8913_v15, %v7283_v34  ;;  %v7206_v57 = vpop.f32.mrb[29].mxu1 }
 0x6d8   : > { %v7313_v11 = vadd.f32 %v7281_v19, %v7206_v57  ;;  %v8914_v55 = vpop.f32.mrb[30].mxu1 }
 0x6d9   : > { %7347 = vst.msk [vmem:[%s11904_s27 + $0xf0] sm:$0xff] %vm1677_vm9, %v7315_v42  ;;  %v7316_v59 = vadd.f32 %v8914_v55, %v7284_v22  ;;  %v7209_v43 = vpop.f32.mrb[31].mxu1 }
 0x6da   : > { %7345 = vst.msk [vmem:[%s11904_s27 + $0xe0] sm:$0xff] %vm1677_vm9, %v7313_v11  ;;  %v7314_v45 = vadd.f32 %v7282_v29, %v7209_v43 }
 0x6db   : > { %7348 = vst.msk [vmem:[%s11904_s27 + $0xf8] sm:$0xff] %vm1677_vm9, %v7316_v59 }
 0x6dc   : > { %7346 = vst.msk [vmem:[%s11904_s27 + $0xe8] sm:$0xff] %vm1677_vm9, %v7314_v45 }
 0x6dd PF: > { %s17_s24 = sadd.s32 1, %s9519_s24  }
 0x6de   : > { %p14_p4 = scmp.ge.s32.totalorder %s17_s24, 4  }
 0x6e0   :  { %16 = sbr.rel (!%p14_p4) target bundleno = 1 (0x1), region = 98 }

</bundles_post_ra>
